<compile_context>
chip_gen: v7x
topology: tpu7x:2x2x1
jax: 0.10.0
libtpu: 0.0.40
codegen_flags: <defaults>
</compile_context>

<pallas_src>
import functools

import jax
import jax.numpy as jnp
from jax.experimental import pallas as pl
from jax.experimental.pallas import tpu as pltpu


def fc_head_kernel(pf_ref, dirs_ref, freq_ref, phase_ref,
                   w1_ref, wdir_ref, lb_ref, sb_ref, rw_ref, rb_ref,
                   sigma_ref, rgb_ref):
    c = w1_ref.shape[0] - 1          # channels (static)

    pf = pf_ref[0]                   # (TN, C)  — contiguous HBM read, no wrapper transpose
    d = dirs_ref[0]                  # (TN, 3)

    # One MXU pass produces both the FiLM pre-activation (rows 0..C-1) and the
    # sigma head (row C).  Contracting on the *last* axis of the point tile lets
    # the MXU do the operand transposition (channel-first, lane-dense result).
    h_ext = jax.lax.dot_general(
        w1_ref[...], pf, (((1,), (1,)), ((), ())),
        preferred_element_type=jnp.float32,
        precision=jax.lax.Precision.HIGHEST)                        # (C+1, TN)

    # K=3 dirs contribution on the (massively underutilized) MXU.
    h_dir = jax.lax.dot_general(
        wdir_ref[...], d, (((1,), (1,)), ((), ())),
        preferred_element_type=jnp.float32,
        precision=jax.lax.Precision.HIGHEST)                        # (C, TN)

    sigma = h_ext[c:c + 1, :] + sb_ref[...]                         # (1, TN)
    sigma_ref[0] = sigma.astype(sigma_ref.dtype)

    h = h_ext[:c, :] + h_dir + lb_ref[...]                          # (C, TN)
    # freq/phase precomputed per batch in the wrapper, shape (C, 1) here.
    film = jnp.sin(freq_ref[0] * h + phase_ref[0])                  # (C, TN)

    rgb = jax.nn.sigmoid(
        jnp.dot(rw_ref[...], film,
                preferred_element_type=jnp.float32,
                precision=jax.lax.Precision.HIGHEST) + rb_ref[...])  # (3, TN)
    rgb_ref[0] = rgb.astype(rgb_ref.dtype)


@functools.partial(jax.jit, static_argnames=("tile_n", "stream_dtype"))
def fc_head_forward(pf, dirs, w_sel, params, tile_n=2048, stream_dtype=None):
    """pf: (B, N, C) f32, dirs: (B, N, 3), w_sel: (B, W) = wp[:, mlp_length]."""
    B, N, C = pf.shape
    (sw, sb, lw_pf, lw_dir, lb, swf, sbf, swp, sbp, rw, rb) = params
    assert tile_n % 128 == 0, "tile_n must be a multiple of 128 (lane-dense outputs)"

    # ---- per-batch FiLM style math hoisted out of the grid ----
    freq = ((w_sel @ swf + sbf) * 15.0 + 30.0)[..., None]    # (B, C, 1)
    phase = (w_sel @ swp + sbp)[..., None]                   # (B, C, 1)

    # ---- fused / transposed weights: rows 0..C-1 = FiLM pf weight, row C = sigma ----
    w1 = jnp.concatenate([lw_pf.T, sw.T], axis=0)            # (C+1, C)
    wdir_t = lw_dir.T                                        # (C, 3)
    lb_t = lb.T                                              # (C, 1)
    rw_t = rw.T                                              # (3, C)
    rb_t = rb.T                                              # (3, 1)

    if stream_dtype is not None:                             # optional bf16 streaming
        pf = pf.astype(stream_dtype)
        dirs = dirs.astype(stream_dtype)

    grid = (B, pl.cdiv(N, tile_n))                           # no wrapper pad; edge block clipped
    tiled_in = lambda b, n: (b, n, 0)    # noqa: E731
    tiled_out = lambda b, n: (b, 0, n)   # noqa: E731
    per_b = lambda b, n: (b, 0, 0)       # noqa: E731
    wide = lambda b, n: (0, 0)           # noqa: E731

    flops = 2 * B * N * ((C + 1) * C + 3 * C + 3 * C) + 6 * B * N * C
    transc = B * N * (C + 3)
    bytes_accessed = 4 * (B * N * (C + 3 + 1 + 3) + 2 * B * C
                          + (C + 1) * C + 3 * C + C + 1 + 3 * C + 3)

    sigma_c, rgb_c = pl.pallas_call(
        fc_head_kernel,
        out_shape=(jax.ShapeDtypeStruct((B, 1, N), jnp.float32),
                   jax.ShapeDtypeStruct((B, 3, N), jnp.float32)),
        grid_spec=pltpu.PrefetchScalarGridSpec(
            num_scalar_prefetch=0,
            grid=grid,
            in_specs=[
                pl.BlockSpec((1, tile_n, C), tiled_in),    # point_features (native layout)
                pl.BlockSpec((1, tile_n, 3), tiled_in),    # dirs (native layout)
                pl.BlockSpec((1, C, 1), per_b),            # freq  (precomputed per batch)
                pl.BlockSpec((1, C, 1), per_b),            # phase (precomputed per batch)
                pl.BlockSpec((C + 1, C), wide),            # fused FiLM-pf + sigma weight
                pl.BlockSpec((C, 3), wide),                # FiLM dirs weight
                pl.BlockSpec((C, 1), wide),                # FiLM bias
                pl.BlockSpec((1, 1), wide),                # sigma bias
                pl.BlockSpec((3, C), wide),                # rgb_head weight
                pl.BlockSpec((3, 1), wide),                # rgb_head bias
            ],
            out_specs=[
                pl.BlockSpec((1, 1, tile_n), tiled_out),   # sigma, lane-dense
                pl.BlockSpec((1, 3, tile_n), tiled_out),   # rgb, lane-dense
            ],
        ),
        compiler_params=pltpu.CompilerParams(
            dimension_semantics=("parallel", "parallel")),
        cost_estimate=pl.CostEstimate(flops=flops, transcendentals=transc,
                                      bytes_accessed=bytes_accessed),
    )(pf, dirs, freq, phase, w1, wdir_t, lb_t, sb, rw_t, rb_t)

    # (B,1,N) -> (B,N,1) is a layout-free reshape; rgb needs one small transpose.
    sigma = jnp.reshape(sigma_c, (B, N, 1))
    rgb = jnp.transpose(rgb_c, (0, 2, 1))                    # (B, N, 3)
    return {"sigma": sigma, "rgb": rgb}


def make_params(key, channels, w_dim):
    """Deterministic synthetic parameters matching FCHead's shapes.

    Weights are stored transposed (in_features, out_features), i.e. x @ W layout
    (PyTorch stores (out, in)); the wrapper re-transposes as needed."""
    C, W = channels, w_dim
    ks = jax.random.split(key, 8)
    u = lambda k, shape, s: jax.random.uniform(k, shape, jnp.float32, -s, s)

    # sigma_head: Linear(C, 1), freq_init(25)
    s = (6.0 / C) ** 0.5 / 25.0
    sw = u(ks[0], (C, 1), s)
    sb = u(ks[1], (1, 1), 1.0 / C ** 0.5)

    # rgb_film.layer: Linear(C+3, C), freq_init(25)
    s = (6.0 / (C + 3)) ** 0.5 / 25.0
    lw = u(ks[2], (C + 3, C), s)
    lw_pf, lw_dir = lw[:C], lw[C:]
    lb = u(ks[3], (1, C), 1.0 / (C + 3) ** 0.5)

    # rgb_film.style: Linear(W, 2C), kaiming-normal-ish * 0.25
    std = 0.25 * (2.0 / (1.0 + 0.2 ** 2) / W) ** 0.5
    style_w = std * jax.random.normal(ks[4], (W, 2 * C), jnp.float32)
    style_b = u(ks[5], (1, 2 * C), 1.0 / W ** 0.5)
    swf, swp = style_w[:, :C], style_w[:, C:]
    sbf, sbp = style_b[:, :C], style_b[:, C:]

    # rgb_head: Linear(C, 3), freq_init(25)
    s = (6.0 / C) ** 0.5 / 25.0
    rw = u(ks[6], (C, 3), s)
    rb = u(ks[7], (1, 3), 1.0 / C ** 0.5)

    return (sw, sb, lw_pf, lw_dir, lb, swf, sbf, swp, sbp, rw, rb)


def fc_head_reference(pf, dirs, w_sel, params):
    """Pure-JAX reference mirroring the PyTorch forward."""
    (sw, sb, lw_pf, lw_dir, lb, swf, sbf, swp, sbp, rw, rb) = params
    sigma = pf @ sw + sb
    x = jnp.concatenate([pf, dirs], axis=-1)
    lw = jnp.concatenate([lw_pf, lw_dir], axis=0)
    h = x @ lw + lb
    freq = (w_sel @ swf + sbf)[:, None, :] * 15.0 + 30.0
    phase = (w_sel @ swp + sbp)[:, None, :]
    film = jnp.sin(freq * h + phase)
    rgb = jax.nn.sigmoid(film @ rw + rb)
    return {"sigma": sigma, "rgb": rgb}


if __name__ == "__main__":
    # full-f32 matmuls everywhere so the reference comparison is meaningful
    jax.config.update("jax_default_matmul_precision", "highest")

    B, N, C, W = 2, 600, 32, 16          # N not a multiple of tile_n: exercises edge block
    mlp_length = 1
    num_wp_layers = 3

    key = jax.random.PRNGKey(0)
    k_pf, k_dirs, k_wp, k_par = jax.random.split(key, 4)

    point_features = jax.random.normal(k_pf, (B, N, C), jnp.float32)
    dirs = jax.random.normal(k_dirs, (B, N, 3), jnp.float32)
    wp = jax.random.normal(k_wp, (B, num_wp_layers, W), jnp.float32)
    params = make_params(k_par, C, W)

    w_sel = wp[:, mlp_length]            # glue: wp[:, self.mlp_length]

    # small tile at test shapes (multi-tile grid + partial tail); production default is 2048.
    out = fc_head_forward(point_features, dirs, w_sel, params, tile_n=256)
    jax.block_until_ready(out)

    ref = fc_head_reference(point_features, dirs, w_sel, params)
    assert out["sigma"].shape == (B, N, 1)
    assert out["rgb"].shape == (B, N, 3)
    assert jnp.allclose(out["sigma"], ref["sigma"], atol=1e-4, rtol=1e-4)
    assert jnp.allclose(out["rgb"], ref["rgb"], atol=1e-4, rtol=1e-4)

    # TODO(synk): enable stream_dtype=jnp.bfloat16 in production (halves pf HBM traffic,
    # biggest win on v5e) — intentionally off here to keep the f32 1e-4 check valid.
    print("KERNEL_OK")
</pallas_src>

<mosaic_0001>
module attributes {stable_mosaic.version = 11 : i64} {
  func.func @fc_head_kernel(%arg0: i32, %arg1: i32, %arg2: memref<1x256x32xf32, #tpu.memory_space<vmem>>, %arg3: memref<1x256x3xf32, #tpu.memory_space<vmem>>, %arg4: memref<1x32x1xf32, #tpu.memory_space<vmem>>, %arg5: memref<1x32x1xf32, #tpu.memory_space<vmem>>, %arg6: memref<33x32xf32, #tpu.memory_space<vmem>>, %arg7: memref<32x3xf32, #tpu.memory_space<vmem>>, %arg8: memref<32x1xf32, #tpu.memory_space<vmem>>, %arg9: memref<1x1xf32, #tpu.memory_space<vmem>>, %arg10: memref<3x32xf32, #tpu.memory_space<vmem>>, %arg11: memref<3x1xf32, #tpu.memory_space<vmem>>, %arg12: memref<1x1x256xf32, #tpu.memory_space<vmem>>, %arg13: memref<1x3x256xf32, #tpu.memory_space<vmem>>) attributes {dimension_semantics = [#tpu.dimension_semantics<parallel>, #tpu.dimension_semantics<parallel>], iteration_bounds = array<i64: 2, 3>, scalar_prefetch = 0 : i64, scratch_operands = 0 : i64, tpu.core_type = #tpu.core_type<tc>, window_params = [{transform_indices = @transform_0, window_bounds = array<i64: 1, 256, 32>}, {transform_indices = @transform_1, window_bounds = array<i64: 1, 256, 3>}, {transform_indices = @transform_2, window_bounds = array<i64: 1, 32, 1>}, {transform_indices = @transform_3, window_bounds = array<i64: 1, 32, 1>}, {pipeline_mode = #tpu.pipeline_mode<synchronous>, transform_indices = @transform_4, window_bounds = array<i64: 33, 32>}, {pipeline_mode = #tpu.pipeline_mode<synchronous>, transform_indices = @transform_5, window_bounds = array<i64: 32, 3>}, {pipeline_mode = #tpu.pipeline_mode<synchronous>, transform_indices = @transform_6, window_bounds = array<i64: 32, 1>}, {pipeline_mode = #tpu.pipeline_mode<synchronous>, transform_indices = @transform_7, window_bounds = array<i64: 1, 1>}, {pipeline_mode = #tpu.pipeline_mode<synchronous>, transform_indices = @transform_8, window_bounds = array<i64: 3, 32>}, {pipeline_mode = #tpu.pipeline_mode<synchronous>, transform_indices = @transform_9, window_bounds = array<i64: 3, 1>}, {transform_indices = @transform_10, window_bounds = array<i64: 1, 1, 256>}, {transform_indices = @transform_11, window_bounds = array<i64: 1, 3, 256>}]} {
    %c0 = arith.constant 0 : index
    %c0_0 = arith.constant 0 : index
    %c0_1 = arith.constant 0 : index
    %0 = vector.load %arg2[%c0, %c0_0, %c0_1] : memref<1x256x32xf32, #tpu.memory_space<vmem>>, vector<1x256x32xf32>
    %1 = vector.shape_cast %0 : vector<1x256x32xf32> to vector<256x32xf32>
    %c0_2 = arith.constant 0 : index
    %c0_3 = arith.constant 0 : index
    %c0_4 = arith.constant 0 : index
    %2 = vector.load %arg3[%c0_2, %c0_3, %c0_4] : memref<1x256x3xf32, #tpu.memory_space<vmem>>, vector<1x256x3xf32>
    %3 = vector.shape_cast %2 : vector<1x256x3xf32> to vector<256x3xf32>
    %c0_5 = arith.constant 0 : index
    %c0_6 = arith.constant 0 : index
    %4 = vector.load %arg6[%c0_5, %c0_6] : memref<33x32xf32, #tpu.memory_space<vmem>>, vector<33x32xf32>
    %cst = arith.constant dense<0.000000e+00> : vector<33x256xf32>
    %5 = tpu.matmul %4, %1, %cst {dimension_numbers = #tpu.dot_dimension_numbers<[1], [1], [0], [0], [0, 0, 1, 0], [], []>, precision = #tpu.contract_precision<fp32>} : vector<33x32xf32>, vector<256x32xf32>, vector<33x256xf32> -> vector<33x256xf32>
    %c0_7 = arith.constant 0 : index
    %c0_8 = arith.constant 0 : index
    %6 = vector.load %arg7[%c0_7, %c0_8] : memref<32x3xf32, #tpu.memory_space<vmem>>, vector<32x3xf32>
    %cst_9 = arith.constant dense<0.000000e+00> : vector<32x256xf32>
    %7 = tpu.matmul %6, %3, %cst_9 {dimension_numbers = #tpu.dot_dimension_numbers<[1], [1], [0], [0], [0, 0, 1, 0], [], []>, precision = #tpu.contract_precision<fp32>} : vector<32x3xf32>, vector<256x3xf32>, vector<32x256xf32> -> vector<32x256xf32>
    %8 = vector.extract_strided_slice %5 {offsets = [32, 0], sizes = [1, 256], strides = [1, 1]} : vector<33x256xf32> to vector<1x256xf32>
    %c0_10 = arith.constant 0 : index
    %c0_11 = arith.constant 0 : index
    %9 = vector.load %arg9[%c0_10, %c0_11] : memref<1x1xf32, #tpu.memory_space<vmem>>, vector<1x1xf32>
    %10 = vector.broadcast %9 : vector<1x1xf32> to vector<1x256xf32>
    %11 = arith.addf %8, %10 : vector<1x256xf32>
    %c0_12 = arith.constant 0 : index
    %c0_13 = arith.constant 0 : index
    %c0_14 = arith.constant 0 : index
    %12 = vector.load %arg12[%c0_12, %c0_13, %c0_14] : memref<1x1x256xf32, #tpu.memory_space<vmem>>, vector<1x1x256xf32>
    %13 = vector.shape_cast %12 : vector<1x1x256xf32> to vector<1x256xf32>
    %14 = vector.shape_cast %11 : vector<1x256xf32> to vector<1x1x256xf32>
    tpu.vector_store %arg12[%c0_12, %c0_13, %c0_14], %14 {strides = array<i32>} : memref<1x1x256xf32, #tpu.memory_space<vmem>>, vector<1x1x256xf32>,
    %15 = vector.extract_strided_slice %5 {offsets = [0, 0], sizes = [32, 256], strides = [1, 1]} : vector<33x256xf32> to vector<32x256xf32>
    %16 = arith.addf %15, %7 : vector<32x256xf32>
    %c0_15 = arith.constant 0 : index
    %c0_16 = arith.constant 0 : index
    %17 = vector.load %arg8[%c0_15, %c0_16] : memref<32x1xf32, #tpu.memory_space<vmem>>, vector<32x1xf32>
    %18 = vector.broadcast %17 : vector<32x1xf32> to vector<32x256xf32>
    %19 = arith.addf %16, %18 : vector<32x256xf32>
    %c0_17 = arith.constant 0 : index
    %c0_18 = arith.constant 0 : index
    %c0_19 = arith.constant 0 : index
    %20 = vector.load %arg4[%c0_17, %c0_18, %c0_19] : memref<1x32x1xf32, #tpu.memory_space<vmem>>, vector<1x32x1xf32>
    %21 = vector.shape_cast %20 : vector<1x32x1xf32> to vector<32x1xf32>
    %22 = vector.broadcast %21 : vector<32x1xf32> to vector<32x256xf32>
    %23 = arith.mulf %22, %19 : vector<32x256xf32>
    %c0_20 = arith.constant 0 : index
    %c0_21 = arith.constant 0 : index
    %c0_22 = arith.constant 0 : index
    %24 = vector.load %arg5[%c0_20, %c0_21, %c0_22] : memref<1x32x1xf32, #tpu.memory_space<vmem>>, vector<1x32x1xf32>
    %25 = vector.shape_cast %24 : vector<1x32x1xf32> to vector<32x1xf32>
    %26 = vector.broadcast %25 : vector<32x1xf32> to vector<32x256xf32>
    %27 = arith.addf %23, %26 : vector<32x256xf32>
    %28 = math.sin %27 : vector<32x256xf32>
    %c0_23 = arith.constant 0 : index
    %c0_24 = arith.constant 0 : index
    %29 = vector.load %arg10[%c0_23, %c0_24] : memref<3x32xf32, #tpu.memory_space<vmem>>, vector<3x32xf32>
    %cst_25 = arith.constant dense<0.000000e+00> : vector<3x256xf32>
    %30 = tpu.matmul %29, %28, %cst_25 {dimension_numbers = #tpu.dot_dimension_numbers<[1], [0], [0], [1], [0, 0, 1, 1], [], []>, precision = #tpu.contract_precision<fp32>} : vector<3x32xf32>, vector<32x256xf32>, vector<3x256xf32> -> vector<3x256xf32>
    %c0_26 = arith.constant 0 : index
    %c0_27 = arith.constant 0 : index
    %31 = vector.load %arg11[%c0_26, %c0_27] : memref<3x1xf32, #tpu.memory_space<vmem>>, vector<3x1xf32>
    %32 = vector.broadcast %31 : vector<3x1xf32> to vector<3x256xf32>
    %33 = arith.addf %30, %32 : vector<3x256xf32>
    %34 = arith.negf %33 : vector<3x256xf32>
    %35 = math.exp %34 : vector<3x256xf32>
    %cst_28 = arith.constant 1.000000e+00 : f32
    %36 = vector.broadcast %cst_28 : f32 to vector<3x256xf32>
    %37 = arith.addf %36, %35 : vector<3x256xf32>
    %38 = arith.divf %36, %37 : vector<3x256xf32>
    %c0_29 = arith.constant 0 : index
    %c0_30 = arith.constant 0 : index
    %c0_31 = arith.constant 0 : index
    %39 = vector.load %arg13[%c0_29, %c0_30, %c0_31] : memref<1x3x256xf32, #tpu.memory_space<vmem>>, vector<1x3x256xf32>
    %40 = vector.shape_cast %39 : vector<1x3x256xf32> to vector<3x256xf32>
    %41 = vector.shape_cast %38 : vector<3x256xf32> to vector<1x3x256xf32>
    tpu.vector_store %arg13[%c0_29, %c0_30, %c0_31], %41 {strides = array<i32>} : memref<1x3x256xf32, #tpu.memory_space<vmem>>, vector<1x3x256xf32>,
    return
  }
  func.func @transform_0(%arg0: i32, %arg1: i32) -> (i32, i32, i32) {
    %c0_i32 = arith.constant 0 : i32
    %c0_i32_0 = arith.constant 0 : i32
    return %arg0, %arg1, %c0_i32 : i32, i32, i32
  }
  func.func @transform_1(%arg0: i32, %arg1: i32) -> (i32, i32, i32) {
    %c0_i32 = arith.constant 0 : i32
    %c0_i32_0 = arith.constant 0 : i32
    return %arg0, %arg1, %c0_i32 : i32, i32, i32
  }
  func.func @transform_2(%arg0: i32, %arg1: i32) -> (i32, i32, i32) {
    %c0_i32 = arith.constant 0 : i32
    %c0_i32_0 = arith.constant 0 : i32
    %c0_i32_1 = arith.constant 0 : i32
    return %arg0, %c0_i32, %c0_i32_0 : i32, i32, i32
  }
  func.func @transform_3(%arg0: i32, %arg1: i32) -> (i32, i32, i32) {
    %c0_i32 = arith.constant 0 : i32
    %c0_i32_0 = arith.constant 0 : i32
    %c0_i32_1 = arith.constant 0 : i32
    return %arg0, %c0_i32, %c0_i32_0 : i32, i32, i32
  }
  func.func @transform_4(%arg0: i32, %arg1: i32) -> (i32, i32) {
    %c0_i32 = arith.constant 0 : i32
    %c0_i32_0 = arith.constant 0 : i32
    %c0_i32_1 = arith.constant 0 : i32
    return %c0_i32, %c0_i32_0 : i32, i32
  }
  func.func @transform_5(%arg0: i32, %arg1: i32) -> (i32, i32) {
    %c0_i32 = arith.constant 0 : i32
    %c0_i32_0 = arith.constant 0 : i32
    %c0_i32_1 = arith.constant 0 : i32
    return %c0_i32, %c0_i32_0 : i32, i32
  }
  func.func @transform_6(%arg0: i32, %arg1: i32) -> (i32, i32) {
    %c0_i32 = arith.constant 0 : i32
    %c0_i32_0 = arith.constant 0 : i32
    %c0_i32_1 = arith.constant 0 : i32
    return %c0_i32, %c0_i32_0 : i32, i32
  }
  func.func @transform_7(%arg0: i32, %arg1: i32) -> (i32, i32) {
    %c0_i32 = arith.constant 0 : i32
    %c0_i32_0 = arith.constant 0 : i32
    %c0_i32_1 = arith.constant 0 : i32
    return %c0_i32, %c0_i32_0 : i32, i32
  }
  func.func @transform_8(%arg0: i32, %arg1: i32) -> (i32, i32) {
    %c0_i32 = arith.constant 0 : i32
    %c0_i32_0 = arith.constant 0 : i32
    %c0_i32_1 = arith.constant 0 : i32
    return %c0_i32, %c0_i32_0 : i32, i32
  }
  func.func @transform_9(%arg0: i32, %arg1: i32) -> (i32, i32) {
    %c0_i32 = arith.constant 0 : i32
    %c0_i32_0 = arith.constant 0 : i32
    %c0_i32_1 = arith.constant 0 : i32
    return %c0_i32, %c0_i32_0 : i32, i32
  }
  func.func @transform_10(%arg0: i32, %arg1: i32) -> (i32, i32, i32) {
    %c0_i32 = arith.constant 0 : i32
    %c0_i32_0 = arith.constant 0 : i32
    return %arg0, %c0_i32, %arg1 : i32, i32, i32
  }
  func.func @transform_11(%arg0: i32, %arg1: i32) -> (i32, i32, i32) {
    %c0_i32 = arith.constant 0 : i32
    %c0_i32_0 = arith.constant 0 : i32
    return %arg0, %c0_i32, %arg1 : i32, i32, i32
  }
}

</mosaic_0001>

<bundles_post_ra>
// kernel: fc_head_forward.1
= control target key start
LH: loop header
LB: loop body
LE: loop exit
PB: predicated region body
PF: predicated region fallthrough
CT: control target
= control target key end

     0   :  { %s9894_s0 = inlined_call_operand.vmem [shape: f32[2,600,32], index: 0, kind: input, shape index: {}]   ;;  %s9895_s1 = inlined_call_operand.vmem [shape: f32[2,600,3], index: 1, kind: input, shape index: {}]   ;;  %s9896_s2 = inlined_call_operand.vmem [shape: f32[2,32,1], index: 2, kind: input, shape index: {}]   ;;  %s9897_s3 = inlined_call_operand.vmem [shape: f32[2,32,1], index: 3, kind: input, shape index: {}]   ;;  %s9898_s4 = inlined_call_operand.vmem [shape: f32[33,32], index: 4, kind: input, shape index: {}]   ;;  %s9899_s5 = inlined_call_operand.vmem [shape: f32[32,3], index: 5, kind: input, shape index: {}]   ;;  %s9900_s6 = inlined_call_operand.vmem [shape: f32[32,1], index: 6, kind: input, shape index: {}]   ;;  %s9901_s7 = inlined_call_operand.<no memory space> [shape: f32[1,1], index: 7, kind: input, shape index: {}]   ;;  %s9902_s8 = inlined_call_operand.vmem [shape: f32[3,32], index: 8, kind: input, shape index: {}]   ;;  %s9903_s9 = inlined_call_operand.vmem [shape: f32[3,1], index: 9, kind: input, shape index: {}]   ;;  %s9904_s10 = inlined_call_operand.hbm [shape: f32[2,1,600], index: 10, kind: output, shape index: {0}]   ;;  %s9905_s11 = inlined_call_operand.vmem [shape: f32[2,3,600], index: 11, kind: output, shape index: {1}]  }
   0x1   :  { %10148 = sst [smem:[#allocation116_spill]] %s9894_s0  ;;  %v17_v0 = vstv %s9901_s7 }
   0x2   :  { %10149 = sst [smem:[#allocation117_spill]] %s9895_s1  ;;  %18 = vst [vmem:[#allocation2] sm:$0x1] %v17_v0 }
   0x3   :  { %10150 = sst [smem:[#allocation118_spill]] %s9896_s2 }
   0x4   :  { %10151 = sst [smem:[#allocation119_spill]] %s9897_s3 }
   0x5   :  { %10152 = sst [smem:[#allocation120_spill]] %s9898_s4 }
   0x6   :  { %10153 = sst [smem:[#allocation121_spill]] %s9899_s5 }
   0x7   :  { %19 = vsyncpa [#allocation4], 0 }
   0x8   :  { %21 = vsyncpa [#allocation4 + $0x1], 0  ;;  %s6822_s19 = smov 0   ;;  %s6824_s20 = smov 0  }
   0x9   :  { %s6826_s21 = smov 0   ;;  %s6828_s22 = smov 0  }
   0xa   :  { %s6830_s23 = smov 0   ;;  %s6832_s24 = smov 0  }
   0xb   :  { %s6834_s25 = smov 0   ;;  %s6836_s26 = smov 0  }
   0xc LB: > { %10154 = sst [smem:[#allocation7_spill]] %s6673_s24  ;;  %s5114_s7 = sadd.s32 4294967295, %s6681_s26   ;;  %s6681_s26 = sphi %s6836_s26, %s27_s26   ;;  %s6677_s25 = sphi %s6834_s25, %s10678_s25   ;;  %s6673_s24 = sphi %s6832_s24, %s10672_s24   ;;  %s6669_s23 = sphi %s6830_s23, %s10677_s23   ;;  %s6665_s22 = sphi %s6828_s22, %s10671_s22   ;;  %s6661_s21 = sphi %s6826_s21, %s10676_s21   ;;  %s6657_s20 = sphi %s6824_s20, %s10675_s20   ;;  %s6653_s19 = sphi %s6822_s19, %s10674_s19  }
   0xd   : > { %s5115_s27 = sadd.s32 4294967294, %s6681_s26   ;;  %s36_s28 = sadd.s32 1, %s6673_s24 }
   0xe   : > { %p37_p0 = scmp.ge.s32.totalorder %s36_s28, 3  ;;  %s39_s29 = sadd.s32 1, %s6677_s25 }
   0xf   : > { %p292_p1 = scmp.ne.s32.totalorder %s6661_s21, %s6657_s20  ;;  %p293_p2 = scmp.eq.s32.totalorder %s5114_s7, 5 }
  0x10   : > { %s10680_s28 = smov (%p37_p0, %s36_s28), 0  ;;  %s10682_s29 = smov (!%p37_p0, %s39_s29), %s6677_s25 }
  0x11   : > { %10155 = sst [smem:[#allocation8_spill]] %s10680_s28  ;;  %s278_s30 = ssub.s32 %s6673_s24, %s10680_s28 }
  0x12   : > { %p6873_p3 = por %p293_p2, %p292_p1  ;;  %p41_p4 = scmp.ge.s32.totalorder %s10682_s29, 2 }
  0x13   : > { %p298_p5 = scmp.ne.s32.totalorder %s6657_s20, %s6653_s19  ;;  %p299_p6 = scmp.eq.s32.totalorder %s5115_s27, 5 }
  0x14   : > { %p5118_p7 = scmp.ge.s32.totalorder %s6681_s26, 1  ;;  %s10684_s29 = smov (%p41_p4, %s10682_s29), 0 }
  0x15   : > { %10157 = sst [smem:[#allocation9_spill]] %s10684_s29  ;;  %p6882_p8 = por %p299_p6, %p298_p5 }
  0x16   : > { %p421_p9 = scmp.lt.s32.totalorder %s6681_s26, 7  ;;  %s277_s14 = ssub.s32 %s6677_s25, %s10684_s29 }
  0x17   : > { %s282_s15 = sadd.s32 1, %s6661_s21  ;;  %s279_s16 = sor.u32 %s278_s30, %s277_s14 }
  0x18   : > { %p422_p10 = pnand %p5118_p7, %p421_p9  ;;  %p280_p11 = scmp.eq.s32.totalorder %s279_s16, 0 }
  0x1a   : > { %s6891_s17 = scalar_select %p280_p11, %s6661_s21, %s282_s15  }
  0x1b   : > { %425 = sbr.rel (%p422_p10) target bundleno = 1360 (0x550), region = 60 }
  0x22   : > { %s5121_s18 = sshll.u32 %s6665_s22, 5  ;;  %p501_p12 = scmp.lt.s32.totalorder %s6669_s23, 1  ;;  %vm621_vm0 = vcmask 261120   ;;  %vm1788_vm1 = vcmask 23552  }
  0x23   : > { %s10159_s4 = sld [smem:[#allocation120_spill]]  ;;  %p503_p13 = scmp.lt.s32.totalorder %s5121_s18, 74 }
  0x24   : > { %s6910_s29 = scalar_select %p501_p12, %s6669_s23, 1 }
  0x25   : > { %s10686_s18 = smov (!%p503_p13, %s5121_s18), 74  ;;  %s10167_s0 = sld [smem:[#allocation116_spill]] }
  0x26   : > { %s6237_s7 = smul.u32 75, %s6910_s29  ;;  %s10199_s1 = sld [smem:[#allocation117_spill]] }
  0x27   : > { %s10335_s5 = sld [smem:[#allocation121_spill]]  ;;  %s10545_s2 = sld [smem:[#allocation118_spill]] }
  0x28   : > { %s6937_s27 = sadd.s32 %s6237_s7, %s10686_s18  ;;  %s10561_s3 = sld [smem:[#allocation119_spill]] }
  0x29   : > { %v616_v1 = vld [vmem:[%s10159_s4] sm:$0xff]  ;;  %v617_v2 = vld [vmem:[%s10159_s4 + $0x8] sm:$0xff]  ;;  %v618_v5 = vld [vmem:[%s10159_s4 + $0x10] sm:$0xff]  ;;  %s5122_s30 = sshll.u32 %s6937_s27, 3 }
  0x2a   : > { %v623_v3 = vsel %vm621_vm0, %v616_v1, 0  ;;  %v626_v4 = vsel %vm621_vm0, %v617_v2, 0  ;;  %v619_v6 = vld [vmem:[%s10159_s4 + $0x18] sm:$0xff]  ;;  %v629_v9 = vsel %vm621_vm0, %v618_v5, 0  ;;  %v620_v12 = vld [vmem:[%s10159_s4 + $0x20] sm:$0x1] }
  0x2b   : > { %v6912_v7 = vand.u32 4294901760, %v623_v3  ;;  %v6914_v8 = vand.u32 4294901760, %v626_v4  ;;  %v632_v10 = vsel %vm621_vm0, %v619_v6, 0  ;;  %v6918_v11 = vand.u32 4294901760, %v629_v9  ;;  %s6945_s16 = scalar_lea.vmem %s10167_s0, %s5122_s30 }
  0x2c   : > { %v6925_v13 = vand.u32 4294901760, %v632_v10  ;;  %v635_v17 = vsel %vm621_vm0, %v620_v12, 0  ;;  %v568_v19 = vld [vmem:[%s6945_s16 + $0x80] sm:$0xff]  ;;  %v569_v20 = vld [vmem:[%s6945_s16 + $0x88] sm:$0xff]  ;;  %v570_v30 = vld [vmem:[%s6945_s16 + $0x90] sm:$0xff]  ;;  %s7106_s28 = scalar_lea.vmem %s10199_s1, %s5122_s30 }
  0x2d   : > { %10160 = vst [vmem:[#allocation10_spill] sm:$0xff] %v6912_v7  ;;  %10161 = vst [vmem:[#allocation11_spill] sm:$0xff] %v6914_v8  ;;  %5445 = vmatprep.mubr.f32.mxu0 %v6912_v7  ;;  %v6928_v14 = vsub.f32 %v623_v3, %v6912_v7  ;;  %v6931_v15 = vsub.f32 %v626_v4, %v6914_v8  ;;  %v6934_v16 = vsub.f32 %v629_v9, %v6918_v11  ;;  %v552_v21 = vld [vmem:[%s6945_s16] sm:$0xff]  ;;  %v553_v28 = vld [vmem:[%s6945_s16 + $0x8] sm:$0xff] }
  0x2e   : > { %10162 = vst [vmem:[#allocation12_spill] sm:$0xff] %v6918_v11  ;;  %10163 = vst [vmem:[#allocation13_spill] sm:$0xff] %v6925_v13  ;;  %v6947_v18 = vand.u32 4294901760, %v635_v17  ;;  %v6962_v25 = vsub.f32 %v632_v10, %v6925_v13  ;;  %v686_v26 = vsel %vm621_vm0, %v568_v19, 0  ;;  %v689_v27 = vsel %vm621_vm0, %v569_v20, 0  ;;  %v571_v31 = vld [vmem:[%s6945_s16 + $0x98] sm:$0xff] }
  0x2f   : > { %10164 = vst [vmem:[#allocation14_spill] sm:$0xff] %v6928_v14  ;;  %10165 = vst [vmem:[#allocation15_spill] sm:$0xff] %v6931_v15  ;;  %v6953_v22 = vand.u32 4294901760, %v6928_v14  ;;  %v6956_v23 = vand.u32 4294901760, %v6931_v15  ;;  %v6959_v24 = vand.u32 4294901760, %v6934_v16  ;;  %v638_v29 = vsel %vm621_vm0, %v552_v21, 0 }
  0x30   : > { %10166 = vst [vmem:[#allocation16_spill] sm:$0xff] %v6934_v16  ;;  %10168 = vst [vmem:[#allocation17_spill] sm:$0xff] %v6947_v18  ;;  %v782_v32 = vand.u32 4294901760, %v686_v26  ;;  %v785_v33 = vand.u32 4294901760, %v689_v27  ;;  %v641_v34 = vsel %vm621_vm0, %v553_v28, 0  ;;  %v734_v35 = vand.u32 4294901760, %v638_v29 }
  0x31   : > { %10169 = vst [vmem:[#allocation18_spill] sm:$0xff] %v6953_v22  ;;  %10170 = vst [vmem:[#allocation19_spill] sm:$0xff] %v6956_v23  ;;  %v554_v36 = vld [vmem:[%s6945_s16 + $0x10] sm:$0xff]  ;;  %v555_v37 = vld [vmem:[%s6945_s16 + $0x18] sm:$0xff]  ;;  %v737_v38 = vand.u32 4294901760, %v641_v34  ;;  %v692_v39 = vsel %vm621_vm0, %v570_v30, 0  ;;  %v6984_v46 = vsub.f32 %v635_v17, %v6947_v18 }
  0x32   : > { %10171 = vst [vmem:[#allocation20_spill] sm:$0xff] %v6959_v24  ;;  %10172 = vst [vmem:[#allocation21_spill] sm:$0xff] %v6962_v25  ;;  %v695_v40 = vsel %vm621_vm0, %v571_v31, 0  ;;  %v644_v41 = vsel %vm621_vm0, %v554_v36, 0  ;;  %v572_v42 = vld [vmem:[%s6945_s16 + $0xa0] sm:$0xff]  ;;  %v573_v43 = vld [vmem:[%s6945_s16 + $0xa8] sm:$0xff]  ;;  %v6978_v44 = vpack.c.bf16 %v785_v33, %v782_v32  ;;  %v7010_v3 = vsub.f32 %v686_v26, %v782_v32 }
  0x33   : > { %v6981_v45 = vand.u32 4294901760, %v6962_v25  ;;  %10175 = vst [vmem:[#allocation24_spill] sm:$0xff] %v6984_v46  ;;  %v6986_v47 = vpack.c.bf16 %v737_v38, %v734_v35  ;;  %v788_v48 = vand.u32 4294901760, %v692_v39  ;;  %v791_v49 = vand.u32 4294901760, %v695_v40  ;;  %v556_v50 = vld [vmem:[%s6945_s16 + $0x20] sm:$0xff]  ;;  %v557_v56 = vld [vmem:[%s6945_s16 + $0x28] sm:$0xff] }
  0x34   : > { %10173 = vst [vmem:[#allocation22_spill] sm:$0xff] %v6978_v44  ;;  %5696 = vmatprep.subr.bf16.mxu1 %v6978_v44  ;;  %5856 = vmatprep.subr.bf16.mxu0 %v6978_v44  ;;  %v647_v52 = vsel %vm621_vm0, %v555_v37, 0  ;;  %v740_v53 = vand.u32 4294901760, %v644_v41  ;;  %v698_v54 = vsel %vm621_vm0, %v572_v42, 0  ;;  %v701_v55 = vsel %vm621_vm0, %v573_v43, 0  ;;  %v574_v0 = vld [vmem:[%s6945_s16 + $0xb0] sm:$0xff] }
  0x35   : > { %10174 = vst [vmem:[#allocation23_spill] sm:$0xff] %v6981_v45  ;;  %10176 = vst [vmem:[#allocation25_spill] sm:$0xff] %v6986_v47  ;;  %5698 = vmatpush3.bf16.xpose.msra.mxu1 %v6986_v47  ;;  %5858 = vmatpush3.bf16.xpose.msra.mxu0 %v6986_v47  ;;  %v6999_v57 = vpack.c.bf16 %v791_v49, %v788_v48  ;;  %v743_v58 = vand.u32 4294901760, %v647_v52  ;;  %v794_v61 = vand.u32 4294901760, %v698_v54  ;;  %v797_v62 = vand.u32 4294901760, %v701_v55  ;;  %v575_v1 = vld [vmem:[%s6945_s16 + $0xb8] sm:$0xff] }
  0x36   : > { %v650_v63 = vsel %vm621_vm0, %v556_v50, 0  ;;  %10178 = vst [vmem:[#allocation27_spill] sm:$0xff] %v7010_v3  ;;  %v7012_v4 = vsub.f32 %v689_v27, %v785_v33  ;;  %v653_v5 = vsel %vm621_vm0, %v557_v56, 0  ;;  %v558_v6 = vld [vmem:[%s6945_s16 + $0x30] sm:$0xff]  ;;  %v7019_v9 = vand.u32 4294901760, %v6984_v46  ;;  %v559_v20 = vld [vmem:[%s6945_s16 + $0x38] sm:$0xff] }
  0x37   : > { %10177 = vst [vmem:[#allocation26_spill] sm:$0xff] %v6999_v57  ;;  %5700 = vmatprep.subr.bf16.mxu1 %v6999_v57  ;;  %5860 = vmatprep.subr.bf16.mxu0 %v6999_v57  ;;  %v7021_v10 = vsub.f32 %v638_v29, %v734_v35  ;;  %v7023_v12 = vsub.f32 %v641_v34, %v737_v38  ;;  %v576_v21 = vld [vmem:[%s6945_s16 + $0xc0] sm:$0xff]  ;;  %v577_v26 = vld [vmem:[%s6945_s16 + $0xc8] sm:$0xff]  ;;  %v746_v27 = vand.u32 4294901760, %v650_v63  ;;  %v749_v28 = vand.u32 4294901760, %v653_v5  ;;  %v583_v44 = vld [vmem:[%s6945_s16 + $0xf8] sm:$0xff] }
  0x38   : > { %10179 = vst [vmem:[#allocation28_spill] sm:$0xff] %v7012_v4  ;;  %10180 = vst [vmem:[#allocation29_spill] sm:$0xff] %v7019_v9  ;;  %v7025_v17 = vsub.f32 %v692_v39, %v788_v48  ;;  %v7027_v19 = vpack.c.bf16 %v743_v58, %v740_v53  ;;  %v704_v30 = vsel %vm621_vm0, %v574_v0, 0  ;;  %v707_v31 = vsel %vm621_vm0, %v575_v1, 0  ;;  %v560_v35 = vld [vmem:[%s6945_s16 + $0x40] sm:$0xff]  ;;  %v561_v42 = vld [vmem:[%s6945_s16 + $0x48] sm:$0xff] }
  0x39   : > { %10181 = vst [vmem:[#allocation30_spill] sm:$0xff] %v7021_v10  ;;  %10182 = vst [vmem:[#allocation31_spill] sm:$0xff] %v7023_v12  ;;  %v7034_v32 = vsub.f32 %v695_v40, %v791_v49  ;;  %v7036_v29 = vpack.c.bf16 %v797_v62, %v794_v61  ;;  %v800_v33 = vand.u32 4294901760, %v704_v30  ;;  %v656_v34 = vsel %vm621_vm0, %v558_v6, 0  ;;  %v581_v60 = vld [vmem:[%s6945_s16 + $0xe8] sm:$0xff] }
  0x3a   : > { %10183 = vst [vmem:[#allocation32_spill] sm:$0xff] %v7025_v17  ;;  %10184 = vst [vmem:[#allocation33_spill] sm:$0xff] %v7027_v19  ;;  %v803_v36 = vand.u32 4294901760, %v707_v31  ;;  %v659_v37 = vsel %vm621_vm0, %v559_v20, 0  ;;  %v710_v38 = vsel %vm621_vm0, %v576_v21, 0  ;;  %v713_v39 = vsel %vm621_vm0, %v577_v26, 0 }
  0x3b   : > { %10185 = vst [vmem:[#allocation34_spill] sm:$0xff] %v7034_v32  ;;  %10186 = vst [vmem:[#allocation35_spill] sm:$0xff] %v7036_v29  ;;  %v7044_v43 = vsub.f32 %v644_v41, %v740_v53  ;;  %v7046_v40 = vsub.f32 %v647_v52, %v743_v58  ;;  %v7048_v48 = vsub.f32 %v698_v54, %v794_v61  ;;  %v752_v0 = vand.u32 4294901760, %v656_v34  ;;  %v578_v53 = vld [vmem:[%s6945_s16 + $0xd0] sm:$0xff]  ;;  %v579_v52 = vld [vmem:[%s6945_s16 + $0xd8] sm:$0xff] }
  0x3c   : > { %v7050_v49 = vsub.f32 %v701_v55, %v797_v62  ;;  %v7054_v50 = vpack.c.bf16 %v749_v28, %v746_v27  ;;  %v7056_v56 = vsub.f32 %v650_v63, %v746_v27  ;;  %v662_v41 = vsel %vm621_vm0, %v560_v35, 0  ;;  %v562_v62 = vld [vmem:[%s6945_s16 + $0x50] sm:$0xff]  ;;  %v563_v21 = vld [vmem:[%s6945_s16 + $0x58] sm:$0xff]  ;;  %v601_v25 = vld [vmem:[%s7106_s28 + $0x88] sm:$0xff] }
  0x3d   : > { %10187 = vst [vmem:[#allocation36_spill] sm:$0xff] %v7044_v43  ;;  %10188 = vst [vmem:[#allocation37_spill] sm:$0xff] %v7046_v40  ;;  %5702 = vmatpush3.bf16.xpose.msra.mxu1 %v7027_v19  ;;  %5862 = vmatpush3.bf16.xpose.msra.mxu0 %v7027_v19  ;;  %v755_v54 = vand.u32 4294901760, %v659_v37  ;;  %v806_v55 = vand.u32 4294901760, %v710_v38  ;;  %v809_v58 = vand.u32 4294901760, %v713_v39  ;;  %v665_v61 = vsel %vm621_vm0, %v561_v42, 0 }
  0x3e   : > { %10189 = vst [vmem:[#allocation38_spill] sm:$0xff] %v7048_v48  ;;  %10190 = vst [vmem:[#allocation39_spill] sm:$0xff] %v7050_v49  ;;  %5704 = vmatprep.subr.bf16.mxu1 %v7036_v29  ;;  %5864 = vmatprep.subr.bf16.mxu0 %v7036_v29  ;;  %v7065_v63 = vsub.f32 %v653_v5, %v749_v28  ;;  %v7067_v1 = vpack.c.bf16 %v803_v36, %v800_v33  ;;  %v758_v27 = vand.u32 4294901760, %v662_v41  ;;  %v580_v42 = vld [vmem:[%s6945_s16 + $0xe0] sm:$0xff] }
  0x3f   : > { %10191 = vst [vmem:[#allocation40_spill] sm:$0xff] %v7054_v50  ;;  %v7069_v6 = vsub.f32 %v704_v30, %v800_v33  ;;  %v7071_v20 = vsub.f32 %v707_v31, %v803_v36  ;;  %v7074_v26 = vsub.f32 %v656_v34, %v752_v0  ;;  %v716_v35 = vsel %vm621_vm0, %v578_v53, 0  ;;  %v564_v31 = vld [vmem:[%s6945_s16 + $0x60] sm:$0xff] }
  0x40   : > { %10192 = vst [vmem:[#allocation41_spill] sm:$0xff] %v7067_v1  ;;  %v719_v2 = vsel %vm621_vm0, %v579_v52, 0  ;;  %v761_v5 = vand.u32 4294901760, %v665_v61  ;;  %v812_v28 = vand.u32 4294901760, %v716_v35  ;;  %v668_v30 = vsel %vm621_vm0, %v562_v62, 0  ;;  %v565_v52 = vld [vmem:[%s6945_s16 + $0x68] sm:$0xff] }
  0x41   : > { %10193 = vst [vmem:[#allocation42_spill] sm:$0xff] %v7074_v26  ;;  %v815_v59 = vand.u32 4294901760, %v719_v2  ;;  %v7082_v33 = vpack.c.bf16 %v755_v54, %v752_v0  ;;  %v7084_v34 = vsub.f32 %v659_v37, %v755_v54  ;;  %v7086_v36 = vpack.c.bf16 %v809_v58, %v806_v55  ;;  %v582_v54 = vld [vmem:[%s6945_s16 + $0xf0] sm:$0xff] }
  0x42   : > { %v671_v53 = vsel %vm621_vm0, %v563_v21, 0  ;;  %v7090_v51 = vsub.f32 %v710_v38, %v806_v55  ;;  %v7092_v29 = vsub.f32 %v713_v39, %v809_v58  ;;  %v722_v19 = vsel %vm621_vm0, %v580_v42, 0  ;;  %v566_v55 = vld [vmem:[%s6945_s16 + $0x70] sm:$0xff] }
  0x43   : > { %10194 = vst [vmem:[#allocation43_spill] sm:$0xff] %v7082_v33  ;;  %10195 = vst [vmem:[#allocation44_spill] sm:$0xff] %v7084_v34  ;;  %v725_v62 = vsel %vm621_vm0, %v581_v60, 0  ;;  %v7096_v57 = vsub.f32 %v662_v41, %v758_v27  ;;  %v764_v0 = vand.u32 4294901760, %v668_v30  ;;  %v767_v47 = vand.u32 4294901760, %v671_v53 }
  0x44   : > { %10196 = vst [vmem:[#allocation45_spill] sm:$0xff] %v7086_v36  ;;  %10197 = vst [vmem:[#allocation46_spill] sm:$0xff] %v7090_v51  ;;  %v674_v37 = vsel %vm621_vm0, %v564_v31, 0  ;;  %v7110_v38 = vpack.c.bf16 %v761_v5, %v758_v27  ;;  %v7112_v60 = vsub.f32 %v665_v61, %v761_v5  ;;  %v7114_v39 = vpack.c.bf16 %v815_v59, %v812_v28 }
  0x45   : > { %10198 = vst [vmem:[#allocation47_spill] sm:$0xff] %v7092_v29  ;;  %5706 = vmatpush3.bf16.xpose.msra.mxu1 %v7054_v50  ;;  %5866 = vmatpush3.bf16.xpose.msra.mxu0 %v7054_v50  ;;  %v677_v41 = vsel %vm621_vm0, %v565_v52, 0  ;;  %v7120_v58 = vsub.f32 %v716_v35, %v812_v28  ;;  %v7122_v21 = vsub.f32 %v719_v2, %v815_v59  ;;  %v818_v42 = vand.u32 4294901760, %v722_v19  ;;  %v600_v28 = vld [vmem:[%s7106_s28 + $0x80] sm:$0xff] }
  0x46   : > { %10200 = vst [vmem:[#allocation48_spill] sm:$0xff] %v7110_v38  ;;  %10201 = vst [vmem:[#allocation49_spill] sm:$0xff] %v7114_v39  ;;  %5708 = vmatprep.subr.bf16.mxu1 %v7067_v1  ;;  %5868 = vmatprep.subr.bf16.mxu0 %v7067_v1  ;;  %v821_v27 = vand.u32 4294901760, %v725_v62  ;;  %v770_v61 = vand.u32 4294901760, %v674_v37  ;;  %v773_v5 = vand.u32 4294901760, %v677_v41  ;;  %v728_v31 = vsel %vm621_vm0, %v582_v54, 0 }
  0x47   : > { %10202 = vst [vmem:[#allocation50_spill] sm:$0xff] %v7122_v21  ;;  %v731_v52 = vsel %vm621_vm0, %v583_v44, 0  ;;  %v7126_v50 = vpack.c.bf16 %v767_v47, %v764_v0  ;;  %v7128_v46 = vsub.f32 %v668_v30, %v764_v0  ;;  %v7130_v9 = vsub.f32 %v671_v53, %v767_v47  ;;  %v567_v1 = vld [vmem:[%s6945_s16 + $0x78] sm:$0xff]  ;;  %v584_v44 = vld [vmem:[%s7106_s28] sm:$0xff] }
  0x48   : > { %v680_v35 = vsel %vm621_vm0, %v566_v55, 0  ;;  %v824_v59 = vand.u32 4294901760, %v728_v31  ;;  %v827_v2 = vand.u32 4294901760, %v731_v52  ;;  %v10206_v45 = vsub.f32 %v6928_v14, %v6953_v22  ;;  %v585_v14 = vld [vmem:[%s7106_s28 + $0x8] sm:$0xff] }
  0x49   : > { %10203 = vst [vmem:[#allocation51_spill] sm:$0xff] %v7126_v50  ;;  %10204 = vst [vmem:[#allocation52_spill] sm:$0xff] %v7128_v46  ;;  %v7142_v30 = vpack.c.bf16 %v821_v27, %v818_v42  ;;  %v7144_v47 = vsub.f32 %v722_v19, %v818_v42  ;;  %v7146_v53 = vsub.f32 %v725_v62, %v821_v27  ;;  %v7157_v22 = vsel %vm1788_vm1, %v600_v28, 0 }
  0x4a   : > { %10205 = vst [vmem:[#allocation53_spill] sm:$0xff] %v7130_v9  ;;  %v7138_v54 = vand.u32 4294901760, %v10206_v45  ;;  %v7148_v0 = vsub.f32 %v674_v37, %v770_v61  ;;  %v7150_v55 = vpack.c.bf16 %v773_v5, %v770_v61  ;;  %v7152_v24 = vsub.f32 %v677_v41, %v773_v5  ;;  %10213 = vst [vmem:[#allocation60_spill] sm:$0xff] %v7157_v22 }
  0x4b   : > { %10207 = vst [vmem:[#allocation54_spill] sm:$0xff] %v7142_v30  ;;  %10208 = vst [vmem:[#allocation55_spill] sm:$0xff] %v7144_v47  ;;  %v683_v19 = vsel %vm621_vm0, %v567_v1, 0  ;;  %v776_v42 = vand.u32 4294901760, %v680_v35  ;;  %v7163_v62 = vsel %vm1788_vm1, %v601_v25, 0  ;;  %v9933_v37 = vand.u32 4294901760, %v7157_v22 }
  0x4c   : > { %10209 = vst [vmem:[#allocation56_spill] sm:$0xff] %v7146_v53  ;;  %10210 = vst [vmem:[#allocation57_spill] sm:$0xff] %v7148_v0  ;;  %5235 = vmatprep.mubr.f32.mxu1 %v7138_v54  ;;  %v7168_v41 = vpack.c.bf16 %v827_v2, %v824_v59  ;;  %v10216_v27 = vand.u32 4294901760, %v7010_v3  ;;  %v7184_v45 = vsel %vm1788_vm1, %v584_v44, 0  ;;  %v779_v5 = vand.u32 4294901760, %v683_v19 }
  0x4d   : > { %10211 = vst [vmem:[#allocation58_spill] sm:$0xff] %v7150_v55  ;;  %10212 = vst [vmem:[#allocation59_spill] sm:$0xff] %v7152_v24  ;;  %5710 = vmatpush3.bf16.xpose.msra.mxu1 %v7082_v33  ;;  %5870 = vmatpush3.bf16.xpose.msra.mxu0 %v7082_v33  ;;  %v7180_v25 = vsub.f32 %v7157_v22, %v9933_v37  ;;  %v10220_v1 = vand.u32 4294901760, %v7012_v4  ;;  %v9946_v37 = vand.u32 4294901760, %v7184_v45  ;;  %v10223_v44 = vand.u32 4294901760, %v7021_v10 }
  0x4e   : > { %10214 = vst [vmem:[#allocation61_spill] sm:$0xff] %v7163_v62  ;;  %10215 = vst [vmem:[#allocation62_spill] sm:$0xff] %v7168_v41  ;;  %v1001_v61 = vsub.f32 %v7010_v3, %v10216_v27  ;;  %5712 = vmatprep.subr.bf16.mxu1 %v7086_v36  ;;  %5872 = vmatprep.subr.bf16.mxu0 %v7086_v36  ;;  %v7187_v27 = vsel %vm1788_vm1, %v585_v14, 0  ;;  %v10221_v36 = vand.u32 4294901760, %v7163_v62  ;;  %v10224_v22 = vand.u32 4294901760, %v7023_v12 }
  0x4f   : > { %10217 = vst [vmem:[#allocation63_spill] sm:$0xff] %v7180_v25  ;;  %10218 = vst [vmem:[#allocation64_spill] sm:$0xff] %v7184_v45  ;;  %v1008_v33 = vsub.f32 %v7012_v4, %v10220_v1  ;;  %v889_v14 = vsub.f32 %v7021_v10, %v10223_v44  ;;  %v9947_v1 = vand.u32 4294901760, %v7187_v27  ;;  %v602_v4 = vld [vmem:[%s7106_s28 + $0x90] sm:$0xff]  ;;  %v7207_v24 = vsub.f32 %v728_v31, %v824_v59  ;;  %v603_v31 = vld [vmem:[%s7106_s28 + $0x98] sm:$0xff] }
  0x50   : > { %10219 = vst [vmem:[#allocation65_spill] sm:$0xff] %v7187_v27  ;;  %v7195_v3 = vsub.f32 %v7163_v62, %v10221_v36  ;;  %v896_v16 = vsub.f32 %v7023_v12, %v10224_v22  ;;  %v7213_v62 = vsub.f32 %v7184_v45, %v9946_v37  ;;  %v7216_v0 = vsub.f32 %v731_v52, %v827_v2 }
  0x51   : > { %10225 = vst [vmem:[#allocation67_spill] sm:$0xff] %v7207_v24  ;;  %v7218_v44 = vsub.f32 %v680_v35, %v776_v42  ;;  %v1002_v10 = vand.u32 4294901760, %v1001_v61  ;;  %v7223_v22 = vsub.f32 %v7187_v27, %v9947_v1  ;;  %v1009_v59 = vand.u32 4294901760, %v1008_v33  ;;  %v587_v1 = vld [vmem:[%s7106_s28 + $0x18] sm:$0xff] }
  0x52   : > { %10222 = vst [vmem:[#allocation66_spill] sm:$0xff] %v7195_v3  ;;  %10226 = vst [vmem:[#allocation68_spill] sm:$0xff] %v7213_v62  ;;  %v10230_v36 = vand.u32 4294901760, %v7180_v25  ;;  %v10231_v37 = vand.u32 4294901760, %v7195_v3  ;;  %v7233_v52 = vsel %vm1788_vm1, %v602_v4, 0  ;;  %v7235_v35 = vpack.c.bf16 %v779_v5, %v776_v42 }
  0x53   : > { %10227 = vst [vmem:[#allocation69_spill] sm:$0xff] %v7216_v0  ;;  %10228 = vst [vmem:[#allocation70_spill] sm:$0xff] %v7218_v44  ;;  %v890_v2 = vand.u32 4294901760, %v889_v14  ;;  %v897_v61 = vand.u32 4294901760, %v896_v16  ;;  %v7240_v33 = vsub.f32 %v683_v19, %v779_v5  ;;  %v7247_v42 = vsel %vm1788_vm1, %v603_v31, 0 }
  0x54   : > { %10229 = vst [vmem:[#allocation71_spill] sm:$0xff] %v7223_v22  ;;  %v2154_v12 = vsub.f32 %v7180_v25, %v10230_v36  ;;  %v2161_v28 = vsub.f32 %v7195_v3, %v10231_v37  ;;  %10232 = vst [vmem:[#allocation72_spill] sm:$0xff] %v7233_v52  ;;  %v10235_v37 = vand.u32 4294901760, %v7025_v17  ;;  %v586_v36 = vld [vmem:[%s7106_s28 + $0x10] sm:$0xff]  ;;  %v10237_v16 = vand.u32 4294901760, %v7034_v32 }
  0x55   : > { %10233 = vst [vmem:[#allocation73_spill] sm:$0xff] %v7235_v35  ;;  %5714 = vmatpush3.bf16.xpose.msra.mxu1 %v7110_v38  ;;  %5874 = vmatpush3.bf16.xpose.msra.mxu0 %v7110_v38  ;;  %10234 = vst [vmem:[#allocation74_spill] sm:$0xff] %v7240_v33  ;;  %v7257_v38 = vpack.c.bf16 %v1009_v59, %v1002_v10  ;;  %v7260_v45 = vpack.c.bf16 %v897_v61, %v890_v2  ;;  %v10238_v19 = vand.u32 4294901760, %v7233_v52 }
  0x56   : > { %v1015_v4 = vsub.f32 %v7025_v17, %v10235_v37  ;;  %10236 = vst [vmem:[#allocation75_spill] sm:$0xff] %v7247_v42  ;;  %5716 = vmatprep.subr.bf16.mxu1 %v7114_v39  ;;  %5876 = vmatprep.subr.bf16.mxu0 %v7114_v39  ;;  %v2155_v37 = vand.u32 4294901760, %v2154_v12  ;;  %v2162_v31 = vand.u32 4294901760, %v2161_v28  ;;  %v1022_v14 = vsub.f32 %v7034_v32, %v10237_v16  ;;  %v604_v16 = vld [vmem:[%s7106_s28 + $0xa0] sm:$0xff] }
  0x57   : > { %v7268_v39 = vsub.f32 %v7233_v52, %v10238_v19  ;;  %v10240_v5 = vand.u32 4294901760, %v7247_v42  ;;  %v10242_v12 = vand.u32 4294901760, %v7213_v62  ;;  %v7279_v2 = vsel %vm1788_vm1, %v586_v36, 0 }
  0x58   : > { %v1016_v59 = vand.u32 4294901760, %v1015_v4  ;;  %10243 = vst [vmem:[#allocation78_spill] sm:$0xff] %v7279_v2  ;;  %v7282_v61 = vsel %vm1788_vm1, %v587_v1, 0  ;;  %v10245_v19 = vand.u32 4294901760, %v7223_v22  ;;  %v605_v4 = vld [vmem:[%s7106_s28 + $0xa8] sm:$0xff]  ;;  %v7294_v32 = vpack.c.bf16 %v2162_v31, %v2155_v37 }
  0x59   : > { %10239 = vst [vmem:[#allocation76_spill] sm:$0xff] %v7268_v39  ;;  %v7273_v10 = vsub.f32 %v7247_v42, %v10240_v5  ;;  %v2042_v28 = vsub.f32 %v7213_v62, %v10242_v12  ;;  %10244 = vst [vmem:[#allocation79_spill] sm:$0xff] %v7282_v61  ;;  %v9962_v52 = vand.u32 4294901760, %v7268_v39  ;;  %v10246_v42 = vand.u32 4294901760, %v7044_v43 }
  0x5a   : > { %v2049_v27 = vsub.f32 %v7223_v22, %v10245_v19  ;;  %v10247_v36 = vand.u32 4294901760, %v7046_v40  ;;  %v9964_v17 = vand.u32 4294901760, %v7279_v2  ;;  %v9968_v62 = vand.u32 4294901760, %v7282_v61 }
  0x5b   : > { %10241 = vst [vmem:[#allocation77_spill] sm:$0xff] %v7273_v10  ;;  %v903_v12 = vsub.f32 %v7044_v43, %v10246_v42  ;;  %v1023_v19 = vand.u32 4294901760, %v1022_v14  ;;  %v2168_v5 = vsub.f32 %v7268_v39, %v9962_v52  ;;  %v7306_v42 = vsel %vm1788_vm1, %v604_v16, 0 }
  0x5c   : > { %v910_v1 = vsub.f32 %v7046_v40, %v10247_v36  ;;  %10248 = vst [vmem:[#allocation80_spill] sm:$0xff] %v7306_v42  ;;  %v10249_v37 = vand.u32 4294901760, %v7273_v10  ;;  %v7316_v14 = vsub.f32 %v7279_v2, %v9964_v17  ;;  %v7321_v36 = vsub.f32 %v7282_v61, %v9968_v62  ;;  %v588_v61 = vld [vmem:[%s7106_s28 + $0x20] sm:$0xff] }
  0x5d   : > { %5718 = vmatpush3.bf16.xpose.msra.mxu1 %v7126_v50  ;;  %5878 = vmatpush3.bf16.xpose.msra.mxu0 %v7126_v50  ;;  %v7324_v16 = vsel %vm1788_vm1, %v605_v4, 0  ;;  %v2043_v52 = vand.u32 4294901760, %v2042_v28  ;;  %v2050_v22 = vand.u32 4294901760, %v2049_v27  ;;  %v9974_v40 = vand.u32 4294901760, %v7306_v42 }
  0x5e   : > { %v2175_v31 = vsub.f32 %v7273_v10, %v10249_v37  ;;  %10250 = vst [vmem:[#allocation81_spill] sm:$0xff] %v7324_v16  ;;  %5720 = vmatprep.subr.bf16.mxu1 %v7142_v30  ;;  %5880 = vmatprep.subr.bf16.mxu0 %v7142_v30  ;;  %v904_v37 = vand.u32 4294901760, %v903_v12  ;;  %v911_v17 = vand.u32 4294901760, %v910_v1  ;;  %v9976_v62 = vand.u32 4294901760, %v7324_v16 }
  0x5f   : > { %v7333_v4 = vpack.c.bf16 %v1023_v19, %v1016_v59  ;;  %v2169_v43 = vand.u32 4294901760, %v2168_v5  ;;  %v10251_v12 = vand.u32 4294901760, %v7048_v48  ;;  %v7343_v1 = vsub.f32 %v7306_v42, %v9974_v40  ;;  %v589_v5 = vld [vmem:[%s7106_s28 + $0x28] sm:$0xff] }
  0x60   : > { %v2176_v27 = vand.u32 4294901760, %v2175_v31  ;;  %v7348_v59 = vsub.f32 %v7324_v16, %v9976_v62  ;;  %v7351_v19 = vpack.c.bf16 %v2050_v22, %v2043_v52  ;;  %v10252_v31 = vand.u32 4294901760, %v7050_v49 }
  0x61   : > { %v1029_v50 = vsub.f32 %v7048_v48, %v10251_v12  ;;  %v7358_v10 = vsel %vm1788_vm1, %v588_v61, 0  ;;  %v7360_v2 = vpack.c.bf16 %v911_v17, %v904_v37  ;;  %v10254_v40 = vand.u32 4294901760, %v7316_v14  ;;  %v606_v37 = vld [vmem:[%s7106_s28 + $0xb0] sm:$0xff] }
  0x62   : > { %v1036_v28 = vsub.f32 %v7050_v49, %v10252_v31  ;;  %10253 = vst [vmem:[#allocation82_spill] sm:$0xff] %v7358_v10  ;;  %v10255_v52 = vand.u32 4294901760, %v7321_v36  ;;  %v10256_v31 = vand.u32 4294901760, %v7056_v56  ;;  %v7374_v17 = vsel %vm1788_vm1, %v589_v5, 0 }
  0x63   : > { %v2056_v30 = vsub.f32 %v7316_v14, %v10254_v40  ;;  %10257 = vst [vmem:[#allocation83_spill] sm:$0xff] %v7374_v17  ;;  %v7380_v40 = vpack.c.bf16 %v2176_v27, %v2169_v43  ;;  %v1030_v22 = vand.u32 4294901760, %v1029_v50  ;;  %v10259_v61 = vand.u32 4294901760, %v7343_v1 }
  0x64   : > { %v2063_v16 = vsub.f32 %v7321_v36, %v10255_v52  ;;  %v917_v12 = vsub.f32 %v7056_v56, %v10256_v31  ;;  %v10258_v52 = vand.u32 4294901760, %v7065_v63  ;;  %v9992_v31 = vand.u32 4294901760, %v7374_v17 }
  0x65   : > { %5722 = vmatpush3.bf16.xpose.msra.mxu1 %v7150_v55  ;;  %5882 = vmatpush3.bf16.xpose.msra.mxu0 %v7150_v55  ;;  %v1037_v5 = vand.u32 4294901760, %v1036_v28  ;;  %v2182_v42 = vsub.f32 %v7343_v1, %v10259_v61  ;;  %v10260_v55 = vand.u32 4294901760, %v7348_v59  ;;  %v10261_v50 = vand.u32 4294901760, %v7358_v10  ;;  %v590_v28 = vld [vmem:[%s7106_s28 + $0x30] sm:$0xff] }
  0x66   : > { %v924_v62 = vsub.f32 %v7065_v63, %v10258_v52  ;;  %5724 = vmatprep.subr.bf16.mxu1 %v7168_v41  ;;  %5884 = vmatprep.subr.bf16.mxu0 %v7168_v41  ;;  %v607_v52 = vld [vmem:[%s7106_s28 + $0xb8] sm:$0xff]  ;;  %v7403_v41 = vsub.f32 %v7374_v17, %v9992_v31  ;;  %v7408_v49 = vsel %vm1788_vm1, %v606_v37, 0  ;;  %v2057_v48 = vand.u32 4294901760, %v2056_v30 }
  0x67   : > { %v2189_v43 = vsub.f32 %v7348_v59, %v10260_v55  ;;  %v7397_v27 = vsub.f32 %v7358_v10, %v10261_v50  ;;  %10262 = vst [vmem:[#allocation84_spill] sm:$0xff] %v7408_v49  ;;  %v2064_v55 = vand.u32 4294901760, %v2063_v16  ;;  %v918_v39 = vand.u32 4294901760, %v917_v12 }
  0x68   : > { %v925_v10 = vand.u32 4294901760, %v924_v62  ;;  %v7413_v25 = vsel %vm1788_vm1, %v607_v52, 0  ;;  %v9995_v31 = vand.u32 4294901760, %v7408_v49  ;;  %v7417_v17 = vpack.c.bf16 %v1037_v5, %v1030_v22 }
  0x69   : > { %v9994_v50 = vand.u32 4294901760, %v7397_v27  ;;  %10263 = vst [vmem:[#allocation85_spill] sm:$0xff] %v7413_v25  ;;  %v2183_v61 = vand.u32 4294901760, %v2182_v42  ;;  %v2190_v37 = vand.u32 4294901760, %v2189_v43  ;;  %v9997_v30 = vand.u32 4294901760, %v7413_v25  ;;  %v591_v42 = vld [vmem:[%s7106_s28 + $0x38] sm:$0xff] }
  0x6a   : > { %v10264_v62 = vand.u32 4294901760, %v7069_v6  ;;  %v10265_v52 = vand.u32 4294901760, %v7071_v20  ;;  %v7432_v22 = vsub.f32 %v7408_v49, %v9995_v31  ;;  %v7449_v31 = vpack.c.bf16 %v925_v10, %v918_v39  ;;  %v608_v10 = vld [vmem:[%s7106_s28 + $0xc0] sm:$0xff] }
  0x6b   : > { %v2070_v16 = vsub.f32 %v7397_v27, %v9994_v50  ;;  %v7438_v5 = vsub.f32 %v7413_v25, %v9997_v30  ;;  %v7443_v50 = vsel %vm1788_vm1, %v590_v28, 0  ;;  %v10268_v49 = vand.u32 4294901760, %v7403_v41 }
  0x6c   : > { %v1043_v12 = vsub.f32 %v7069_v6, %v10264_v62  ;;  %v1050_v3 = vsub.f32 %v7071_v20, %v10265_v52  ;;  %10267 = vst [vmem:[#allocation87_spill] sm:$0xff] %v7443_v50  ;;  %v7447_v52 = vpack.c.bf16 %v2064_v55, %v2057_v48  ;;  %v7459_v62 = vsel %vm1788_vm1, %v591_v42, 0 }
  0x6d   : > { %10266 = vst [vmem:[#allocation86_spill] sm:$0xff] %v7438_v5  ;;  %5726 = vmatpush3.bf16.xpose.msra.mxu1 %v7235_v35  ;;  %5886 = vmatpush3.bf16.xpose.msra.mxu0 %v7235_v35  ;;  %v2077_v30 = vsub.f32 %v7403_v41, %v10268_v49  ;;  %10269 = vst [vmem:[#allocation88_spill] sm:$0xff] %v7459_v62  ;;  %v10002_v48 = vand.u32 4294901760, %v7443_v50  ;;  %v7464_v55 = vpack.c.bf16 %v2190_v37, %v2183_v61  ;;  %v609_v61 = vld [vmem:[%s7106_s28 + $0xc8] sm:$0xff] }
  0x6e   : > { %5728 = vmatprep.subr.bf16.mxu1 %v7257_v38  ;;  %5920 = vmatprep.subr.bf16.mxu0 %v7294_v32  ;;  %v2071_v49 = vand.u32 4294901760, %v2070_v16  ;;  %v1044_v43 = vand.u32 4294901760, %v1043_v12  ;;  %v1051_v25 = vand.u32 4294901760, %v1050_v3  ;;  %v10270_v35 = vand.u32 4294901760, %v7074_v26 }
  0x6f   : > { %v10271_v32 = vand.u32 4294901760, %v7084_v34  ;;  %v7476_v39 = vsub.f32 %v7443_v50, %v10002_v48  ;;  %v10272_v37 = vand.u32 4294901760, %v7432_v22  ;;  %v10273_v16 = vand.u32 4294901760, %v7438_v5 }
  0x70   : > { %v931_v38 = vsub.f32 %v7074_v26, %v10270_v35  ;;  %v10009_v12 = vand.u32 4294901760, %v7092_v29  ;;  %v2078_v42 = vand.u32 4294901760, %v2077_v30  ;;  %v10275_v48 = vand.u32 4294901760, %v7459_v62 }
  0x71   : > { %v938_v28 = vsub.f32 %v7084_v34, %v10271_v32  ;;  %v2196_v3 = vsub.f32 %v7432_v22, %v10272_v37  ;;  %v2203_v35 = vsub.f32 %v7438_v5, %v10273_v16  ;;  %v7487_v32 = vsel %vm1788_vm1, %v608_v10, 0  ;;  %v592_v34 = vld [vmem:[%s7106_s28 + $0x40] sm:$0xff] }
  0x72   : > { %10274 = vst [vmem:[#allocation89_spill] sm:$0xff] %v7487_v32  ;;  %v7493_v50 = vsub.f32 %v7459_v62, %v10275_v48  ;;  %v10276_v26 = vand.u32 4294901760, %v7090_v51  ;;  %v1064_v16 = vsub.f32 %v7092_v29, %v10009_v12  ;;  %v7502_v5 = vsel %vm1788_vm1, %v609_v61, 0 }
  0x73   : > { %10277 = vst [vmem:[#allocation90_spill] sm:$0xff] %v7502_v5  ;;  %v7509_v48 = vpack.c.bf16 %v1051_v25, %v1044_v43  ;;  %v10014_v12 = vand.u32 4294901760, %v7502_v5  ;;  %v2197_v61 = vand.u32 4294901760, %v2196_v3  ;;  %v2204_v30 = vand.u32 4294901760, %v2203_v35 }
  0x74   : > { %v1057_v37 = vsub.f32 %v7090_v51, %v10276_v26  ;;  %5236 = vmatmul.mubr.f32.vlgmr.msra.gmra.mrb[0].mxu1 %v7138_v54  ;;  %5446 = vmatmul.mubr.f32.vlgmr.msra.gmra.mrb[0].mxu0 %v6912_v7  ;;  %v932_v26 = vand.u32 4294901760, %v931_v38  ;;  %v10015_v62 = vand.u32 4294901760, %v7493_v50  ;;  %v939_v29 = vand.u32 4294901760, %v938_v28  ;;  %v593_v51 = vld [vmem:[%s7106_s28 + $0x48] sm:$0xff] }
  0x75   : > { %5730 = vmatpush3.bf16.xpose.msra.mxu1 %v7260_v45  ;;  %5922 = vmatpush3.bf16.xpose.msra.mxu0 %v7351_v19  ;;  %v10278_v10 = vand.u32 4294901760, %v7487_v32  ;;  %v7523_v25 = vpack.c.bf16 %v2078_v42, %v2071_v49  ;;  %v7528_v45 = vsub.f32 %v7502_v5, %v10014_v12  ;;  %v10016_v19 = vand.u32 4294901760, %v7112_v60  ;;  %v610_v12 = vld [vmem:[%s7106_s28 + $0xd0] sm:$0xff] }
  0x76   : > { %5732 = vmatprep.subr.bf16.mxu1 %v7333_v4  ;;  %5924 = vmatprep.subr.bf16.mxu0 %v7380_v40  ;;  %v7532_v43 = vsel %vm1788_vm1, %v592_v34, 0  ;;  %v10280_v28 = vand.u32 4294901760, %v7476_v39  ;;  %v1058_v4 = vand.u32 4294901760, %v1057_v37  ;;  %v1065_v3 = vand.u32 4294901760, %v1064_v16 }
  0x77   : > { %v7518_v54 = vsub.f32 %v7487_v32, %v10278_v10  ;;  %10279 = vst [vmem:[#allocation91_spill] sm:$0xff] %v7532_v43  ;;  %v10281_v40 = vand.u32 4294901760, %v7096_v57  ;;  %5447 = vmatprep.mubr.f32.mxu0 %v6914_v8  ;;  %v2091_v42 = vsub.f32 %v7493_v50, %v10015_v62  ;;  %v7548_v35 = vsel %vm1788_vm1, %v593_v51, 0 }
  0x78   : > { %v2084_v38 = vsub.f32 %v7476_v39, %v10280_v28  ;;  %10282 = vst [vmem:[#allocation92_spill] sm:$0xff] %v7548_v35  ;;  %v10019_v37 = vand.u32 4294901760, %v7532_v43  ;;  %5448 = vmatmul.mubr.f32.gmra.mrb[2].mxu0 %v6914_v8  ;;  %v7552_v16 = vpack.c.bf16 %v2204_v30, %v2197_v61  ;;  %v7554_v10 = vpack.c.bf16 %v939_v29, %v932_v26  ;;  %v611_v26 = vld [vmem:[%s7106_s28 + $0xd8] sm:$0xff] }
  0x79   : > { %v7540_v49 = vsub.f32 %v7096_v57, %v10281_v40  ;;  %v10021_v40 = vand.u32 4294901760, %v7548_v35  ;;  %5449 = vmatprep.mubr.f32.mxu0 %v6918_v11  ;;  %v952_v51 = vsub.f32 %v7112_v60, %v10016_v19  ;;  %v7571_v28 = vpack.c.bf16 %v1065_v3, %v1058_v4 }
  0x7a   : > { %v7566_v62 = vsub.f32 %v7532_v43, %v10019_v37  ;;  %v2085_v61 = vand.u32 4294901760, %v2084_v38  ;;  %v2092_v8 = vand.u32 4294901760, %v2091_v42  ;;  %v10283_v37 = vand.u32 4294901760, %v7518_v54 }
  0x7b   : > { %v946_v34 = vand.u32 4294901760, %v7540_v49  ;;  %v7577_v19 = vsub.f32 %v7548_v35, %v10021_v40  ;;  %v7586_v30 = vsel %vm1788_vm1, %v610_v12, 0  ;;  %v10285_v38 = vand.u32 4294901760, %v7528_v45  ;;  %v594_v12 = vld [vmem:[%s7106_s28 + $0x50] sm:$0xff] }
  0x7c   : > { %v7582_v43 = vsub.f32 %v7518_v54, %v10283_v37  ;;  %v10024_v29 = vand.u32 4294901760, %v7566_v62  ;;  %10284 = vst [vmem:[#allocation93_spill] sm:$0xff] %v7586_v30  ;;  %5450 = vmatmul.mubr.f32.gmra.mrb[4].mxu0 %v6918_v11  ;;  %v7596_v49 = vsel %vm1788_vm1, %v611_v26, 0  ;;  %v10026_v42 = vand.u32 4294901760, %v7586_v30 }
  0x7d   : > { %5734 = vmatpush3.bf16.xpose.msra.mxu1 %v7360_v2  ;;  %5926 = vmatpush3.bf16.xpose.msra.mxu0 %v7447_v52  ;;  %v2217_v4 = vsub.f32 %v7528_v45, %v10285_v38  ;;  %10286 = vst [vmem:[#allocation94_spill] sm:$0xff] %v7596_v49  ;;  %v953_v2 = vand.u32 4294901760, %v952_v51  ;;  %v10287_v52 = vand.u32 4294901760, %v7120_v58  ;;  %v10288_v40 = vand.u32 4294901760, %v7122_v21 }
  0x7e   : > { %5736 = vmatprep.subr.bf16.mxu1 %v7417_v17  ;;  %5928 = vmatprep.subr.bf16.mxu0 %v7464_v55  ;;  %v2098_v26 = vsub.f32 %v7566_v62, %v10024_v29  ;;  %v7615_v17 = vsub.f32 %v7586_v30, %v10026_v42  ;;  %v10290_v3 = vand.u32 4294901760, %v7577_v19  ;;  %v10291_v29 = vand.u32 4294901760, %v7596_v49 }
  0x7f   : > { %v1071_v37 = vsub.f32 %v7120_v58, %v10287_v52  ;;  %v1078_v38 = vsub.f32 %v7122_v21, %v10288_v40  ;;  %v595_v52 = vld [vmem:[%s7106_s28 + $0x58] sm:$0xff]  ;;  %5451 = vmatprep.mubr.f32.mxu0 %v6925_v13  ;;  %v7621_v40 = vpack.c.bf16 %v2092_v8, %v2085_v61  ;;  %v7632_v42 = vsel %vm1788_vm1, %v594_v12, 0  ;;  %v612_v8 = vld [vmem:[%s7106_s28 + $0xe0] sm:$0xff] }
  0x80   : > { %10289 = vst [vmem:[#allocation95_spill] sm:$0xff] %v7615_v17  ;;  %v2105_v11 = vsub.f32 %v7577_v19, %v10290_v3  ;;  %v7629_v35 = vsub.f32 %v7596_v49, %v10291_v29  ;;  %10293 = vst [vmem:[#allocation97_spill] sm:$0xff] %v7632_v42  ;;  %5452 = vmatmul.mubr.f32.gmra.mrb[6].mxu0 %v6925_v13  ;;  %v2211_v51 = vand.u32 4294901760, %v7582_v43  ;;  %v2218_v55 = vand.u32 4294901760, %v2217_v4 }
  0x81   : > { %v10294_v61 = vand.u32 4294901760, %v7128_v46  ;;  %5453 = vmatprep.mubr.f32.mxu0 %v6947_v18  ;;  %v10295_v29 = vand.u32 4294901760, %v7130_v9  ;;  %v7645_v12 = vsel %vm1788_vm1, %v595_v52, 0  ;;  %v10039_v13 = vand.u32 4294901760, %v7632_v42 }
  0x82   : > { %10292 = vst [vmem:[#allocation96_spill] sm:$0xff] %v7629_v35  ;;  %10296 = vst [vmem:[#allocation98_spill] sm:$0xff] %v7645_v12  ;;  %v10297_v43 = vsub.f32 %v6931_v15, %v6956_v23  ;;  %v2099_v49 = vand.u32 4294901760, %v2098_v26  ;;  %v1072_v5 = vand.u32 4294901760, %v1071_v37  ;;  %v10041_v32 = vand.u32 4294901760, %v7629_v35  ;;  %v614_v15 = vld [vmem:[%s7106_s28 + $0xf0] sm:$0xff] }
  0x83   : > { %v959_v30 = vsub.f32 %v7128_v46, %v10294_v61  ;;  %v966_v3 = vsub.f32 %v7130_v9, %v10295_v29  ;;  %v1079_v61 = vand.u32 4294901760, %v1078_v38  ;;  %v2106_v46 = vand.u32 4294901760, %v2105_v11  ;;  %v613_v9 = vld [vmem:[%s7106_s28 + $0xe8] sm:$0xff] }
  0x84   : > { %v845_v4 = vand.u32 4294901760, %v10297_v43  ;;  %v10040_v21 = vand.u32 4294901760, %v7645_v12  ;;  %v7657_v52 = vsub.f32 %v7632_v42, %v10039_v13  ;;  %v10044_v29 = vand.u32 4294901760, %v7144_v47  ;;  %5454 = vmatmul.mubr.f32.gmra.mrb[8].mxu0 %v6947_v18  ;;  %v10312_v18 = vld [vmem:[#allocation20_spill] sm:$0xff] }
  0x85   : > { %5738 = vmatpush3.bf16.xpose.msra.mxu1 %v7449_v31  ;;  %5930 = vmatpush3.bf16.xpose.msra.mxu0 %v7523_v25  ;;  %v7664_v37 = vpack.c.bf16 %v953_v2, %v946_v34  ;;  %v10298_v11 = vand.u32 4294901760, %v7615_v17  ;;  %v7671_v43 = vsel %vm1788_vm1, %v612_v8, 0  ;;  %v960_v13 = vand.u32 4294901760, %v959_v30  ;;  %v596_v8 = vld [vmem:[%s7106_s28 + $0x60] sm:$0xff] }
  0x86   : > { %5237 = vmatprep.mubr.f32.mxu1 %v845_v4  ;;  %10299 = vst [vmem:[#allocation99_spill] sm:$0xff] %v7671_v43  ;;  %5740 = vmatprep.subr.bf16.mxu1 %v7509_v48  ;;  %v967_v31 = vand.u32 4294901760, %v966_v3  ;;  %v7679_v34 = vsub.f32 %v7645_v12, %v10040_v21  ;;  %v2231_v2 = vsub.f32 %v7629_v35, %v10041_v32  ;;  %v10045_v30 = vand.u32 4294901760, %v7671_v43  ;;  %v10311_v25 = vld [vmem:[#allocation16_spill] sm:$0xff] }
  0x87   : > { %v2224_v38 = vsub.f32 %v7615_v17, %v10298_v11  ;;  %5932 = vmatprep.subr.bf16.mxu0 %v7552_v16  ;;  %v1085_v48 = vsub.f32 %v7144_v47, %v10044_v29  ;;  %v7688_v16 = vsel %vm1788_vm1, %v613_v9, 0  ;;  %5238 = vmatmul.mubr.f32.gmra.mrb[2].mxu1 %v845_v4  ;;  %v5935_v3 = vpack.c.bf16 %v2218_v55, %v2211_v51  ;;  %v597_v4 = vld [vmem:[%s7106_s28 + $0x68] sm:$0xff] }
  0x88   : > { %10300 = vst [vmem:[#allocation100_spill] sm:$0xff] %v7679_v34  ;;  %10301 = vst [vmem:[#allocation101_spill] sm:$0xff] %v7688_v16  ;;  %v7692_v11 = vpack.c.bf16 %v2106_v46, %v2099_v49  ;;  %v7694_v21 = vpack.c.bf16 %v1079_v61, %v1072_v5  ;;  %v10302_v32 = vand.u32 4294901760, %v7146_v53  ;;  %v10048_v29 = vand.u32 4294901760, %v7688_v16  ;;  %v10305_v49 = vld [vmem:[#allocation57_spill] sm:$0xff] }
  0x89   : > { %v2225_v26 = vand.u32 4294901760, %v2224_v38  ;;  %v7704_v9 = vsub.f32 %v7671_v43, %v10045_v30  ;;  %v7707_v55 = vpack.c.bf16 %v967_v31, %v960_v13  ;;  %v10304_v46 = vand.u32 4294901760, %v7657_v52 }
  0x8a   : > { %v1092_v23 = vsub.f32 %v7146_v53, %v10302_v32  ;;  %v7714_v61 = vsel %vm1788_vm1, %v596_v8, 0  ;;  %v2232_v32 = vand.u32 4294901760, %v2231_v2  ;;  %v1086_v38 = vand.u32 4294901760, %v1085_v48  ;;  %v10318_v8 = vld [vmem:[#allocation23_spill] sm:$0xff] }
  0x8b   : > { %10303 = vst [vmem:[#allocation102_spill] sm:$0xff] %v7704_v9  ;;  %v2112_v5 = vsub.f32 %v7657_v52, %v10304_v46  ;;  %10306 = vst [vmem:[#allocation103_spill] sm:$0xff] %v7714_v61  ;;  %v7720_v30 = vsub.f32 %v7688_v16, %v10048_v29  ;;  %v10308_v13 = vand.u32 4294901760, %v7679_v34  ;;  %v10309_v46 = vld [vmem:[#allocation59_spill] sm:$0xff]  ;;  %v7727_v51 = vsel %vm1788_vm1, %v597_v4, 0  ;;  %v10317_v29 = vld [vmem:[#allocation21_spill] sm:$0xff] }
  0x8c   : > { %10310 = vst [vmem:[#allocation105_spill] sm:$0xff] %v7727_v51  ;;  %v1093_v48 = vand.u32 4294901760, %v1092_v23  ;;  %v10314_v2 = vand.u32 4294901760, %v10305_v49  ;;  %v10315_v23 = vand.u32 4294901760, %v7714_v61  ;;  %v10319_v43 = vsub.f32 %v10317_v29, %v10318_v8 }
  0x8d   : > { %10307 = vst [vmem:[#allocation104_spill] sm:$0xff] %v7720_v30  ;;  %v2119_v31 = vsub.f32 %v7679_v34, %v10308_v13  ;;  %5742 = vmatpush3.bf16.xpose.msra.mxu1 %v7554_v10  ;;  %5934 = vmatpush3.bf16.xpose.msra.mxu0 %v7621_v40  ;;  %v10313_v13 = vsub.f32 %v10311_v25, %v10312_v18  ;;  %v2113_v4 = vand.u32 4294901760, %v2112_v5  ;;  %v10320_v25 = vand.u32 4294901760, %v7704_v9 }
  0x8e   : > { %5744 = vmatprep.subr.bf16.mxu1 %v7571_v28  ;;  %5936 = vmatprep.subr.bf16.mxu0 %v5935_v3  ;;  %v7742_v10 = vsub.f32 %v10305_v49, %v10314_v2  ;;  %v7747_v40 = vsub.f32 %v7714_v61, %v10315_v23  ;;  %v867_v18 = vand.u32 4294901760, %v10319_v43  ;;  %v10321_v3 = vand.u32 4294901760, %v7720_v30 }
  0x8f   : > { %v856_v16 = vand.u32 4294901760, %v10313_v13  ;;  %v615_v13 = vld [vmem:[%s7106_s28 + $0xf8] sm:$0xff]  ;;  %v2238_v28 = vsub.f32 %v7704_v9, %v10320_v25  ;;  %v10322_v2 = vand.u32 4294901760, %v7727_v51  ;;  %v2120_v8 = vand.u32 4294901760, %v2119_v31  ;;  %v598_v25 = vld [vmem:[%s7106_s28 + $0x70] sm:$0xff] }
  0x90   : > { %10316 = vst [vmem:[#allocation106_spill] sm:$0xff] %v7747_v40  ;;  %v2245_v5 = vsub.f32 %v7720_v30, %v10321_v3  ;;  %v10324_v43 = vand.u32 4294901760, %v10309_v46  ;;  %v7770_v3 = vsel %vm1788_vm1, %v614_v15, 0  ;;  %v5939_v61 = vpack.c.bf16 %v2232_v32, %v2225_v26 }
  0x91   : > { %v7762_v12 = vsub.f32 %v7727_v51, %v10322_v2  ;;  %5239 = vmatprep.mubr.f32.mxu1 %v856_v16  ;;  %10325 = vst [vmem:[#allocation108_spill] sm:$0xff] %v7770_v3  ;;  %v7775_v23 = vsel %vm1788_vm1, %v615_v13, 0  ;;  %v5751_v31 = vpack.c.bf16 %v1093_v48, %v1086_v38  ;;  %v974_v42 = vand.u32 4294901760, %v7742_v10  ;;  %v599_v13 = vld [vmem:[%s7106_s28 + $0x78] sm:$0xff]  ;;  %s5197_s28 = sshll.u32 %s6910_s29, 5  ;;  %s5165_s29 = sshll.u32 (%p6873_p3), %s6665_s22, 1 }
  0x92   : > { %v980_v29 = vsub.f32 %v10309_v46, %v10324_v43  ;;  %5240 = vmatmul.mubr.f32.gmra.mrb[4].mxu1 %v856_v16  ;;  %10326 = vst [vmem:[#allocation109_spill] sm:$0xff] %v7775_v23  ;;  %v10060_v43 = vand.u32 4294901760, %v7770_v3  ;;  %v10059_v16 = vand.u32 4294901760, %v7775_v23  ;;  %v2239_v46 = vand.u32 4294901760, %v2238_v28  ;;  %s8274_s30 = scalar_lea.vmem %s10545_s2, %s5197_s28  ;;  %s8328_s15 = scalar_lea.vmem %s10561_s3, %s5197_s28 }
  0x93   : > { %10323 = vst [vmem:[#allocation107_spill] sm:$0xff] %v7762_v12  ;;  %5241 = vmatprep.mubr.f32.mxu1 %v867_v18  ;;  %v2246_v15 = vand.u32 4294901760, %v2245_v5  ;;  %v10327_v26 = vand.u32 4294901760, %v7747_v40  ;;  %v10328_v2 = vand.u32 4294901760, %v7207_v24  ;;  %v5941_v49 = vpack.c.bf16 %v2120_v8, %v2113_v4  ;;  %v10337_v5 = vld [vmem:[#allocation24_spill] sm:$0xff]  ;;  %s4453_s28 = ssub.s32 (%p6873_p3), 5, %s5165_s29 }
  0x94   : > { %v981_v38 = vand.u32 4294901760, %v980_v29  ;;  %v7791_v48 = vsub.f32 %v7770_v3, %v10060_v43  ;;  %v7796_v10 = vsub.f32 %v7775_v23, %v10059_v16  ;;  %v10331_v28 = vand.u32 4294901760, %v7762_v12  ;;  %p4454_p0 = scmp.lt.s32.totalorder (%p6873_p3), %s4453_s28, 2 }
  0x95   : > { %v2126_v32 = vsub.f32 %v7747_v40, %v10327_v26  ;;  %v1099_v51 = vsub.f32 %v7207_v24, %v10328_v2  ;;  %5746 = vmatpush3.bf16.xpose.msra.mxu1 %v7664_v37  ;;  %5938 = vmatpush3.bf16.xpose.msra.mxu0 %v7692_v11  ;;  %v10332_v29 = vand.u32 4294901760, %v7216_v0  ;;  %v7808_v2 = vsel %vm1788_vm1, %v598_v25, 0  ;;  %v10336_v11 = vld [vmem:[#allocation29_spill] sm:$0xff]  ;;  %v10360_v24 = vld [vmem:[#allocation88_spill] sm:$0xff] }
  0x96   : > { %10329 = vst [vmem:[#allocation110_spill] sm:$0xff] %v7791_v48  ;;  %10330 = vst [vmem:[#allocation111_spill] sm:$0xff] %v7796_v10  ;;  %5242 = vmatmul.mubr.f32.gmra.mrb[6].mxu1 %v867_v18  ;;  %v2133_v8 = vsub.f32 %v7762_v12, %v10331_v28  ;;  %5748 = vmatprep.subr.bf16.mxu1 %v7694_v21  ;;  %v10066_v18 = vand.u32 4294901760, %v7791_v48  ;;  %v10065_v37 = vand.u32 4294901760, %v7796_v10  ;;  %v7815_v26 = vsel %vm1788_vm1, %v599_v13, 0  ;;  %v1784_v28 = vld [vmem:[%s10335_s5] sm:$0xff] }
  0x97   : > { %v1106_v4 = vsub.f32 %v7216_v0, %v10332_v29  ;;  %10333 = vst [vmem:[#allocation112_spill] sm:$0xff] %v7808_v2  ;;  %5940 = vmatprep.subr.bf16.mxu0 %v5939_v61  ;;  %10334 = vst [vmem:[#allocation113_spill] sm:$0xff] %v7815_v26  ;;  %v5943_v29 = vpack.c.bf16 %v2246_v15, %v2239_v46  ;;  %v2127_v16 = vand.u32 4294901760, %v2126_v32  ;;  %v1100_v25 = vand.u32 4294901760, %v1099_v51  ;;  %v10355_v40 = vld [vmem:[#allocation85_spill] sm:$0xff] }
  0x98   : > { %v10067_v43 = vand.u32 4294901760, %v7808_v2  ;;  %v2252_v21 = vsub.f32 %v7791_v48, %v10066_v18  ;;  %v2259_v61 = vsub.f32 %v7796_v10, %v10065_v37  ;;  %v10069_v13 = vand.u32 4294901760, %v7815_v26 }
  0x99   : > { %v877_v23 = vsub.f32 %v10337_v5, %v10336_v11  ;;  %v2134_v3 = vand.u32 4294901760, %v2133_v8  ;;  %v1107_v0 = vand.u32 4294901760, %v1106_v4  ;;  %v7836_v46 = vsel %vm1788_vm1, %v1784_v28, 0 }
  0x9a   : > { %v7833_v51 = vsub.f32 %v7808_v2, %v10067_v43  ;;  %10339 = vst [vmem:[#allocation115_spill] sm:$0xff] %v7836_v46  ;;  %v10340_v15 = vand.u32 4294901760, %v7218_v44  ;;  %v10341_v37 = vand.u32 4294901760, %v7240_v33  ;;  %v7847_v8 = vsub.f32 %v7815_v26, %v10069_v13 }
  0x9b   : > { %v878_v4 = vand.u32 4294901760, %v877_v23  ;;  %v2253_v11 = vand.u32 4294901760, %v2252_v21  ;;  %v2260_v43 = vand.u32 4294901760, %v2259_v61  ;;  %v7851_v28 = vand.u32 4294901760, %v7836_v46 }
  0x9c   : > { %10338 = vst [vmem:[#allocation114_spill] sm:$0xff] %v7833_v51  ;;  %v987_v32 = vsub.f32 %v7218_v44, %v10340_v15  ;;  %v994_v18 = vsub.f32 %v7240_v33, %v10341_v37  ;;  %v10073_v5 = vand.u32 4294901760, %v7833_v51  ;;  %v10072_v2 = vand.u32 4294901760, %v7847_v8  ;;  %v10365_v33 = vld [vmem:[#allocation90_spill] sm:$0xff] }
  0x9d   : > { %5243 = vmatprep.mubr.f32.mxu1 %v878_v4  ;;  %5750 = vmatpush3.bf16.xpose.msra.mxu1 %v7707_v55  ;;  %v5753_v37 = vpack.c.bf16 %v981_v38, %v974_v42  ;;  %v5755_v15 = vpack.c.bf16 %v1107_v0, %v1100_v25  ;;  %v5945_v23 = vpack.c.bf16 %v2134_v3, %v2127_v16  ;;  %v10343_v38 = vld [vmem:[#allocation42_spill] sm:$0xff]  ;;  %v10349_v42 = vld [vmem:[#allocation53_spill] sm:$0xff]  ;;  %v10356_v12 = vand.u32 4294901760, %v10355_v40 }
  0x9e   : > { %5942 = vmatpush3.bf16.xpose.msra.mxu0 %v5941_v49  ;;  %v2140_v13 = vsub.f32 %v7833_v51, %v10073_v5  ;;  %5752 = vmatprep.subr.bf16.mxu1 %v5751_v31  ;;  %v988_v21 = vand.u32 4294901760, %v987_v32  ;;  %v2147_v61 = vsub.f32 %v7847_v8, %v10072_v2  ;;  %v5947_v26 = vpack.c.bf16 %v2260_v43, %v2253_v11  ;;  %v10342_v43 = vld [vmem:[#allocation86_spill] sm:$0xff]  ;;  %v10346_v32 = vld [vmem:[#allocation47_spill] sm:$0xff]  ;;  %v10352_v11 = vld [vmem:[#allocation69_spill] sm:$0xff] }
  0x9f   : > { %5944 = vmatprep.subr.bf16.mxu0 %v5943_v29  ;;  %v995_v55 = vand.u32 4294901760, %v994_v18  ;;  %5244 = vmatmul.mubr.f32.gmra.mrb[8].mxu1 %v878_v4  ;;  %v10344_v18 = vld [vmem:[#allocation44_spill] sm:$0xff]  ;;  %v10345_v25 = vld [vmem:[#allocation46_spill] sm:$0xff]  ;;  %v10351_v31 = vld [vmem:[#allocation59_spill] sm:$0xff]  ;;  %v10366_v5 = vand.u32 4294901760, %v10365_v33 }
  0xa0   : > { %5527 = vmatprep.mubr.f32.mxu0 %v7851_v28  ;;  %v2141_v49 = vand.u32 4294901760, %v2140_v13  ;;  %5277 = vmatprep.mubr.f32.mxu1 %v6912_v7  ;;  %v2148_v2 = vand.u32 4294901760, %v2147_v61  ;;  %v10347_v16 = vld [vmem:[#allocation50_spill] sm:$0xff]  ;;  %v10348_v29 = vld [vmem:[#allocation52_spill] sm:$0xff]  ;;  %v10361_v13 = vand.u32 4294901760, %v10360_v24  ;;  %v10363_v61 = vld [vmem:[#allocation89_spill] sm:$0xff] }
  0xa1   : > { %v5757_v46 = vpack.c.bf16 %v995_v55, %v988_v21  ;;  %v10353_v4 = vld [vmem:[#allocation84_spill] sm:$0xff]  ;;  %v10364_v44 = vand.u32 4294901760, %v10363_v61  ;;  %v10378_v24 = vld [vmem:[#allocation97_spill] sm:$0xff] }
  0xa2   : > { %v5949_v0 = vpack.c.bf16 %v2148_v2, %v2141_v49  ;;  %v10354_v3 = vand.u32 4294901760, %v10353_v4  ;;  %v10370_v21 = vld [vmem:[#allocation92_spill] sm:$0xff] }
  0xa3   : > { %v10371_v55 = vand.u32 4294901760, %v10370_v21  ;;  %v10384_v33 = vld [vmem:[#allocation28_spill] sm:$0xff] }
  0xa4   : > { %v7915_v17 = vpack.c.bf16 %v10356_v12, %v10354_v3  ;;  %v10373_v12 = vld [vmem:[#allocation93_spill] sm:$0xff]  ;;  %v10375_v3 = vld [vmem:[#allocation94_spill] sm:$0xff] }
  0xa5   : > { %5754 = vmatpush3.bf16.xpose.msra.mxu1 %v5753_v37  ;;  %v10358_v37 = vld [vmem:[#allocation87_spill] sm:$0xff]  ;;  %v10374_v40 = vand.u32 4294901760, %v10373_v12  ;;  %v10376_v4 = vand.u32 4294901760, %v10375_v3 }
  0xa6   : > { %5946 = vmatpush3.bf16.xpose.msra.mxu0 %v5945_v23  ;;  %5756 = vmatprep.subr.bf16.mxu1 %v5755_v15  ;;  %10357 = vst [vmem:[#allocation86_spill] sm:$0xff] %v7915_v17  ;;  %v10359_v23 = vand.u32 4294901760, %v10358_v37  ;;  %v7927_v15 = vpack.c.bf16 %v10366_v5, %v10364_v44  ;;  %v10383_v44 = vld [vmem:[#allocation27_spill] sm:$0xff] }
  0xa7   : > { %5948 = vmatprep.subr.bf16.mxu0 %v5947_v26  ;;  %v10368_v26 = vld [vmem:[#allocation91_spill] sm:$0xff]  ;;  %v7939_v37 = vpack.c.bf16 %v10376_v4, %v10374_v40  ;;  %v5759_v5 = vpack.c.bf16 %v10384_v33, %v10383_v44  ;;  %v10393_v4 = vld [vmem:[#allocation105_spill] sm:$0xff]  ;;  %v10400_v44 = vld [vmem:[#allocation112_spill] sm:$0xff] }
  0xa8   : > { %v7921_v48 = vpack.c.bf16 %v10361_v13, %v10359_v23  ;;  %10367 = vst [vmem:[#allocation44_spill] sm:$0xff] %v7927_v15  ;;  %v10369_v2 = vand.u32 4294901760, %v10368_v26  ;;  %v10379_v13 = vand.u32 4294901760, %v10378_v24  ;;  %v10380_v23 = vld [vmem:[#allocation98_spill] sm:$0xff]  ;;  %v10385_v26 = vld [vmem:[#allocation63_spill] sm:$0xff]  ;;  %v10394_v24 = vand.u32 4294901760, %v10393_v4 }
  0xa9   : > { %10377 = vst [vmem:[#allocation50_spill] sm:$0xff] %v7939_v37  ;;  %v10381_v61 = vand.u32 4294901760, %v10380_v23  ;;  %v10386_v15 = vld [vmem:[#allocation66_spill] sm:$0xff]  ;;  %v10391_v40 = vld [vmem:[#allocation103_spill] sm:$0xff] }
  0xaa   : > { %10362 = vst [vmem:[#allocation42_spill] sm:$0xff] %v7921_v48  ;;  %v7933_v49 = vpack.c.bf16 %v10371_v55, %v10369_v2  ;;  %v5951_v21 = vpack.c.bf16 %v10386_v15, %v10385_v26  ;;  %v10387_v2 = vld [vmem:[#allocation99_spill] sm:$0xff]  ;;  %v10392_v3 = vand.u32 4294901760, %v10391_v40  ;;  %v10401_v15 = vand.u32 4294901760, %v10400_v44  ;;  %v10402_v26 = vld [vmem:[#allocation113_spill] sm:$0xff]  ;;  %v10405_v44 = vld [vmem:[#allocation30_spill] sm:$0xff] }
  0xab   : > { %v7945_v48 = vpack.c.bf16 %v10381_v61, %v10379_v13  ;;  %v10388_v55 = vand.u32 4294901760, %v10387_v2  ;;  %v10395_v13 = vld [vmem:[#allocation108_spill] sm:$0xff]  ;;  %v10397_v61 = vld [vmem:[#allocation109_spill] sm:$0xff]  ;;  %v10403_v2 = vand.u32 4294901760, %v10402_v26  ;;  %v10408_v40 = vld [vmem:[#allocation71_spill] sm:$0xff] }
  0xac   : > { %10372 = vst [vmem:[#allocation46_spill] sm:$0xff] %v7933_v49  ;;  %v10389_v49 = vld [vmem:[#allocation101_spill] sm:$0xff]  ;;  %v7961_v37 = vpack.c.bf16 %v10394_v24, %v10392_v3  ;;  %v10396_v23 = vand.u32 4294901760, %v10395_v13  ;;  %v10410_v3 = vld [vmem:[#allocation34_spill] sm:$0xff]  ;;  %v10411_v24 = vld [vmem:[#allocation76_spill] sm:$0xff] }
  0xad   : > { %10382 = vst [vmem:[#allocation52_spill] sm:$0xff] %v7945_v48  ;;  %v10390_v12 = vand.u32 4294901760, %v10389_v49  ;;  %v10398_v48 = vand.u32 4294901760, %v10397_v61  ;;  %v7973_v51 = vpack.c.bf16 %v10403_v2, %v10401_v15  ;;  %5758 = vmatpush3.bf16.xpose.msra.mxu1 %v5757_v46  ;;  %v1785_v49 = vld [vmem:[%s10335_s5 + $0x8] sm:$0xff]  ;;  %v1787_v2 = vld [vmem:[%s10335_s5 + $0x18] sm:$0xff] }
  0xae   : > { %5950 = vmatpush3.bf16.xpose.msra.mxu0 %v5949_v0  ;;  %5760 = vmatprep.subr.bf16.mxu1 %v5759_v5  ;;  %v10407_v15 = vld [vmem:[#allocation68_spill] sm:$0xff]  ;;  %v10412_v13 = vld [vmem:[#allocation77_spill] sm:$0xff] }
  0xaf   : > { %v7955_v17 = vpack.c.bf16 %v10390_v12, %v10388_v55  ;;  %v7967_v33 = vpack.c.bf16 %v10398_v48, %v10396_v23  ;;  %10404 = vst [vmem:[#allocation85_spill] sm:$0xff] %v7973_v51  ;;  %5952 = vmatprep.subr.bf16.mxu0 %v5951_v21  ;;  %v1786_v55 = vld [vmem:[%s10335_s5 + $0x10] sm:$0xff]  ;;  %v7982_v48 = vsel %vm1788_vm1, %v1785_v49, 0  ;;  %v10406_v12 = vld [vmem:[#allocation31_spill] sm:$0xff]  ;;  %v5953_v46 = vpack.c.bf16 %v10408_v40, %v10407_v15  ;;  %v10409_v0 = vld [vmem:[#allocation32_spill] sm:$0xff] }
  0xb0   : > { %v5761_v26 = vpack.c.bf16 %v10406_v12, %v10405_v44  ;;  %v5763_v4 = vpack.c.bf16 %v10410_v3, %v10409_v0  ;;  %v5955_v5 = vpack.c.bf16 %v10412_v13, %v10411_v24  ;;  %v7993_v21 = vsel %vm1788_vm1, %v1786_v55, 0  ;;  %v10414_v49 = vld [vmem:[#allocation11_spill] sm:$0xff]  ;;  %v10417_v13 = vld [vmem:[#allocation12_spill] sm:$0xff] }
  0xb1   : > { %10399 = vst [vmem:[#allocation84_spill] sm:$0xff] %v7967_v33  ;;  %v7996_v23 = vand.u32 4294901760, %v7982_v48  ;;  %v8001_v61 = vand.u32 4294901760, %v7993_v21  ;;  %v8011_v55 = vsel %vm1788_vm1, %v1787_v2, 0  ;;  %v10421_v2 = vpack.c.bf16 %v7321_v36, %v7316_v14 }
  0xb2   : > { %v8020_v3 = vand.u32 4294901760, %v8011_v55 }
  0xb3   : > { %10413 = vst [vmem:[#allocation87_spill] sm:$0xff] %v8001_v61 }
  0xb4   : > { %5278 = vmatmul.mubr.f32.vlgmr.msra.gmra.mrb[0].mxu1 %v6912_v7  ;;  %10420 = vst [vmem:[#allocation88_spill] sm:$0xff] %v8020_v3 }
  0xb5   : > { %5528 = vmatmul.mubr.f32.vlgmr.msra.gmra.mrb[10].mxu0 %v7851_v28  ;;  %5762 = vmatpush3.bf16.xpose.msra.mxu1 %v5761_v26  ;;  %v10415_v26 = vld [vmem:[#allocation36_spill] sm:$0xff] }
  0xb6   : > { %5954 = vmatpush3.bf16.xpose.msra.mxu0 %v5953_v46  ;;  %5764 = vmatprep.subr.bf16.mxu1 %v5763_v4  ;;  %v10416_v46 = vld [vmem:[#allocation37_spill] sm:$0xff]  ;;  %v10418_v4 = vld [vmem:[#allocation38_spill] sm:$0xff] }
  0xb7   : > { %5956 = vmatprep.subr.bf16.mxu0 %v5955_v5  ;;  %5279 = vmatprep.mubr.f32.mxu1 %v10414_v49  ;;  %v5765_v7 = vpack.c.bf16 %v10416_v46, %v10415_v26  ;;  %v10419_v5 = vld [vmem:[#allocation39_spill] sm:$0xff] }
  0xb8   : > { %5529 = vmatprep.mubr.f32.mxu0 %v7996_v23  ;;  %5280 = vmatmul.mubr.f32.gmra.mrb[2].mxu1 %v10414_v49  ;;  %v5767_v24 = vpack.c.bf16 %v10419_v5, %v10418_v4  ;;  %v10422_v49 = vld [vmem:[#allocation115_spill] sm:$0xff]  ;;  %v10424_v5 = vpack.c.bf16 %v7348_v59, %v7343_v1  ;;  %v10425_v4 = vld [vmem:[#allocation13_spill] sm:$0xff] }
  0xb9   : > { %5530 = vmatmul.mubr.f32.gmra.mrb[12].mxu0 %v7996_v23  ;;  %5281 = vmatprep.mubr.f32.mxu1 %v10417_v13  ;;  %v8029_v46 = vsub.f32 %v10422_v49, %v7851_v28  ;;  %v10428_v49 = vpack.c.bf16 %v7403_v41, %v7397_v27 }
  0xba   : > { %5531 = vmatprep.mubr.f32.mxu0 %v8001_v61 }
  0xbb   : > { %10423 = vst [vmem:[#allocation89_spill] sm:$0xff] %v8029_v46 }
  0xbc   : > { %5282 = vmatmul.mubr.f32.gmra.mrb[4].mxu1 %v10417_v13  ;;  %v10437_v13 = vpack.c.bf16 %v7577_v19, %v7566_v62 }
  0xbd   : > { %5532 = vmatmul.mubr.f32.gmra.mrb[14].mxu0 %v8001_v61  ;;  %5766 = vmatpush3.bf16.xpose.msra.mxu1 %v5765_v7  ;;  %v10426_v7 = vld [vmem:[#allocation17_spill] sm:$0xff] }
  0xbe   : > { %5958 = vmatpush3.bf16.xpose.msra.mxu0 %v10421_v2  ;;  %5768 = vmatprep.subr.bf16.mxu1 %v5767_v24  ;;  %v10427_v24 = vpack.c.bf16 %v7065_v63, %v7056_v56  ;;  %v10430_v2 = vpack.c.bf16 %v10342_v43, %v7432_v22 }
  0xbf   : > { %5960 = vmatprep.subr.bf16.mxu0 %v10424_v5  ;;  %5283 = vmatprep.mubr.f32.mxu1 %v10425_v4  ;;  %v10429_v5 = vpack.c.bf16 %v7071_v20, %v7069_v6 }
  0xc0   : > { %5533 = vmatprep.mubr.f32.mxu0 %v8020_v3  ;;  %5284 = vmatmul.mubr.f32.gmra.mrb[6].mxu1 %v10425_v4  ;;  %v10431_v4 = vld [vmem:[#allocation14_spill] sm:$0xff] }
  0xc1   : > { %5534 = vmatmul.mubr.f32.gmra.mrb[16].mxu0 %v8020_v3  ;;  %5285 = vmatprep.mubr.f32.mxu1 %v10426_v7 }
  0xc2   : > { %5567 = vmatprep.mubr.f32.mxu0 %v8029_v46 }
  0xc4   : > { %5286 = vmatmul.mubr.f32.gmra.mrb[8].mxu1 %v10426_v7  ;;  %v10432_v7 = vpack.c.bf16 %v10344_v18, %v10343_v38 }
  0xc5   : > { %5770 = vmatpush3.bf16.xpose.msra.mxu1 %v10427_v24  ;;  %5319 = vmatprep.mubr.f32.mxu1 %v10431_v4  ;;  %v10433_v24 = vpack.c.bf16 %v7493_v50, %v7476_v39 }
  0xc6   : > { %5962 = vmatpush3.bf16.xpose.msra.mxu0 %v10428_v49  ;;  %5772 = vmatprep.subr.bf16.mxu1 %v10429_v5  ;;  %v10434_v49 = vpack.c.bf16 %v10346_v32, %v10345_v25  ;;  %v10435_v5 = vpack.c.bf16 %v7528_v45, %v7518_v54 }
  0xc7   : > { %5964 = vmatprep.subr.bf16.mxu0 %v10430_v2  ;;  %v10436_v2 = vpack.c.bf16 %v7112_v60, %v7096_v57 }
  0xcd   : > { %5774 = vmatpush3.bf16.xpose.msra.mxu1 %v10432_v7  ;;  %v10438_v7 = vpack.c.bf16 %v10347_v16, %v7120_v58 }
  0xce   : > { %5966 = vmatpush3.bf16.xpose.msra.mxu0 %v10433_v24  ;;  %5776 = vmatprep.subr.bf16.mxu1 %v10434_v49  ;;  %v10439_v24 = vld [vmem:[#allocation95_spill] sm:$0xff]  ;;  %v10441_v49 = vpack.c.bf16 %v10349_v42, %v10348_v29 }
  0xcf   : > { %5968 = vmatprep.subr.bf16.mxu0 %v10435_v5  ;;  %v10440_v32 = vpack.c.bf16 %v7629_v35, %v10439_v24  ;;  %v10442_v5 = vpack.c.bf16 %v7679_v34, %v7657_v52  ;;  %v10448_v24 = vld [vmem:[#allocation106_spill] sm:$0xff] }
  0xd5   : > { %5778 = vmatpush3.bf16.xpose.msra.mxu1 %v10436_v2  ;;  %v10443_v2 = vpack.c.bf16 %v7146_v53, %v7144_v47 }
  0xd6   : > { %5970 = vmatpush3.bf16.xpose.msra.mxu0 %v10437_v13  ;;  %5780 = vmatprep.subr.bf16.mxu1 %v10438_v7  ;;  %v10444_v13 = vpack.c.bf16 %v7720_v30, %v7704_v9  ;;  %v10445_v7 = vld [vmem:[#allocation57_spill] sm:$0xff] }
  0xd7   : > { %5972 = vmatprep.subr.bf16.mxu0 %v10440_v32  ;;  %v10446_v35 = vpack.c.bf16 %v10351_v31, %v10445_v7  ;;  %v10447_v32 = vld [vmem:[#allocation107_spill] sm:$0xff]  ;;  %v10456_v30 = vld [vmem:[#allocation61_spill] sm:$0xff]  ;;  %v10458_v31 = vld [vmem:[#allocation74_spill] sm:$0xff] }
  0xd8   : > { %v10449_v42 = vpack.c.bf16 %v10447_v32, %v10448_v24 }
  0xdd   : > { %5782 = vmatpush3.bf16.xpose.msra.mxu1 %v10441_v49  ;;  %v10450_v49 = vld [vmem:[#allocation67_spill] sm:$0xff] }
  0xde   : > { %5974 = vmatpush3.bf16.xpose.msra.mxu0 %v10442_v5  ;;  %5784 = vmatprep.subr.bf16.mxu1 %v10443_v2  ;;  %v10451_v34 = vpack.c.bf16 %v10352_v11, %v10450_v49  ;;  %v10452_v5 = vld [vmem:[#allocation110_spill] sm:$0xff]  ;;  %v10454_v2 = vld [vmem:[#allocation60_spill] sm:$0xff] }
  0xdf   : > { %5976 = vmatprep.subr.bf16.mxu0 %v10444_v13  ;;  %v10453_v53 = vpack.c.bf16 %v7796_v10, %v10452_v5  ;;  %v10455_v47 = vand.u32 4294901760, %v10454_v2  ;;  %v10457_v13 = vand.u32 4294901760, %v10456_v30  ;;  %v10463_v11 = vld [vmem:[#allocation22_spill] sm:$0xff]  ;;  %v10466_v10 = vld [vmem:[#allocation65_spill] sm:$0xff] }
  0xe0   : > { %v10467_v2 = vand.u32 4294901760, %v10466_v10  ;;  %v8138_v10 = vsub.f32 %v7993_v21, %v8001_v61  ;;  %v10480_v21 = vld [vmem:[#allocation16_spill] sm:$0xff]  ;;  %v10520_v61 = vld [vmem:[#allocation73_spill] sm:$0xff] }
  0xe1   : > { %v8106_v9 = vpack.c.bf16 %v10457_v13, %v10455_v47  ;;  %v10468_v47 = vld [vmem:[#allocation72_spill] sm:$0xff]  ;;  %v10470_v13 = vld [vmem:[#allocation75_spill] sm:$0xff] }
  0xe2   : > { %v10469_v30 = vand.u32 4294901760, %v10468_v47  ;;  %v10471_v49 = vand.u32 4294901760, %v10470_v13  ;;  %v10481_v47 = vld [vmem:[#allocation80_spill] sm:$0xff]  ;;  %v10483_v13 = vld [vmem:[#allocation81_spill] sm:$0xff] }
  0xe5   : > { %5786 = vmatpush3.bf16.xpose.msra.mxu1 %v10446_v35  ;;  %v10459_v35 = vld [vmem:[#allocation70_spill] sm:$0xff] }
  0xe6   : > { %5978 = vmatpush3.bf16.xpose.msra.mxu0 %v10449_v42  ;;  %5788 = vmatprep.subr.bf16.mxu1 %v10451_v34  ;;  %v10460_v7 = vpack.c.bf16 %v10458_v31, %v10459_v35  ;;  %v10461_v42 = vld [vmem:[#allocation114_spill] sm:$0xff]  ;;  %v10464_v34 = vld [vmem:[#allocation64_spill] sm:$0xff]  ;;  %v8126_v31 = vpack.c.bf16 %v10471_v49, %v10469_v30  ;;  %v10474_v49 = vld [vmem:[#allocation15_spill] sm:$0xff]  ;;  %v10482_v30 = vand.u32 4294901760, %v10481_v47 }
  0xe7   : > { %5980 = vmatprep.subr.bf16.mxu0 %v10453_v53  ;;  %v10462_v32 = vpack.c.bf16 %v7847_v8, %v10461_v42  ;;  %v10465_v53 = vand.u32 4294901760, %v10464_v34  ;;  %v10477_v34 = vld [vmem:[#allocation79_spill] sm:$0xff] }
  0xe8   : > { %v10491_v47 = vld [vmem:[#allocation83_spill] sm:$0xff] }
  0xe9   : > { %v8120_v5 = vpack.c.bf16 %v10467_v2, %v10465_v53  ;;  %v10478_v53 = vand.u32 4294901760, %v10477_v34  ;;  %v10487_v34 = vld [vmem:[#allocation35_spill] sm:$0xff] }
  0xed   : > { %5790 = vmatpush3.bf16.xpose.msra.mxu1 %v10460_v7  ;;  %v8130_v7 = vsub.f32 %v7982_v48, %v7996_v23  ;;  %v10475_v48 = vld [vmem:[#allocation78_spill] sm:$0xff] }
  0xee   : > { %5982 = vmatpush3.bf16.xpose.msra.mxu0 %v10462_v32  ;;  %5792 = vmatprep.subr.bf16.mxu1 %v10463_v11  ;;  %v10472_v11 = vld [vmem:[#allocation25_spill] sm:$0xff]  ;;  %v10473_v32 = vld [vmem:[#allocation26_spill] sm:$0xff] }
  0xef   : > { %5984 = vmatprep.subr.bf16.mxu0 %v8106_v9 }
  0xf4   : > { %5320 = vmatmul.mubr.f32.vlgmr.msra.gmra.mrb[0].mxu1 %v10431_v4  ;;  %v10476_v4 = vand.u32 4294901760, %v10475_v48  ;;  %v10486_v48 = vld [vmem:[#allocation33_spill] sm:$0xff] }
  0xf5   : > { %5568 = vmatmul.mubr.f32.vlgmr.msra.gmra.mrb[10].mxu0 %v8029_v46  ;;  %5794 = vmatpush3.bf16.xpose.msra.mxu1 %v10472_v11  ;;  %v10484_v11 = vand.u32 4294901760, %v10483_v13 }
  0xf6   : > { %5986 = vmatpush3.bf16.xpose.msra.mxu0 %v8120_v5  ;;  %5796 = vmatprep.subr.bf16.mxu1 %v10473_v32  ;;  %v8150_v2 = vpack.c.bf16 %v10478_v53, %v10476_v4  ;;  %v8169_v4 = vand.u32 4294901760, %v8029_v46  ;;  %v10488_v53 = vld [vmem:[#allocation21_spill] sm:$0xff]  ;;  %v10498_v46 = vld [vmem:[#allocation18_spill] sm:$0xff] }
  0xf7   : > { %5988 = vmatprep.subr.bf16.mxu0 %v8126_v31  ;;  %5321 = vmatprep.mubr.f32.mxu1 %v10474_v49  ;;  %v8158_v32 = vpack.c.bf16 %v10484_v11, %v10482_v30  ;;  %v10492_v30 = vand.u32 4294901760, %v10491_v47  ;;  %v10494_v11 = vld [vmem:[#allocation24_spill] sm:$0xff]  ;;  %v10501_v47 = vld [vmem:[#allocation45_spill] sm:$0xff] }
  0xf8   : > { %5569 = vmatprep.mubr.f32.mxu0 %v8130_v7  ;;  %5322 = vmatmul.mubr.f32.gmra.mrb[2].mxu1 %v10474_v49  ;;  %10479 = vst [vmem:[#allocation90_spill] sm:$0xff] %v8150_v2  ;;  %v8162_v49 = vsub.f32 %v8011_v55, %v8020_v3  ;;  %v10489_v55 = vld [vmem:[#allocation82_spill] sm:$0xff]  ;;  %v10503_v3 = vld [vmem:[#allocation48_spill] sm:$0xff] }
  0xf9   : > { %5570 = vmatmul.mubr.f32.gmra.mrb[12].mxu0 %v8130_v7  ;;  %5323 = vmatprep.mubr.f32.mxu1 %v10480_v21  ;;  %10485 = vst [vmem:[#allocation91_spill] sm:$0xff] %v8158_v32 }
  0xfa   : > { %5571 = vmatprep.mubr.f32.mxu0 %v8138_v10 }
  0xfc   : > { %5324 = vmatmul.mubr.f32.gmra.mrb[4].mxu1 %v10480_v21  ;;  %v10490_v21 = vand.u32 4294901760, %v10489_v55  ;;  %v10499_v55 = vld [vmem:[#allocation43_spill] sm:$0xff] }
  0xfd   : > { %5572 = vmatmul.mubr.f32.gmra.mrb[14].mxu0 %v8138_v10  ;;  %5798 = vmatpush3.bf16.xpose.msra.mxu1 %v10486_v48  ;;  %v10495_v48 = vld [vmem:[#allocation40_spill] sm:$0xff] }
  0xfe   : > { %5990 = vmatpush3.bf16.xpose.msra.mxu0 %v8150_v2  ;;  %5800 = vmatprep.subr.bf16.mxu1 %v10487_v34  ;;  %v8181_v13 = vpack.c.bf16 %v10492_v30, %v10490_v21  ;;  %v10496_v34 = vld [vmem:[#allocation41_spill] sm:$0xff]  ;;  %v10500_v21 = vld [vmem:[#allocation42_spill] sm:$0xff]  ;;  %v10502_v30 = vld [vmem:[#allocation44_spill] sm:$0xff] }
  0xff   : > { %5992 = vmatprep.subr.bf16.mxu0 %v8158_v32  ;;  %5325 = vmatprep.mubr.f32.mxu1 %v10488_v53  ;;  %v10509_v32 = vld [vmem:[#allocation54_spill] sm:$0xff] }
 0x100   : > { %5573 = vmatprep.mubr.f32.mxu0 %v8162_v49  ;;  %5326 = vmatmul.mubr.f32.gmra.mrb[6].mxu1 %v10488_v53  ;;  %10493 = vst [vmem:[#allocation92_spill] sm:$0xff] %v8181_v13  ;;  %v10497_v53 = vld [vmem:[#allocation86_spill] sm:$0xff] }
 0x101   : > { %5574 = vmatmul.mubr.f32.gmra.mrb[16].mxu0 %v8162_v49  ;;  %5327 = vmatprep.mubr.f32.mxu1 %v10494_v11 }
 0x102   : > { %5607 = vmatprep.mubr.f32.mxu0 %v8169_v4 }
 0x104   : > { %5328 = vmatmul.mubr.f32.gmra.mrb[8].mxu1 %v10494_v11  ;;  %v10504_v11 = vld [vmem:[#allocation46_spill] sm:$0xff] }
 0x105   : > { %5802 = vmatpush3.bf16.xpose.msra.mxu1 %v10495_v48  ;;  %5361 = vmatprep.mubr.f32.mxu1 %v10498_v46  ;;  %v10505_v48 = vld [vmem:[#allocation49_spill] sm:$0xff] }
 0x106   : > { %5994 = vmatpush3.bf16.xpose.msra.mxu0 %v8181_v13  ;;  %5804 = vmatprep.subr.bf16.mxu1 %v10496_v34  ;;  %v10506_v13 = vld [vmem:[#allocation50_spill] sm:$0xff]  ;;  %v10507_v34 = vld [vmem:[#allocation51_spill] sm:$0xff] }
 0x107   : > { %5996 = vmatprep.subr.bf16.mxu0 %v10497_v53  ;;  %v10508_v53 = vld [vmem:[#allocation52_spill] sm:$0xff] }
 0x10d   : > { %5806 = vmatpush3.bf16.xpose.msra.mxu1 %v10499_v55  ;;  %v10510_v55 = vld [vmem:[#allocation58_spill] sm:$0xff] }
 0x10e   : > { %5998 = vmatpush3.bf16.xpose.msra.mxu0 %v10500_v21  ;;  %5808 = vmatprep.subr.bf16.mxu1 %v10501_v47  ;;  %v10511_v47 = vld [vmem:[#allocation62_spill] sm:$0xff] }
 0x10f   : > { %6000 = vmatprep.subr.bf16.mxu0 %v10502_v30 }
 0x115   : > { %5810 = vmatpush3.bf16.xpose.msra.mxu1 %v10503_v3  ;;  %v10512_v3 = vld [vmem:[#allocation27_spill] sm:$0xff] }
 0x116   : > { %6002 = vmatpush3.bf16.xpose.msra.mxu0 %v10504_v11  ;;  %5812 = vmatprep.subr.bf16.mxu1 %v10505_v48  ;;  %v10513_v48 = vand.u32 4294901760, %v10512_v3  ;;  %v10514_v11 = vld [vmem:[#allocation28_spill] sm:$0xff]  ;;  %v10523_v3 = vand.u32 4294901760, %v10407_v15  ;;  %v10532_v15 = vld [vmem:[#allocation19_spill] sm:$0xff] }
 0x117   : > { %6004 = vmatprep.subr.bf16.mxu0 %v10506_v13  ;;  %v10515_v13 = vand.u32 4294901760, %v10514_v11 }
 0x119   : > { %v5823_v30 = vpack.c.bf16 %v10515_v13, %v10513_v48  ;;  %v10524_v13 = vand.u32 4294901760, %v10408_v40  ;;  %v10525_v48 = vand.u32 4294901760, %v10409_v0  ;;  %v10534_v40 = vld [vmem:[#allocation37_spill] sm:$0xff] }
 0x11b   : > { %v6017_v11 = vpack.c.bf16 %v10524_v13, %v10523_v3  ;;  %v10538_v3 = vld [vmem:[#allocation20_spill] sm:$0xff]  ;;  %v10539_v13 = vld [vmem:[#allocation38_spill] sm:$0xff] }
 0x11d   : > { %5814 = vmatpush3.bf16.xpose.msra.mxu1 %v10507_v34  ;;  %v10516_v34 = vld [vmem:[#allocation63_spill] sm:$0xff] }
 0x11e   : > { %6006 = vmatpush3.bf16.xpose.msra.mxu0 %v10508_v53  ;;  %5816 = vmatprep.subr.bf16.mxu1 %v10509_v32  ;;  %v10517_v21 = vand.u32 4294901760, %v10516_v34  ;;  %v10518_v53 = vld [vmem:[#allocation66_spill] sm:$0xff] }
 0x11f   : > { %6008 = vmatprep.subr.bf16.mxu0 %v7955_v17  ;;  %v10519_v2 = vand.u32 4294901760, %v10518_v53  ;;  %v10526_v53 = vld [vmem:[#allocation34_spill] sm:$0xff] }
 0x121   : > { %v6015_v32 = vpack.c.bf16 %v10519_v2, %v10517_v21  ;;  %v10527_v2 = vand.u32 4294901760, %v10526_v53 }
 0x123   : > { %v5827_v21 = vpack.c.bf16 %v10527_v2, %v10525_v48  ;;  %v10541_v48 = vld [vmem:[#allocation39_spill] sm:$0xff] }
 0x124   : > { %v10542_v53 = vand.u32 4294901760, %v10541_v48 }
 0x125   : > { %5818 = vmatpush3.bf16.xpose.msra.mxu1 %v10510_v55  ;;  %v10521_v55 = vand.u32 4294901760, %v10405_v44  ;;  %v8234_v44 = vand.u32 4294901760, %v8130_v7 }
 0x126   : > { %6010 = vmatpush3.bf16.xpose.msra.mxu0 %v7961_v37  ;;  %5820 = vmatprep.subr.bf16.mxu1 %v10511_v47  ;;  %v10522_v47 = vand.u32 4294901760, %v10406_v12  ;;  %v8239_v12 = vand.u32 4294901760, %v8138_v10 }
 0x127   : > { %6012 = vmatprep.subr.bf16.mxu0 %v7967_v33 }
 0x128   : > { %v5825_v33 = vpack.c.bf16 %v10522_v47, %v10521_v55  ;;  %v10537_v55 = vand.u32 4294901760, %v7321_v36  ;;  %v2974_v36 = vld [vmem:[%s8274_s30] sm:$0xff] }
 0x12d   : > { %5822 = vmatpush3.bf16.xpose.msra.mxu1 %v10520_v61  ;;  %v10528_v61 = vld [vmem:[#allocation76_spill] sm:$0xff] }
 0x12e   : > { %6014 = vmatpush3.bf16.xpose.msra.mxu0 %v7973_v51  ;;  %5824 = vmatprep.subr.bf16.mxu1 %v5823_v30  ;;  %v10529_v34 = vand.u32 4294901760, %v10528_v61  ;;  %v10530_v51 = vld [vmem:[#allocation77_spill] sm:$0xff] }
 0x12f   : > { %6016 = vmatprep.subr.bf16.mxu0 %v6015_v32  ;;  %v10531_v30 = vand.u32 4294901760, %v10530_v51  ;;  %v10533_v51 = vand.u32 4294901760, %v10415_v26  ;;  %v10544_v26 = vand.u32 4294901760, %v7348_v59  ;;  %v10548_v59 = vand.u32 4294901760, %v7065_v63 }
 0x131   : > { %v6019_v32 = vpack.c.bf16 %v10531_v30, %v10529_v34  ;;  %v8264_v34 = vand.u32 4294901760, %v8162_v49 }
 0x134   : > { %5362 = vmatmul.mubr.f32.vlgmr.msra.gmra.mrb[0].mxu1 %v10498_v46  ;;  %v10536_v46 = vand.u32 4294901760, %v7316_v14  ;;  %v10546_v14 = vld [vmem:[#allocation23_spill] sm:$0xff] }
 0x135   : > { %5608 = vmatmul.mubr.f32.vlgmr.msra.gmra.mrb[10].mxu0 %v8169_v4  ;;  %5826 = vmatpush3.bf16.xpose.msra.mxu1 %v5825_v33  ;;  %v10535_v33 = vand.u32 4294901760, %v10534_v40  ;;  %v10551_v40 = vld [vmem:[#allocation29_spill] sm:$0xff] }
 0x136   : > { %6018 = vmatpush3.bf16.xpose.msra.mxu0 %v6017_v11  ;;  %5828 = vmatprep.subr.bf16.mxu1 %v5827_v21  ;;  %v6021_v47 = vpack.c.bf16 %v10537_v55, %v10536_v46  ;;  %v10540_v11 = vand.u32 4294901760, %v10539_v13  ;;  %v10543_v21 = vand.u32 4294901760, %v7343_v1  ;;  %v10547_v1 = vand.u32 4294901760, %v7056_v56 }
 0x137   : > { %6020 = vmatprep.subr.bf16.mxu0 %v6019_v32  ;;  %5363 = vmatprep.mubr.f32.mxu1 %v10532_v15  ;;  %v5829_v0 = vpack.c.bf16 %v10535_v33, %v10533_v51  ;;  %v10549_v32 = vand.u32 4294901760, %v7397_v27  ;;  %v10552_v33 = vand.u32 4294901760, %v7069_v6  ;;  %v10554_v55 = vand.u32 4294901760, %v7432_v22  ;;  %v2975_v6 = vld [vmem:[%s8274_s30 + $0x8] sm:$0xff]  ;;  %v10556_v22 = vld [vmem:[#allocation10_spill] sm:$0xff] }
 0x138   : > { %5609 = vmatprep.mubr.f32.mxu0 %v8234_v44  ;;  %5364 = vmatmul.mubr.f32.gmra.mrb[2].mxu1 %v10532_v15  ;;  %v5831_v2 = vpack.c.bf16 %v10542_v53, %v10540_v11  ;;  %v6023_v61 = vpack.c.bf16 %v10544_v26, %v10543_v21  ;;  %v5833_v30 = vpack.c.bf16 %v10548_v59, %v10547_v1  ;;  %v10550_v15 = vand.u32 4294901760, %v7403_v41  ;;  %v2942_v41 = vld [vmem:[%s9900_s6] sm:$0xff] }
 0x139   : > { %5610 = vmatmul.mubr.f32.gmra.mrb[12].mxu0 %v8234_v44  ;;  %5365 = vmatprep.mubr.f32.mxu1 %v10538_v3  ;;  %v10555_v56 = vand.u32 4294901760, %v10342_v43  ;;  %v10557_v13 = vand.u32 4294901760, %v10343_v38  ;;  %v10558_v11 = vand.u32 4294901760, %v10344_v18  ;;  %v10559_v53 = vand.u32 4294901760, %v7476_v39  ;;  %v2944_v38 = vld [vmem:[%s9900_s6 + $0x10] sm:$0xff]  ;;  %v10563_v26 = vld [vmem:[#allocation47_spill] sm:$0xff] }
 0x13a   : > { %5611 = vmatprep.mubr.f32.mxu0 %v8239_v12  ;;  %v6025_v51 = vpack.c.bf16 %v10550_v15, %v10549_v32  ;;  %v10562_v18 = vand.u32 4294901760, %v10345_v25  ;;  %v3006_v25 = vld [vmem:[%s8328_s15] sm:$0xff]  ;;  %v10567_v15 = vand.u32 4294901760, %v7096_v57 }
 0x13b   : > { %v6027_v63 = vpack.c.bf16 %v10555_v56, %v10554_v55  ;;  %v5837_v48 = vpack.c.bf16 %v10558_v11, %v10557_v13  ;;  %v2976_v55 = vld [vmem:[%s8274_s30 + $0x10] sm:$0xff]  ;;  %v10571_v56 = vand.u32 4294901760, %v7120_v58  ;;  %v2899_v11 = vld [vmem:[#allocation2] sm:$0x1] }
 0x13c   : > { %5366 = vmatmul.mubr.f32.gmra.mrb[4].mxu1 %v10538_v3  ;;  %v2945_v3 = vld [vmem:[%s9900_s6 + $0x18] sm:$0xff] }
 0x13d   : > { %5612 = vmatmul.mubr.f32.gmra.mrb[14].mxu0 %v8239_v12  ;;  %5830 = vmatpush3.bf16.xpose.msra.mxu1 %v5829_v0  ;;  %v10553_v0 = vand.u32 4294901760, %v7071_v20  ;;  %v2943_v20 = vld [vmem:[%s9900_s6 + $0x8] sm:$0xff] }
 0x13e   : > { %6022 = vmatpush3.bf16.xpose.msra.mxu0 %v6021_v47  ;;  %5832 = vmatprep.subr.bf16.mxu1 %v5831_v2  ;;  %v6747_v47 = vmov 0   ;;  %v10560_v2 = vand.u32 4294901760, %v7493_v50  ;;  %v10565_v50 = vand.u32 4294901760, %v7518_v54 }
 0x13f   : > { %6024 = vmatprep.subr.bf16.mxu0 %v6023_v61  ;;  %5367 = vmatprep.mubr.f32.mxu1 %v10546_v14  ;;  %v5835_v46 = vpack.c.bf16 %v10553_v0, %v10552_v33  ;;  %v10564_v61 = vand.u32 4294901760, %v10563_v26  ;;  %v10569_v33 = vand.u32 4294901760, %v7566_v62  ;;  %v10570_v0 = vand.u32 4294901760, %v7577_v19  ;;  %v3009_v62 = vld [vmem:[%s8328_s15 + $0x18] sm:$0xff]  ;;  %v3008_v19 = vld [vmem:[%s8328_s15 + $0x10] sm:$0xff] }
 0x140   : > { %5613 = vmatprep.mubr.f32.mxu0 %v8264_v34  ;;  %5368 = vmatmul.mubr.f32.gmra.mrb[6].mxu1 %v10546_v14  ;;  %v6029_v21 = vpack.c.bf16 %v10560_v2, %v10559_v53  ;;  %v10566_v14 = vand.u32 4294901760, %v7528_v45  ;;  %v2977_v45 = vld [vmem:[%s8274_s30 + $0x18] sm:$0xff]  ;;  %v10578_v53 = vld [vmem:[#allocation53_spill] sm:$0xff]  ;;  %s8487_s30 = sand.u32 1, %s6657_s20  }
 0x141   : > { %5614 = vmatmul.mubr.f32.gmra.mrb[16].mxu0 %v8264_v34  ;;  %5369 = vmatprep.mubr.f32.mxu1 %v10551_v40  ;;  %v5839_v39 = vpack.c.bf16 %v10564_v61, %v10562_v18  ;;  %v10579_v2 = vand.u32 4294901760, %v10578_v53  ;;  %v10581_v18 = vld [vmem:[#allocation100_spill] sm:$0xff]  ;;  %s5119_s24 = sshll.u32 %s8487_s30, 1  ;;  %s10147_s18 = scalar_lea.sflag [#allocation4], %s8487_s30 }
 0x142   : > { %5647 = vmatprep.mubr.f32.mxu0 %v7851_v28  ;;  %6482 = vset.pattern.permute.xlu1 %v6747_v47  ;;  %v10582_v26 = vand.u32 4294901760, %v10581_v18  ;;  %s8516_s7 = scalar_lea.vmem [#allocation3], %s5119_s24 }
 0x143   : > { %6481 = vset.pattern.permute.xlu0 %v6747_v47  ;;  %2980 = vperm.xlu1 %6482, %v2974_v36   ;;  %v6031_v36 = vpack.c.bf16 %v10566_v14, %v10565_v50  ;;  %v10583_v50 = vld [vmem:[#allocation55_spill] sm:$0xff] }
 0x144   : > { %2948 = vperm.xlu0 %6481, %v2942_v41   ;;  %5370 = vmatmul.mubr.f32.gmra.mrb[8].mxu1 %v10551_v40  ;;  %v10573_v41 = vld [vmem:[#allocation95_spill] sm:$0xff]  ;;  %v10584_v14 = vand.u32 4294901760, %v10583_v50  ;;  %v10618_v50 = vld [vmem:[#allocation89_spill] sm:$0xff] }
 0x145   : > { %5834 = vmatpush3.bf16.xpose.msra.mxu1 %v5833_v30  ;;  %5403 = vmatprep.mubr.f32.mxu1 %v10556_v22  ;;  %v3007_v30 = vld [vmem:[%s8328_s15 + $0x8] sm:$0xff]  ;;  %s5120_s15 = sshll.u32 %s8487_s30, 3 }
 0x146   : > { %6026 = vmatpush3.bf16.xpose.msra.mxu0 %v6025_v51  ;;  %5836 = vmatprep.subr.bf16.mxu1 %v5835_v46  ;;  %v10568_v51 = vand.u32 4294901760, %v7112_v60  ;;  %v6033_v46 = vpack.c.bf16 %v10570_v0, %v10569_v33  ;;  %v10593_v0 = vld [vmem:[#allocation59_spill] sm:$0xff]  ;;  %s9413_s16 = scalar_lea.vmem [#allocation5], %s5120_s15  }
 0x147   : > { %6028 = vmatprep.subr.bf16.mxu0 %v6027_v63  ;;  %v8307_v27 = vpop.f32.mrb[0].mxu0  ;;  %2985 = vperm.xlu1 %6482, %v2975_v6   ;;  %v10572_v63 = vand.u32 4294901760, %v10347_v16  ;;  %v10574_v6 = vand.u32 4294901760, %v10573_v41 }
 0x148   : > { %v8310_v43 = vpop.f32.mrb[1].mxu0  ;;  %2953 = vperm.xlu0 %6481, %v2943_v20   ;;  %v5841_v40 = vpack.c.bf16 %v10568_v51, %v10567_v15  ;;  %v10575_v20 = vld [vmem:[#allocation96_spill] sm:$0xff] }
 0x149   : > { %v5843_v47 = vpack.c.bf16 %v10572_v63, %v10571_v56  ;;  %v10595_v56 = vand.u32 4294901760, %v10448_v24  ;;  %v10596_v63 = vld [vmem:[#allocation107_spill] sm:$0xff]  ;;  %v10607_v24 = vld [vmem:[#allocation74_spill] sm:$0xff] }
 0x14b   : > { %v8341_v1 = vpop.f32.mrb[2].mxu0  ;;  %2963 = vperm.xlu1 %6482, %v2945_v3   ;;  %v10576_v3 = vand.u32 4294901760, %v10575_v20 }
 0x14c   : > { %v8343_v59 = vpop.f32.mrb[3].mxu0  ;;  %2958 = vperm.xlu0 %6481, %v2944_v38   ;;  %v10580_v38 = vand.u32 4294901760, %v7657_v52  ;;  %v10591_v52 = vld [vmem:[#allocation57_spill] sm:$0xff] }
 0x14d   : > { %5838 = vmatpush3.bf16.xpose.msra.mxu1 %v5837_v48  ;;  %v6035_v13 = vpack.c.bf16 %v10576_v3, %v10574_v6  ;;  %v10577_v48 = vand.u32 4294901760, %v10348_v29  ;;  %v10589_v29 = vld [vmem:[#allocation104_spill] sm:$0xff]  ;;  %v10592_v33 = vand.u32 4294901760, %v10591_v52  ;;  %v10598_v6 = vld [vmem:[#allocation67_spill] sm:$0xff]  ;;  %v10600_v3 = vld [vmem:[#allocation69_spill] sm:$0xff] }
 0x14e   : > { %6030 = vmatpush3.bf16.xpose.msra.mxu0 %v6029_v21  ;;  %5840 = vmatprep.subr.bf16.mxu1 %v5839_v39  ;;  %v6037_v61 = vpack.c.bf16 %v10582_v26, %v10580_v38  ;;  %v3871_v39 = vld [vmem:[%s9903_s9] sm:$0x7]  ;;  %v10590_v51 = vand.u32 4294901760, %v10589_v29  ;;  %v10599_v20 = vand.u32 4294901760, %v10598_v6  ;;  %v10608_v38 = vand.u32 4294901760, %v10607_v24  ;;  %v10624_v29 = vld [vmem:[#allocation46_spill] sm:$0xff] }
 0x14f   : > { %6032 = vmatprep.subr.bf16.mxu0 %v6031_v36  ;;  %v8347_v32 = vpop.f32.mrb[4].mxu0  ;;  %3017 = vperm.xlu1 %6482, %v3007_v30   ;;  %v5845_v21 = vpack.c.bf16 %v10579_v2, %v10577_v48  ;;  %v10585_v36 = vld [vmem:[#allocation56_spill] sm:$0xff]  ;;  %v10604_v48 = vld [vmem:[#allocation111_spill] sm:$0xff]  ;;  %v10609_v26 = vand.u32 4294901760, %v10461_v42  ;;  %v10615_v42 = vld [vmem:[#allocation13_spill] sm:$0xff] }
 0x150   : > { %v8349_v54 = vpop.f32.mrb[5].mxu0  ;;  %3012 = vperm.xlu0 %6481, %v3006_v25   ;;  %v10586_v30 = vand.u32 4294901760, %v10585_v36  ;;  %v10605_v53 = vand.u32 4294901760, %v10604_v48  ;;  %v10619_v36 = vld [vmem:[#allocation17_spill] sm:$0xff]  ;;  %v10627_v52 = vld [vmem:[#allocation84_spill] sm:$0xff] }
 0x152   : > { %v5847_v25 = vpack.c.bf16 %v10586_v30, %v10584_v14  ;;  %v1997_v14 = vsub.f32 %v10618_v50, %v8169_v4  ;;  %v10622_v4 = vld [vmem:[#allocation42_spill] sm:$0xff] }
 0x153   : > { %v8369_v57 = vpop.f32.mrb[6].mxu0  ;;  %2995 = vperm.xlu1 %6482, %v2977_v45   ;;  %v10587_v45 = vld [vmem:[#allocation102_spill] sm:$0xff] }
 0x154   : > { %v8371_v60 = vpop.f32.mrb[7].mxu0  ;;  %2990 = vperm.xlu0 %6481, %v2976_v55   ;;  %v10588_v15 = vand.u32 4294901760, %v10587_v45  ;;  %v1998_v30 = vand.u32 4294901760, %v1997_v14  ;;  %v10621_v45 = vld [vmem:[#allocation86_spill] sm:$0xff] }
 0x155   : > { %5842 = vmatpush3.bf16.xpose.msra.mxu1 %v5841_v40 }
 0x156   : > { %6034 = vmatpush3.bf16.xpose.msra.mxu0 %v6033_v46  ;;  %5844 = vmatprep.subr.bf16.mxu1 %v5843_v47  ;;  %v6039_v40 = vpack.c.bf16 %v10590_v51, %v10588_v15  ;;  %v10594_v46 = vand.u32 4294901760, %v10593_v0  ;;  %v10597_v47 = vand.u32 4294901760, %v10596_v63  ;;  %v10623_v15 = vld [vmem:[#allocation44_spill] sm:$0xff]  ;;  %v10625_v51 = vld [vmem:[#allocation50_spill] sm:$0xff]  ;;  %v2008_v0 = vsub.f32 %v8130_v7, %v8234_v44 }
 0x157   : > { %6036 = vmatprep.subr.bf16.mxu0 %v6035_v13  ;;  %v8375_v58 = vpop.f32.mrb[8].mxu0  ;;  %3027 = vperm.xlu1 %6482, %v3009_v62   ;;  %v10601_v13 = vand.u32 4294901760, %v10600_v3 }
 0x158   : > { %v8377_v16 = vpop.f32.mrb[9].mxu0  ;;  %3022 = vperm.xlu0 %6481, %v3008_v19   ;;  %v5849_v55 = vpack.c.bf16 %v10594_v46, %v10592_v33  ;;  %v6041_v41 = vpack.c.bf16 %v10597_v47, %v10595_v56  ;;  %v10602_v19 = vld [vmem:[#allocation110_spill] sm:$0xff]  ;;  %v10628_v33 = vld [vmem:[#allocation85_spill] sm:$0xff]  ;;  %v2009_v46 = vand.u32 4294901760, %v2008_v0  ;;  %v2905_v47 = vlaneseq }
 0x159   : > { %v5851_v62 = vpack.c.bf16 %v10601_v13, %v10599_v20 }
 0x15a   : > { %vm2931_vm2 = vcmp.lt.s32.totalorder %v2905_v47, 256 }
 0x15b   : > { %2902 = vperm.xlu1 %6482, %v2899_v11   ;;  %v10603_v11 = vand.u32 4294901760, %v10602_v19 }
 0x15c   : > { %3874 = vperm.xlu0 %6481, %v3871_v39  }
 0x15d   : > { %5846 = vmatpush3.bf16.xpose.msra.mxu1 %v5845_v21  ;;  %v6043_v2 = vpack.c.bf16 %v10605_v53, %v10603_v11  ;;  %v10606_v21 = vand.u32 4294901760, %v10459_v35  ;;  %v10611_v35 = vld [vmem:[#allocation11_spill] sm:$0xff] }
 0x15e   : > { %6038 = vmatpush3.bf16.xpose.msra.mxu0 %v6037_v61  ;;  %5848 = vmatprep.subr.bf16.mxu1 %v5847_v25  ;;  %v10610_v61 = vand.u32 4294901760, %v7847_v8  ;;  %v10613_v8 = vld [vmem:[#allocation87_spill] sm:$0xff]  ;;  %v10620_v25 = vld [vmem:[#allocation92_spill] sm:$0xff] }
 0x15f   : > { %6040 = vmatprep.subr.bf16.mxu0 %v6039_v40  ;;  %v5853_v18 = vpack.c.bf16 %v10608_v38, %v10606_v21  ;;  %v10626_v40 = vld [vmem:[#allocation52_spill] sm:$0xff] }
 0x160   : > { %v6045_v39 = vpack.c.bf16 %v10610_v61, %v10609_v26 }
 0x165   : > { %5850 = vmatpush3.bf16.xpose.msra.mxu1 %v5849_v55  ;;  %v2019_v55 = vsub.f32 %v8138_v10, %v8239_v12 }
 0x166   : > { %6042 = vmatpush3.bf16.xpose.msra.mxu0 %v6041_v41  ;;  %5852 = vmatprep.subr.bf16.mxu1 %v5851_v62  ;;  %v2906_v62 = vshrl.u32 %v2905_v47, 7 }
 0x167   : > { %6044 = vmatprep.subr.bf16.mxu0 %v6043_v2 }
 0x16d   : > { %5854 = vmatpush3.bf16.xpose.msra.mxu1 %v5853_v18 }
 0x16e   : > { %6046 = vmatpush3.bf16.xpose.msra.mxu0 %v6045_v39  ;;  %5888 = vmatprep.subr.bf16.mxu1 %v8106_v9 }
 0x16f   : > { %6048 = vmatprep.subr.bf16.mxu0 %v8106_v9  ;;  %v10612_v9 = vld [vmem:[#allocation12_spill] sm:$0xff] }
 0x174   : > { %5404 = vmatmul.mubr.f32.vlgmr.msra.gmra.mrb[0].mxu1 %v10556_v22  ;;  %v10617_v22 = vld [vmem:[#allocation88_spill] sm:$0xff] }
 0x175   : > { %5648 = vmatmul.mubr.f32.vlgmr.msra.gmra.mrb[10].mxu0 %v7851_v28  ;;  %5890 = vmatpush3.bf16.xpose.msra.mxu1 %v8120_v5 }
 0x176   : > { %6050 = vmatpush3.bf16.xpose.msra.mxu0 %v8120_v5  ;;  %5405 = vmatprep.mubr.f32.mxu1 %v10611_v35  ;;  %v10614_v5 = vld [vmem:[#allocation90_spill] sm:$0xff] }
 0x177   : > { %5892 = vmatprep.subr.bf16.mxu1 %v8126_v31  ;;  %6052 = vmatprep.subr.bf16.mxu0 %v8126_v31  ;;  %v10616_v31 = vld [vmem:[#allocation91_spill] sm:$0xff] }
 0x178   : > { %5649 = vmatprep.mubr.f32.mxu0 %v7996_v23  ;;  %5406 = vmatmul.mubr.f32.gmra.mrb[2].mxu1 %v10611_v35 }
 0x179   : > { %5650 = vmatmul.mubr.f32.gmra.mrb[12].mxu0 %v7996_v23  ;;  %5407 = vmatprep.mubr.f32.mxu1 %v10612_v9 }
 0x17a   : > { %5651 = vmatprep.mubr.f32.mxu0 %v10613_v8 }
 0x17c   : > { %5408 = vmatmul.mubr.f32.gmra.mrb[4].mxu1 %v10612_v9 }
 0x17d   : > { %5652 = vmatmul.mubr.f32.gmra.mrb[14].mxu0 %v10613_v8  ;;  %5894 = vmatpush3.bf16.xpose.msra.mxu1 %v10614_v5 }
 0x17e   : > { %6054 = vmatpush3.bf16.xpose.msra.mxu0 %v10614_v5  ;;  %5409 = vmatprep.mubr.f32.mxu1 %v10615_v42 }
 0x17f   : > { %5896 = vmatprep.subr.bf16.mxu1 %v10616_v31  ;;  %6056 = vmatprep.subr.bf16.mxu0 %v10616_v31 }
 0x180   : > { %5653 = vmatprep.mubr.f32.mxu0 %v10617_v22  ;;  %5410 = vmatmul.mubr.f32.gmra.mrb[6].mxu1 %v10615_v42 }
 0x181   : > { %5654 = vmatmul.mubr.f32.gmra.mrb[16].mxu0 %v10617_v22  ;;  %5411 = vmatprep.mubr.f32.mxu1 %v10619_v36 }
 0x182   : > { %5687 = vmatprep.mubr.f32.mxu0 %v7851_v28 }
 0x184   : > { %5412 = vmatmul.mubr.f32.gmra.mrb[8].mxu1 %v10619_v36 }
 0x185   : > { %5898 = vmatpush3.bf16.xpose.msra.mxu1 %v10620_v25  ;;  %5487 = vmatprep.mubr.f32.mxu1 %v1998_v30 }
 0x186   : > { %6058 = vmatpush3.bf16.xpose.msra.mxu0 %v10620_v25  ;;  %5900 = vmatprep.subr.bf16.mxu1 %v10621_v45 }
 0x187   : > { %6060 = vmatprep.subr.bf16.mxu0 %v10621_v45 }
 0x18d   : > { %5902 = vmatpush3.bf16.xpose.msra.mxu1 %v10622_v4 }
 0x18e   : > { %6062 = vmatpush3.bf16.xpose.msra.mxu0 %v10622_v4  ;;  %5904 = vmatprep.subr.bf16.mxu1 %v10623_v15 }
 0x18f   : > { %6064 = vmatprep.subr.bf16.mxu0 %v10623_v15 }
 0x195   : > { %5906 = vmatpush3.bf16.xpose.msra.mxu1 %v10624_v29 }
 0x196   : > { %6066 = vmatpush3.bf16.xpose.msra.mxu0 %v10624_v29  ;;  %5908 = vmatprep.subr.bf16.mxu1 %v10625_v51 }
 0x197   : > { %6068 = vmatprep.subr.bf16.mxu0 %v10625_v51 }
 0x19d   : > { %5910 = vmatpush3.bf16.xpose.msra.mxu1 %v10626_v40 }
 0x19e   : > { %6070 = vmatpush3.bf16.xpose.msra.mxu0 %v10626_v40  ;;  %5912 = vmatprep.subr.bf16.mxu1 %v7955_v17 }
 0x19f   : > { %6072 = vmatprep.subr.bf16.mxu0 %v7955_v17  ;;  %v2020_v17 = vand.u32 4294901760, %v2019_v55 }
 0x1a5   : > { %5914 = vmatpush3.bf16.xpose.msra.mxu1 %v7961_v37 }
 0x1a6   : > { %6074 = vmatpush3.bf16.xpose.msra.mxu0 %v7961_v37  ;;  %5916 = vmatprep.subr.bf16.mxu1 %v10627_v52  ;;  %v2030_v37 = vsub.f32 %v8162_v49, %v8264_v34 }
 0x1a7   : > { %6076 = vmatprep.subr.bf16.mxu0 %v10627_v52 }
 0x1a8   : > { %v2031_v7 = vand.u32 4294901760, %v2030_v37 }
 0x1ad   : > { %5918 = vmatpush3.bf16.xpose.msra.mxu1 %v10628_v33 }
 0x1ae   : > { %6078 = vmatpush3.bf16.xpose.msra.mxu0 %v10628_v33 }
 0x1b4   : > { %5488 = vmatmul.mubr.f32.vlgmr.msra.gmra.mrb[10].mxu1 %v1998_v30 }
 0x1b5   : > { %5688 = vmatmul.mubr.f32.vlgmr.msra.gmra.mrb[10].mxu0 %v7851_v28  ;;  %5489 = vmatprep.mubr.f32.mxu1 %v2009_v46 }
 0x1b6   : > { %5689 = vmatprep.mubr.f32.mxu0 %v7996_v23 }
 0x1b8   : > { %5490 = vmatmul.mubr.f32.gmra.mrb[12].mxu1 %v2009_v46 }
 0x1b9   : > { %5690 = vmatmul.mubr.f32.gmra.mrb[12].mxu0 %v7996_v23  ;;  %5491 = vmatprep.mubr.f32.mxu1 %v2020_v17 }
 0x1ba   : > { %5691 = vmatprep.mubr.f32.mxu0 %v10613_v8 }
 0x1bc   : > { %5492 = vmatmul.mubr.f32.gmra.mrb[14].mxu1 %v2020_v17 }
 0x1bd   : > { %5692 = vmatmul.mubr.f32.gmra.mrb[14].mxu0 %v10613_v8  ;;  %5493 = vmatprep.mubr.f32.mxu1 %v2031_v7 }
 0x1be   : > { %5693 = vmatprep.mubr.f32.mxu0 %v10617_v22 }
 0x1c0   : > { %5494 = vmatmul.mubr.f32.gmra.mrb[16].mxu1 %v2031_v7 }
 0x1c1   : > { %5694 = vmatmul.mubr.f32.gmra.mrb[16].mxu0 %v10617_v22 }
 0x1c2   : > { %v8489_v28 = vpop.permute.xlu1 %2980 }
 0x1c6   : > { %v8491_v10 = vpop.permute.xlu1 %2985 }
 0x1ca   : > { %v8493_v23 = vpop.permute.xlu1 %2963 }
 0x1ce   : > { %v8495_v49 = vpop.permute.xlu1 %3017 }
 0x1d2   : > { %v8497_v12 = vpop.permute.xlu1 %2995 }
 0x1d6   : > { %v8503_v13 = vpop.permute.xlu1 %3027 }
 0x1da   : > { %v2903_v24 = vpop.permute.xlu1 %2902 }
 0x247   : > { %v1619_v44 = vpop.f32.mrb[0].mxu1 }
 0x248   : > { %v6127_v34 = vadd.f32 %v8307_v27, %v1619_v44  ;;  %v1621_v56 = vpop.f32.mrb[1].mxu1  ;;  %v2907_v27 = vsub.s32 0, %v2906_v62 }
 0x249   : > { %v6130_v63 = vadd.f32 %v8310_v43, %v1621_v56  ;;  %v6748_v43 = vmov 1966171168  }
 0x24a   : > { %v2915_v21 = vunpack.c.l.s4 %v6748_v43  ;;  %v2908_v18 = vrot.slane %v2903_v24, %v2907_v27 }
 0x24b   : > { %v1626_v41 = vpop.f32.mrb[2].mxu1 }
 0x24c   : > { %v6133_v6 = vadd.f32 %v8341_v1, %v1626_v41  ;;  %v1628_v20 = vpop.f32.mrb[3].mxu1  ;;  %v2916_v26 = vunpack.c.0.s8 %v2915_v21 }
 0x24d   : > { %v6136_v3 = vadd.f32 %v8343_v59, %v1628_v20 }
 0x24e   : > { %v2919_v9 = vsub.s32 %v2916_v26, %v2906_v62 }
 0x24f   : > { %v1633_v19 = vpop.f32.mrb[4].mxu1 }
 0x250   : > { %v6139_v11 = vadd.f32 %v8347_v32, %v1633_v19  ;;  %v1635_v48 = vpop.f32.mrb[5].mxu1 }
 0x251   : > { %v6142_v53 = vadd.f32 %v8349_v54, %v1635_v48 }
 0x253   : > { %v1640_v2 = vpop.f32.mrb[6].mxu1 }
 0x254   : > { %v8508_v1 = vadd.f32 %v8369_v57, %v1640_v2  ;;  %v1642_v38 = vpop.f32.mrb[7].mxu1 }
 0x255   : > { %v8511_v59 = vadd.f32 %v8371_v60, %v1642_v38  ;;  %v2949_v60 = vpop.permute.xlu0 %2948 }
 0x257   : > { %v1647_v61 = vpop.f32.mrb[8].mxu1 }
 0x258   : > { %v6151_v32 = vadd.f32 %v8375_v58, %v1647_v61  ;;  %v1649_v39 = vpop.f32.mrb[9].mxu1 }
 0x259   : > { %v6152_v54 = vadd.f32 %v8377_v16, %v1649_v39  ;;  %v2954_v31 = vpop.permute.xlu0 %2953 }
 0x25a   : > { %v2909_v35 = vadd.f32 %v6151_v32, %v2908_v18 }
 0x25b   : > { %v2910_v8 = vadd.f32 %v6152_v54, %v2908_v18 }
 0x25d   : > { %v2913_v5 = vcombine.low %v2909_v35, %v2910_v8  ;;  %v8519_v22 = vpop.permute.xlu0 %2958 }
 0x25f   : > { %v2920_v42 = vrot.slane %v2913_v5, %v2919_v9 }
 0x261   : > { %v2927_v57 = vrot.slane %v2920_v42, %v2919_v9  ;;  %v3013_v46 = vpop.permute.xlu0 %3012 }
 0x263   : > { %2933 = vst.msk [vmem:[%s8516_s7] sm:$0x3] %vm2931_vm2, %v2927_v57 }
 0x287   : > { %v2000_v58 = vpop.f32.mrb[10].mxu1 }
 0x288   : > { %v2873_v50 = vpop.f32.mrb[10].mxu0  ;;  %v6128_v14 = vadd.f32 %v6127_v34, %v2000_v58  ;;  %v2002_v16 = vpop.f32.mrb[11].mxu1 }
 0x289   : > { %v2875_v36 = vpop.f32.mrb[11].mxu0  ;;  %v6131_v30 = vadd.f32 %v6130_v63, %v2002_v16 }
 0x28a   : > { %v6129_v25 = vadd.f32 %v6128_v14, %v2873_v50  ;;  %v10145_v14 = vmov 683565275  }
 0x28b   : > { %v6132_v45 = vadd.f32 %v6131_v30, %v2875_v36  ;;  %v2011_v4 = vpop.f32.mrb[12].mxu1  ;;  %v10133_v36 = vmov 2475754826  }
 0x28c   : > { %v2880_v15 = vpop.f32.mrb[12].mxu0  ;;  %v2966_v29 = vadd.f32 %v6129_v25, %v2949_v60  ;;  %v6134_v51 = vadd.f32 %v6133_v6, %v2011_v4  ;;  %v2013_v40 = vpop.f32.mrb[13].mxu1 }
 0x28d   : > { %v2882_v52 = vpop.f32.mrb[13].mxu0  ;;  %v2967_v33 = vadd.f32 %v6132_v45, %v2949_v60  ;;  %v6137_v0 = vadd.f32 %v6136_v3, %v2013_v40  ;;  %v10131_v45 = vmov 2131351028   ;;  %v10137_v40 = vmov 920167782  }
 0x28e   : > { %v2998_v55 = vmul.f32 %v8489_v28, %v2966_v29  ;;  %v6135_v17 = vadd.f32 %v6134_v51, %v2880_v15  ;;  %v10135_v15 = vmov 2102212464  }
 0x28f   : > { %v6138_v37 = vadd.f32 %v6137_v0, %v2882_v52  ;;  %v2022_v7 = vpop.f32.mrb[14].mxu1  ;;  %v2999_v20 = vmul.f32 %v8489_v28, %v2967_v33  ;;  %v10139_v0 = vmov 1326507024  }
 0x290   : > { %v2887_v44 = vpop.f32.mrb[14].mxu0  ;;  %v8522_v34 = vadd.f32 %v3013_v46, %v2998_v55  ;;  %v2968_v56 = vadd.f32 %v6135_v17, %v2954_v31  ;;  %v6140_v63 = vadd.f32 %v6139_v11, %v2022_v7  ;;  %v2024_v47 = vpop.f32.mrb[15].mxu1 }
 0x291   : > { %v2889_v41 = vpop.f32.mrb[15].mxu0  ;;  %v6143_v6 = vadd.f32 %v6142_v53, %v2024_v47  ;;  %v8536_v24 = vadd.f32 %v3013_v46, %v2999_v20  ;;  %v2969_v32 = vadd.f32 %v6138_v37, %v2954_v31 }
 0x292   : > { %v3041_v62 = vand.u32 2139095040, %v8522_v34  ;;  %v3000_v3 = vmul.f32 %v8491_v10, %v2968_v56  ;;  %v6141_v19 = vadd.f32 %v6140_v63, %v2887_v44  ;;  %v10141_v53 = vand.u32 2147483647, %v8522_v34 }
 0x293   : > { %v8527_v48 = vadd.f32 %v6143_v6, %v2889_v41  ;;  %v2033_v27 = vpop.f32.mrb[16].mxu1  ;;  %v3145_v61 = vand.u32 2139095040, %v8536_v24  ;;  %v3001_v42 = vmul.f32 %v8491_v10, %v2969_v32 }
 0x294   : > { %v8529_v2 = vpop.f32.mrb[16].mxu0  ;;  %v3042_v43 = vshrl.u32 %v3041_v62, 23  ;;  %v8532_v21 = vadd.f32 %v8495_v49, %v3000_v3  ;;  %v8534_v11 = vpop.f32.mrb[17].mxu1  ;;  %v3045_v39 = vand.u32 8388607, %v10141_v53  ;;  %v8546_v54 = vadd.f32 %v8508_v1, %v2033_v27 }
 0x295   : > { %v8538_v28 = vpop.f32.mrb[17].mxu0  ;;  %v3146_v5 = vshrl.u32 %v3145_v61, 23  ;;  %v2970_v50 = vadd.f32 %v6141_v19, %v8519_v22 }
 0x296   : > { %v5129_v38 = vadd.s32 4294967169, %v3042_v43  ;;  %v3249_v18 = vand.u32 2139095040, %v8532_v21  ;;  %v3046_v57 = vor.u32 8388608, %v3045_v39  ;;  %v10130_v58 = vand.u32 2147483647, %v8532_v21 }
 0x298   : > { %v3048_v26 = vadd.s32 1, %v5129_v38  ;;  %v3250_v9 = vshrl.u32 %v3249_v18, 23  ;;  %v3253_v7 = vand.u32 8388607, %v10130_v58  ;;  %v3086_v43 = vshll.u32 %v3046_v57, 8 }
 0x299   : > { %v8574_v57 = vadd.f32 %v8495_v49, %v3001_v42 }
 0x29a   : > { %vm3049_vm3 = vcmp.gt.s32.totalorder %v3048_v26, 0  ;;  %v5137_v30 = vadd.s32 4294967169, %v3250_v9 }
 0x29b   : > { %v3050_v35 = vsel %vm3049_vm3, %v3048_v26, 0 }
 0x29c   : > { %v3052_v8 = vand.u32 31, %v3050_v35  ;;  %v3051_v31 = vshrl.u32 %v3050_v35, 5  ;;  %v3256_v20 = vadd.s32 1, %v5137_v30 }
 0x29e   : > { %v3053_v60 = vsub.s32 32, %v3052_v8  ;;  %v3055_v16 = vshll.u32 %v10145_v14, %v3052_v8  ;;  %v3058_v1 = vshll.u32 %v10133_v36, %v3052_v8  ;;  %v3061_v10 = vshll.u32 %v10131_v45, %v3052_v8 }
 0x29f   : > { %v3064_v51 = vshll.u32 %v10135_v15, %v3052_v8  ;;  %v3067_v33 = vshll.u32 %v10137_v40, %v3052_v8  ;;  %vm3070_vm4 = vcmp.lt.s32.totalorder %v3051_v31, 1  ;;  %vm3073_vm5 = vcmp.lt.s32.totalorder %v3051_v31, 4 }
 0x2a0   : > { %v3056_v25 = vshrl.u32 %v10133_v36, %v3053_v60  ;;  %v3059_v4 = vshrl.u32 %v10131_v45, %v3053_v60  ;;  %v3062_v29 = vshrl.u32 %v10135_v15, %v3053_v60  ;;  %v3065_v52 = vshrl.u32 %v10137_v40, %v3053_v60 }
 0x2a1   : > { %v3068_v46 = vshrl.u32 %v10139_v0, %v3053_v60  ;;  %v3054_v6 = vshrl.u32 %v10145_v14, %v3053_v60  ;;  %vm3072_vm6 = vcmp.lt.s32.totalorder %v3051_v31, 3  ;;  %vm3071_vm7 = vcmp.lt.s32.totalorder %v3051_v31, 2 }
 0x2a2   : > { %v3057_v55 = vor.u32 %v3056_v25, %v3055_v16  ;;  %v3060_v17 = vor.u32 %v3059_v4, %v3058_v1  ;;  %v3063_v37 = vor.u32 %v3062_v29, %v3061_v10  ;;  %v3066_v44 = vor.u32 %v3065_v52, %v3064_v51  ;;  %v8571_v1 = vpop.permute.xlu0 %2990 }
 0x2a3   : > { %v3069_v56 = vor.u32 %v3068_v46, %v3067_v33  ;;  %v3254_v8 = vor.u32 8388608, %v3253_v7  ;;  %vm3257_vm8 = vcmp.gt.s32.totalorder %v3256_v20, 0  ;;  %v5133_v25 = vadd.s32 4294967169, %v3146_v5 }
 0x2a4   : > { %v3075_v63 = vsel %vm3073_vm5, %v3063_v37, 2102212464  ;;  %v3078_v47 = vsel %vm3070_vm4, %v3057_v55, %v3060_v17  ;;  %v3082_v41 = vsel %vm3070_vm4, %v3060_v17, %v3063_v37  ;;  %v3079_v62 = vsel %vm3073_vm5, %v3066_v44, 920167782 }
 0x2a5   : > { %v3083_v3 = vsel %vm3073_vm5, %v3069_v56, 1326507024  ;;  %v3080_v19 = vsel %vm3072_vm6, %v3063_v37, %v3079_v62  ;;  %v3074_v38 = vsel %vm3070_vm4, %v3054_v6, %v3057_v55  ;;  %v3076_v18 = vsel %vm3072_vm6, %v3060_v17, %v3075_v63 }
 0x2a6   : > { %v3084_v27 = vsel %vm3072_vm6, %v3066_v44, %v3083_v3  ;;  %v3081_v26 = vsel %vm3071_vm7, %v3078_v47, %v3080_v19  ;;  %v3077_v60 = vsel %vm3071_vm7, %v3074_v38, %v3076_v18  ;;  %v3258_v16 = vsel %vm3257_vm8, %v3256_v20, 0 }
 0x2a7   : > { %v3085_v61 = vsel %vm3071_vm7, %v3082_v41, %v3084_v27  ;;  %v8567_v35 = vmul.u32.u64.low %v3086_v43, %v3081_v26  ;;  %v8568_v9 = vmul.u32.u64.high %v3086_v43, %v3081_v26, %v8567_v35  ;;  %v3260_v31 = vand.u32 31, %v3258_v16 }
 0x2a8   : > { %v8564_v32 = vmul.u32.u64.low %v3086_v43, %v3085_v61  ;;  %v8565_v39 = vmul.u32.u64.high %v3086_v43, %v3085_v61, %v8564_v32  ;;  %v3002_v4 = vmul.f32 %v8571_v1, %v2970_v50  ;;  %v3093_v10 = vmul.u32 %v3086_v43, %v3077_v60  ;;  %v8596_v61 = vpop.permute.xlu0 %3022 }
 0x2a9   : > { %v3096_v30 = vadd.s32 1, %v8568_v9  ;;  %v3259_v29 = vshrl.u32 %v3258_v16, 5  ;;  %v3261_v51 = vsub.s32 32, %v3260_v31  ;;  %v3294_v52 = vshll.u32 %v3254_v8, 8 }
 0x2aa   : > { %vm3095_vm9 = vc.u32 %v8565_v39, %v8567_v35  ;;  %v3263_v46 = vshll.u32 %v10145_v14, %v3260_v31  ;;  %v3266_v55 = vshll.u32 %v10133_v36, %v3260_v31  ;;  %v3269_v49 = vshll.u32 %v10131_v45, %v3260_v31 }
 0x2ab   : > { %v3097_v33 = vsel %vm3095_vm9, %v3096_v30, %v8568_v9  ;;  %v3264_v17 = vshrl.u32 %v10133_v36, %v3261_v51  ;;  %v3267_v37 = vshrl.u32 %v10131_v45, %v3261_v51  ;;  %v3272_v5 = vshll.u32 %v10135_v15, %v3260_v31 }
 0x2ac   : > { %v3098_v42 = vadd.s32 %v3097_v33, %v3093_v10  ;;  %v3270_v50 = vshrl.u32 %v10135_v15, %v3261_v51  ;;  %v3273_v7 = vshrl.u32 %v10137_v40, %v3261_v51  ;;  %v3275_v44 = vshll.u32 %v10137_v40, %v3260_v31 }
 0x2ad   : > { %v3276_v56 = vshrl.u32 %v10139_v0, %v3261_v51  ;;  %v3265_v47 = vor.u32 %v3264_v17, %v3263_v46  ;;  %v3268_v41 = vor.u32 %v3267_v37, %v3266_v55  ;;  %vm3278_vm10 = vcmp.lt.s32.totalorder %v3259_v29, 1 }
 0x2ae   : > { %v3099_v63 = vadd.s32 536870912, %v3098_v42  ;;  %v3262_v20 = vshrl.u32 %v10145_v14, %v3261_v51  ;;  %v3271_v6 = vor.u32 %v3270_v50, %v3269_v49  ;;  %v3274_v62 = vor.u32 %v3273_v7, %v3272_v5 }
 0x2af   : > { %v3277_v3 = vor.u32 %v3276_v56, %v3275_v44  ;;  %vm3280_vm11 = vcmp.lt.s32.totalorder %v3259_v29, 3  ;;  %vm3281_vm12 = vcmp.lt.s32.totalorder %v3259_v29, 4  ;;  %v3286_v27 = vsel %vm3278_vm10, %v3265_v47, %v3268_v41 }
 0x2b0   : > { %v8592_v19 = vshrl.u32 %v3099_v63, 30  ;;  %v3283_v43 = vsel %vm3281_vm12, %v3271_v6, 2102212464  ;;  %v3287_v38 = vsel %vm3281_vm12, %v3274_v62, 920167782  ;;  %v3290_v18 = vsel %vm3278_vm10, %v3268_v41, %v3271_v6 }
 0x2b1   : > { %v3291_v26 = vsel %vm3281_vm12, %v3277_v3, 1326507024  ;;  %vm3279_vm13 = vcmp.lt.s32.totalorder %v3259_v29, 2  ;;  %v3288_v9 = vsel %vm3280_vm11, %v3271_v6, %v3287_v38  ;;  %v3282_v60 = vsel %vm3278_vm10, %v3262_v20, %v3265_v47 }
 0x2b2   : > { %v3101_v32 = vshll.u32 %v8592_v19, 30  ;;  %v3292_v8 = vsel %vm3280_vm11, %v3274_v62, %v3291_v26  ;;  %v3289_v16 = vsel %vm3279_vm13, %v3286_v27, %v3288_v9  ;;  %v8603_v30 = vadd.f32 %v8596_v61, %v3002_v4 }
 0x2b3   : > { %v3293_v31 = vsel %vm3279_vm13, %v3290_v18, %v3292_v8  ;;  %v3284_v51 = vsel %vm3280_vm11, %v3268_v41, %v3283_v43  ;;  %v8611_v55 = vmul.u32.u64.low %v3294_v52, %v3289_v16  ;;  %v8612_v49 = vmul.u32.u64.high %v3294_v52, %v3289_v16, %v8611_v55 }
 0x2b4   : > { %v8605_v10 = vsub.s32 %v3098_v42, %v3101_v32  ;;  %v8608_v33 = vmul.u32.u64.low %v3294_v52, %v3293_v31  ;;  %v8609_v46 = vmul.u32.u64.high %v3294_v52, %v3293_v31, %v8608_v33  ;;  %v3353_v17 = vand.u32 2139095040, %v8574_v57 }
 0x2b5   : > { %v3152_v5 = vadd.s32 1, %v5133_v25  ;;  %v3285_v50 = vsel %vm3279_vm13, %v3282_v60, %v3284_v51  ;;  %v3457_v4 = vand.u32 2139095040, %v8603_v30  ;;  %v3304_v29 = vadd.s32 1, %v8612_v49 }
 0x2b6   : > { %v3104_v37 = vsub.s32 0, %v8605_v10  ;;  %vm3303_vm14 = vc.u32 %v8609_v46, %v8611_v55  ;;  %v3354_v7 = vshrl.u32 %v3353_v17, 23  ;;  %v3301_v63 = vmul.u32 %v3294_v52, %v3285_v50 }
 0x2b7   : > { %v3458_v44 = vshrl.u32 %v3457_v4, 23  ;;  %vm3153_vm15 = vcmp.gt.s32.totalorder %v3152_v5, 0  ;;  %v6147_v47 = vadd.f32 %v8546_v54, %v8529_v2  ;;  %v3305_v25 = vsel %vm3303_vm14, %v3304_v29, %v8612_v49 }
 0x2b8   : > { %v5130_v42 = vmin.u32 %v3104_v37, %v8605_v10  ;;  %v6149_v20 = vadd.f32 %v8511_v59, %v8534_v11  ;;  %v3306_v6 = vadd.s32 %v3305_v25, %v3301_v63  ;;  %v3154_v62 = vsel %vm3153_vm15, %v3152_v5, 0 }
 0x2b9   : > { %v5145_v41 = vadd.s32 4294967169, %v3458_v44  ;;  %v5141_v18 = vadd.s32 4294967169, %v3354_v7  ;;  %v8630_v52 = vand.u32 31, %v3154_v62  ;;  %v2971_v2 = vadd.f32 %v8527_v48, %v8519_v22 }
 0x2ba   : > { %v3106_v56 = vclz %v5130_v42  ;;  %v8628_v27 = vadd.f32 %v6149_v20, %v8538_v28  ;;  %v3307_v38 = vadd.s32 536870912, %v3306_v6  ;;  %v10129_v54 = vand.u32 2147483647, %v8603_v30 }
 0x2bb   : > { %v3464_v3 = vadd.s32 1, %v5145_v41  ;;  %v3360_v32 = vadd.s32 1, %v5141_v18  ;;  %v8638_v9 = vshrl.u32 %v3154_v62, 5  ;;  %v8641_v8 = vsub.s32 32, %v8630_v52 }
 0x2bc   : > { %v5131_v43 = vadd.s32 4294967294, %v3106_v56  ;;  %v8632_v26 = vshrl.u32 %v3307_v38, 30  ;;  %v3003_v60 = vmul.f32 %v8571_v1, %v2971_v2  ;;  %v3461_v22 = vand.u32 8388607, %v10129_v54 }
 0x2bd   : > { %vm3465_vm1 = vcmp.gt.s32.totalorder %v3464_v3, 0  ;;  %v2972_v31 = vadd.f32 %v6147_v47, %v8493_v23  ;;  %vm3361_vm3 = vcmp.gt.s32.totalorder %v3360_v32, 0  ;;  %vm3177_vm9 = vcmp.lt.s32.totalorder %v8638_v9, 4 }
 0x2be   : > { %v3466_v59 = vsel %vm3465_vm1, %v3464_v3, 0  ;;  %vm5132_vm2 = vcmp.lt.s32.totalorder %v5131_v43, 0  ;;  %v3309_v11 = vshll.u32 %v8632_v26, 30  ;;  %v3462_v41 = vor.u32 8388608, %v3461_v22 }
 0x2bf   : > { %v3468_v28 = vand.u32 31, %v3466_v59  ;;  %v8644_v16 = vsel %vm5132_vm2, 0, %v5131_v43  ;;  %v3467_v33 = vshrl.u32 %v3466_v59, 5  ;;  %v3004_v43 = vmul.f32 %v8497_v12, %v2972_v31 }
 0x2c0   : > { %v8649_v51 = vsub.s32 %v3306_v6, %v3309_v11  ;;  %v3114_v4 = vsub.s32 4294967266, %v8644_v16  ;;  %v8664_v6 = vadd.f32 %v8596_v61, %v3003_v60  ;;  %v3110_v62 = vsub.s32 32, %v8644_v16 }
 0x2c1   : > { %v3469_v48 = vsub.s32 32, %v3468_v28  ;;  %v3471_v49 = vshll.u32 %v10145_v14, %v3468_v28  ;;  %v3474_v17 = vshll.u32 %v10133_v36, %v3468_v28  ;;  %v3477_v5 = vshll.u32 %v10131_v45, %v3468_v28 }
 0x2c2   : > { %v3480_v42 = vshll.u32 %v10135_v15, %v3468_v28  ;;  %v3483_v7 = vshll.u32 %v10137_v40, %v3468_v28  ;;  %v3312_v25 = vsub.s32 0, %v8649_v51  ;;  %vm3486_vm4 = vcmp.lt.s32.totalorder %v3467_v33, 1 }
 0x2c3   : > { %v3472_v37 = vshrl.u32 %v10133_v36, %v3469_v48  ;;  %v3475_v1 = vshrl.u32 %v10131_v45, %v3469_v48  ;;  %v3478_v50 = vshrl.u32 %v10135_v15, %v3469_v48  ;;  %v3481_v29 = vshrl.u32 %v10137_v40, %v3469_v48 }
 0x2c4   : > { %v3484_v47 = vshrl.u32 %v10139_v0, %v3469_v48  ;;  %v3115_v38 = vadd.s32 127, %v3114_v4  ;;  %vm3488_vm5 = vcmp.lt.s32.totalorder %v3467_v33, 3  ;;  %vm3489_vm6 = vcmp.lt.s32.totalorder %v3467_v33, 4 }
 0x2c5   : > { %v3473_v44 = vor.u32 %v3472_v37, %v3471_v49  ;;  %v3476_v56 = vor.u32 %v3475_v1, %v3474_v17  ;;  %v3479_v63 = vor.u32 %v3478_v50, %v3477_v5  ;;  %v3482_v20 = vor.u32 %v3481_v29, %v3480_v42 }
 0x2c6   : > { %v3485_v3 = vor.u32 %v3484_v47, %v3483_v7  ;;  %v3470_v2 = vshrl.u32 %v10145_v14, %v3469_v48  ;;  %v5138_v22 = vmin.u32 %v3312_v25, %v8649_v51  ;;  %vm3487_vm7 = vcmp.lt.s32.totalorder %v3467_v33, 2 }
 0x2c7   : > { %v3494_v18 = vsel %vm3486_vm4, %v3473_v44, %v3476_v56  ;;  %v3491_v59 = vsel %vm3489_vm6, %v3479_v63, 2102212464  ;;  %v3495_v11 = vsel %vm3489_vm6, %v3482_v20, 920167782  ;;  %v3498_v60 = vsel %vm3486_vm4, %v3476_v56, %v3479_v63 }
 0x2c8   : > { %v3499_v28 = vsel %vm3489_vm6, %v3485_v3, 1326507024  ;;  %v3496_v61 = vsel %vm3488_vm5, %v3479_v63, %v3495_v11  ;;  %v3502_v17 = vshll.u32 %v3462_v41, 8  ;;  %v8676_v37 = vadd.f32 %v8503_v13, %v3004_v43 }
 0x2c9   : > { %v3497_v49 = vsel %vm3487_vm7, %v3494_v18, %v3496_v61  ;;  %v3500_v31 = vsel %vm3488_vm5, %v3482_v20, %v3499_v28  ;;  %v3094_v48 = vadd.s32 %v8567_v35, %v8565_v39  ;;  %v3116_v1 = vshll.u32 %v3115_v38, 23 }
 0x2ca   : > { %v3490_v5 = vsel %vm3486_vm4, %v3470_v2, %v3473_v44  ;;  %v3492_v50 = vsel %vm3488_vm5, %v3476_v56, %v3491_v59  ;;  %v3362_v4 = vsel %vm3361_vm3, %v3360_v32, 0  ;;  %v3501_v42 = vsel %vm3487_vm7, %v3498_v60, %v3500_v31 }
 0x2cb   : > { %v8684_v29 = vmul.u32.u64.low %v3502_v17, %v3497_v49  ;;  %v8685_v7 = vmul.u32.u64.high %v3502_v17, %v3497_v49, %v8684_v29  ;;  %v3112_v63 = vshrl.u32 %v3094_v48, %v3110_v62  ;;  %v3314_v47 = vclz %v5138_v22 }
 0x2cc   : > { %v8688_v25 = vmul.u32.u64.low %v3502_v17, %v3501_v42  ;;  %v8689_v41 = vmul.u32.u64.high %v3502_v17, %v3501_v42, %v8688_v25  ;;  %v3169_v39 = vshrl.u32 %v10137_v40, %v8641_v8  ;;  %v3493_v35 = vsel %vm3487_vm7, %v3490_v5, %v3492_v50 }
 0x2cd   : > { %v3561_v44 = vand.u32 2139095040, %v8664_v6  ;;  %v3665_v32 = vand.u32 2139095040, %v8676_v37  ;;  %v3111_v56 = vshll.u32 %v8605_v10, %v8644_v16  ;;  %v3117_v20 = vor.u32 4788187, %v3116_v1 }
 0x2ce   : > { %v3168_v62 = vshll.u32 %v10135_v15, %v8630_v52  ;;  %v3172_v3 = vshrl.u32 %v10139_v0, %v8641_v8  ;;  %v3171_v43 = vshll.u32 %v10137_v40, %v8630_v52  ;;  %v8704_v38 = vand.u32 31, %v3362_v4 }
 0x2cf   : > { %v3512_v33 = vadd.s32 1, %v8685_v7  ;;  %v3666_v18 = vshrl.u32 %v3665_v32, 23  ;;  %v3113_v2 = vor.u32 %v3112_v63, %v3111_v56  ;;  %v5139_v59 = vadd.s32 4294967294, %v3314_v47 }
 0x2d0   : > { %v3509_v11 = vmul.u32 %v3502_v17, %v3493_v35  ;;  %vm3511_vm8 = vc.u32 %v8689_v41, %v8684_v29  ;;  %v8709_v10 = vor.u32 %v3169_v39, %v3168_v62  ;;  %v3562_v28 = vshrl.u32 %v3561_v44, 23 }
 0x2d1   : > { %v3513_v16 = vsel %vm3511_vm8, %v3512_v33, %v8685_v7  ;;  %v3118_v22 = vand.u32 2147483647, %v3117_v20  ;;  %v3173_v61 = vor.u32 %v3172_v3, %v3171_v43  ;;  %v5153_v49 = vadd.s32 4294967169, %v3666_v18 }
 0x2d2   : > { %v3514_v60 = vadd.s32 %v3513_v16, %v3509_v11  ;;  %v8714_v31 = vsub.s32 32, %v8704_v38  ;;  %v3120_v48 = vcvt.s32.f32 %v3113_v2  ;;  %vm5140_vm10 = vcmp.lt.s32.totalorder %v5139_v59, 0 }
 0x2d3   : > { %v3672_v1 = vadd.s32 1, %v5153_v49  ;;  %v8719_v5 = vsel %vm3177_vm9, %v8709_v10, 920167782  ;;  %v5149_v50 = vadd.s32 4294967169, %v3562_v28  ;;  %v8725_v7 = vsel %vm3177_vm9, %v3173_v61, 1326507024 }
 0x2d4   : > { %v3515_v17 = vadd.s32 536870912, %v3514_v60  ;;  %v8721_v42 = vmul.f32 %v3120_v48, %v3118_v22  ;;  %v10128_v63 = vand.u32 2147483647, %v8676_v37  ;;  %v8728_v47 = vsel %vm5140_vm10, 0, %v5139_v59 }
 0x2d5   : > { %vm3673_vm11 = vcmp.gt.s32.totalorder %v3672_v1, 0  ;;  %v8730_v25 = vshrl.u32 %v3362_v4, 5  ;;  %v3376_v44 = vshll.u32 %v10135_v15, %v8704_v38  ;;  %v3377_v32 = vshrl.u32 %v10137_v40, %v8714_v31 }
 0x2d6   : > { %v8732_v39 = vshrl.u32 %v3515_v17, 30  ;;  %v3674_v35 = vsel %vm3673_vm11, %v3672_v1, 0  ;;  %v8740_v56 = vshll.u32 %v10137_v40, %v8704_v38  ;;  %v3302_v62 = vadd.s32 %v8611_v55, %v8609_v46 }
 0x2d7   : > { %v3676_v20 = vand.u32 31, %v3674_v35  ;;  %v8746_v4 = vshrl.u32 %v10139_v0, %v8714_v31  ;;  %v8748_v3 = vadd.s32 1, %v5149_v50  ;;  %v2973_v43 = vadd.f32 %v8628_v27, %v8493_v23 }
 0x2d8   : > { %10629 = vst [vmem:[#allocation93_spill] sm:$0xff] %v8732_v39  ;;  %v3122_v33 = vxor.u32 2147483648, %v8721_v42  ;;  %v3318_v18 = vsub.s32 32, %v8728_v47  ;;  %v3669_v2 = vand.u32 8388607, %v10128_v63  ;;  %v3517_v11 = vshll.u32 %v8732_v39, 30 }
 0x2d9   : > { %v3677_v59 = vsub.s32 32, %v3676_v20  ;;  %v3675_v46 = vshrl.u32 %v3674_v35, 5  ;;  %v3679_v55 = vshll.u32 %v10145_v14, %v3676_v20  ;;  %v3682_v16 = vshll.u32 %v10133_v36, %v3676_v20 }
 0x2da   : > { %v3685_v23 = vshll.u32 %v10131_v45, %v3676_v20  ;;  %v3688_v27 = vshll.u32 %v10135_v15, %v3676_v20  ;;  %v3691_v48 = vshll.u32 %v10137_v40, %v3676_v20  ;;  %vm3040_vm12 = vcmp.lt.s32.totalorder %v8522_v34, 0 }
 0x2db   : > { %v3680_v28 = vshrl.u32 %v10133_v36, %v3677_v59  ;;  %v3683_v22 = vshrl.u32 %v10131_v45, %v3677_v59  ;;  %v3686_v61 = vshrl.u32 %v10135_v15, %v3677_v59  ;;  %v3689_v49 = vshrl.u32 %v10137_v40, %v3677_v59 }
 0x2dc   : > { %v3692_v17 = vshrl.u32 %v10139_v0, %v3677_v59  ;;  %v3322_v1 = vsub.s32 4294967266, %v8728_v47  ;;  %v3670_v50 = vor.u32 8388608, %v3669_v2  ;;  %v8769_v54 = vsub.s32 %v3514_v60, %v3517_v11 }
 0x2dd   : > { %v3681_v35 = vor.u32 %v3680_v28, %v3679_v55  ;;  %v3684_v63 = vor.u32 %v3683_v22, %v3682_v16  ;;  %v3687_v58 = vor.u32 %v3686_v61, %v3685_v23  ;;  %v3690_v45 = vor.u32 %v3689_v49, %v3688_v27 }
 0x2de   : > { %v3693_v36 = vor.u32 %v3692_v17, %v3691_v48  ;;  %v3678_v15 = vshrl.u32 %v10145_v14, %v3677_v59  ;;  %vm3694_vm13 = vcmp.lt.s32.totalorder %v3675_v46, 1  ;;  %vm3696_vm14 = vcmp.lt.s32.totalorder %v3675_v46, 3 }
 0x2df   : > { %vm3697_vm15 = vcmp.lt.s32.totalorder %v3675_v46, 4  ;;  %v3702_v40 = vsel %vm3694_vm13, %v3681_v35, %v3684_v63  ;;  %v3706_v53 = vsel %vm3694_vm13, %v3684_v63, %v3687_v58  ;;  %v10630_v39 = vand.u32 2147483647, %v8522_v34 }
 0x2e0   : > { %v3699_v20 = vsel %vm3697_vm15, %v3687_v58, 2102212464  ;;  %v3703_v0 = vsel %vm3697_vm15, %v3690_v45, 920167782  ;;  %vm3695_vm2 = vcmp.lt.s32.totalorder %v3675_v46, 2  ;;  %v3710_v55 = vshll.u32 %v3670_v50, 8 }
 0x2e1   : > { %vm8774_vm1 = vcmp.le.f32.partialorder %v10630_v39, 0.7853982  ;;  %v3704_v60 = vsel %vm3696_vm14, %v3687_v58, %v3703_v0  ;;  %v3707_v11 = vsel %vm3697_vm15, %v3693_v36, 1326507024  ;;  %v3698_v16 = vsel %vm3694_vm13, %v3678_v15, %v3681_v35 }
 0x2e2   : > { %v3700_v28 = vsel %vm3696_vm14, %v3684_v63, %v3699_v20  ;;  %v3705_v59 = vsel %vm3695_vm2, %v3702_v40, %v3704_v60  ;;  %v3708_v22 = vsel %vm3696_vm14, %v3690_v45, %v3707_v11  ;;  %v3005_v39 = vmul.f32 %v8497_v12, %v2973_v43 }
 0x2e3   : > { %v3709_v23 = vsel %vm3695_vm2, %v3706_v53, %v3708_v22  ;;  %v8780_v27 = vmul.u32.u64.low %v3710_v55, %v3705_v59  ;;  %v8781_v61 = vmul.u32.u64.high %v3710_v55, %v3705_v59, %v8780_v27  ;;  %v3323_v49 = vadd.s32 127, %v3322_v1 }
 0x2e4   : > { %v3520_v48 = vsub.s32 0, %v8769_v54  ;;  %v8786_v17 = vmul.u32.u64.low %v3710_v55, %v3709_v23  ;;  %v8787_v58 = vmul.u32.u64.high %v3710_v55, %v3709_v23, %v8786_v17  ;;  %v8789_v36 = vor.u32 %v3377_v32, %v3376_v44 }
 0x2e5   : > { %vm3385_vm3 = vcmp.lt.s32.totalorder %v8730_v25, 4  ;;  %v3701_v45 = vsel %vm3695_vm2, %v3698_v16, %v3700_v28  ;;  %v3142_v53 = vand.u32 2147483647, %v8536_v24  ;;  %v3123_v15 = vsel %vm3040_vm12, %v3122_v33, %v8721_v42 }
 0x2e6   : > { %v3320_v40 = vshrl.u32 %v3302_v62, %v3318_v18  ;;  %v3381_v12 = vor.u32 %v8746_v4, %v8740_v56  ;;  %vm3569_vm4 = vcmp.gt.s32.totalorder %v8748_v3, 0  ;;  %v3720_v0 = vadd.s32 1, %v8781_v61 }
 0x2e7   : > { %v8802_v63 = vadd.f32 %v8503_v13, %v3005_v39  ;;  %v10633_v44 = vmov 2475754826   ;;  %v10634_v43 = vmov 2131351028   ;;  %v3324_v1 = vshll.u32 %v3323_v49, 23 }
 0x2e8   : > { %v3160_v32 = vshrl.u32 %v10633_v44, %v8641_v8  ;;  %v3163_v46 = vshrl.u32 %v10634_v43, %v8641_v8  ;;  %v5146_v42 = vmin.u32 %v3520_v48, %v8769_v54  ;;  %v3717_v62 = vmul.u32 %v3710_v55, %v3701_v45 }
 0x2e9   : > { %vm3719_vm5 = vc.u32 %v8787_v58, %v8780_v27  ;;  %v3149_v4 = vand.u32 8388607, %v3142_v53  ;;  %v3159_v13 = vshll.u32 %v10145_v14, %v8630_v52  ;;  %v3162_v33 = vshll.u32 %v10633_v44, %v8630_v52 }
 0x2ea   : > { %v3721_v56 = vsel %vm3719_vm5, %v3720_v0, %v8781_v61  ;;  %v8821_v18 = vsel %vm8774_vm1, %v8522_v34, %v3123_v15  ;;  %v8826_v50 = vsel %vm3385_vm3, %v8789_v36, 920167782  ;;  %v3570_v35 = vsel %vm3569_vm4, %v8748_v3, 0 }
 0x2eb   : > { %v3722_v20 = vadd.s32 %v3721_v56, %v3717_v62  ;;  %v3319_v60 = vshll.u32 %v8649_v51, %v8728_v47  ;;  %v3769_v11 = vand.u32 2139095040, %v8802_v63  ;;  %v3161_v55 = vor.u32 %v3160_v32, %v3159_v13 }
 0x2ec   : > { %v3164_v16 = vor.u32 %v3163_v46, %v3162_v33  ;;  %v3522_v28 = vclz %v5146_v42  ;;  %v3165_v22 = vshll.u32 %v10634_v43, %v8630_v52  ;;  %v10635_v23 = vmov 2102212464  }
 0x2ed   : > { %v3723_v59 = vadd.s32 536870912, %v3722_v20  ;;  %v3166_v61 = vshrl.u32 %v10635_v23, %v8641_v8  ;;  %v3321_v39 = vor.u32 %v3320_v40, %v3319_v60  ;;  %v3325_v49 = vor.u32 4788187, %v3324_v1 }
 0x2ee   : > { %v8838_v48 = vand.u32 31, %v3570_v35  ;;  %v3150_v3 = vor.u32 8388608, %v3149_v4  ;;  %vm3174_vm6 = vcmp.lt.s32.totalorder %v8638_v9, 1  ;;  %vm3176_vm7 = vcmp.lt.s32.totalorder %v8638_v9, 3 }
 0x2ef   : > { %v8840_v17 = vshrl.u32 %v3723_v59, 30  ;;  %v3167_v51 = vor.u32 %v3166_v61, %v3165_v22  ;;  %v3770_v47 = vshrl.u32 %v3769_v11, 23  ;;  %v3158_v45 = vshrl.u32 %v10145_v14, %v8641_v8 }
 0x2f0   : > { %v3182_v52 = vsel %vm3174_vm6, %v3161_v55, %v3164_v16  ;;  %v3188_v15 = vsel %vm3176_vm7, %v8709_v10, %v8725_v7  ;;  %v5147_v40 = vadd.s32 4294967294, %v3522_v28  ;;  %vm3175_vm8 = vcmp.lt.s32.totalorder %v8638_v9, 2 }
 0x2f1   : > { %v3725_v0 = vshll.u32 %v8840_v17, 30  ;;  %v3184_v32 = vsel %vm3176_vm7, %v3167_v51, %v8719_v5  ;;  %v3178_v46 = vsel %vm3174_vm6, %v3158_v45, %v3161_v55  ;;  %v3179_v1 = vsel %vm3177_vm9, %v3167_v51, 2102212464 }
 0x2f2   : > { %v3185_v42 = vsel %vm3175_vm8, %v3182_v52, %v3184_v32  ;;  %v3186_v62 = vsel %vm3174_vm6, %v3164_v16, %v3167_v51  ;;  %v3180_v56 = vsel %vm3176_vm7, %v3164_v16, %v3179_v1  ;;  %v3190_v7 = vshll.u32 %v3150_v3, 8 }
 0x2f3   : > { %v8855_v8 = vsub.s32 %v3722_v20, %v3725_v0  ;;  %v3189_v10 = vsel %vm3175_vm8, %v3186_v62, %v3188_v15  ;;  %6483 = vcosq.f32 %v8821_v18  ;;  %v3326_v4 = vand.u32 2147483647, %v3325_v49 }
 0x2f4   : > { %v3395_v5 = vsel %vm3385_vm3, %v3381_v12, 1326507024  ;;  %v5157_v13 = vadd.s32 4294967169, %v3770_v47  ;;  %v3328_v33 = vcvt.s32.f32 %v3321_v39  ;;  %vm5148_vm9 = vcmp.lt.s32.totalorder %v5147_v40, 0 }
 0x2f5   : > { %v8862_v60 = vmul.u32.u64.low %v3190_v7, %v3189_v10  ;;  %v8863_v11 = vmul.u32.u64.high %v3190_v7, %v3189_v10, %v8862_v60  ;;  %v3181_v20 = vsel %vm3175_vm8, %v3178_v46, %v3180_v56  ;;  %v10144_v28 = vand.u32 2147483647, %v8574_v57 }
 0x2f6   : > { %v8867_v55 = vmul.u32.u64.low %v3190_v7, %v3185_v42  ;;  %v8868_v16 = vmul.u32.u64.high %v3190_v7, %v3185_v42, %v8867_v55  ;;  %vm3248_vm10 = vcmp.lt.s32.totalorder %v8532_v21, 0  ;;  %v8873_v59 = vshrl.u32 %v3570_v35, 5 }
 0x2f7   : > { %v8876_v12 = vsub.s32 32, %v8838_v48  ;;  %v3584_v22 = vshll.u32 %v10635_v23, %v8838_v48  ;;  %v3728_v61 = vsub.s32 0, %v8855_v8  ;;  %v3329_v9 = vmul.f32 %v3328_v33, %v3326_v4 }
 0x2f8   : > { %v10636_v39 = vmov 920167782   ;;  %v3776_v3 = vadd.s32 1, %v5157_v13  ;;  %v3368_v51 = vshrl.u32 %v10633_v44, %v8714_v31  ;;  %v8888_v35 = vsel %vm5148_vm9, 0, %v5147_v40 }
 0x2f9   : > { %v8883_v49 = vshll.u32 %v10636_v39, %v8838_v48  ;;  %v3197_v47 = vmul.u32 %v3190_v7, %v3181_v20  ;;  %vm3199_vm11 = vc.u32 %v8863_v11, %v8867_v55  ;;  %v3367_v45 = vshll.u32 %v10145_v14, %v8704_v38 }
 0x2fa   : > { %v3200_v52 = vadd.s32 1, %v8868_v16  ;;  %v3357_v15 = vand.u32 8388607, %v10144_v28  ;;  %v3370_v0 = vshll.u32 %v10633_v44, %v8704_v38  ;;  %v3371_v32 = vshrl.u32 %v10634_v43, %v8714_v31 }
 0x2fb   : > { %v5154_v40 = vmin.u32 %v3728_v61, %v8855_v8  ;;  %v3369_v46 = vor.u32 %v3368_v51, %v3367_v45  ;;  %v3373_v1 = vshll.u32 %v10634_v43, %v8704_v38  ;;  %v3374_v42 = vshrl.u32 %v10635_v23, %v8714_v31 }
 0x2fc   : > { %v3330_v62 = vxor.u32 2147483648, %v3329_v9  ;;  %v3585_v56 = vshrl.u32 %v10636_v39, %v8876_v12  ;;  %v3201_v10 = vsel %vm3199_vm11, %v3200_v52, %v8868_v16  ;;  %v3372_v7 = vor.u32 %v3371_v32, %v3370_v0 }
 0x2fd   : > { %v3530_v4 = vsub.s32 4294967266, %v8888_v35  ;;  %v10637_v13 = vmov 1326507024   ;;  %v3202_v60 = vadd.s32 %v3201_v10, %v3197_v47  ;;  %v3375_v20 = vor.u32 %v3374_v42, %v3373_v1  ;;  %v8912_v61 = vpop.eup %6483 }
 0x2fe   : > { %v3588_v33 = vshrl.u32 %v10637_v13, %v8876_v12  ;;  %v10638_v38 = vand.u32 2147483647, %v8532_v21  ;;  %vm3777_vm14 = vcmp.gt.s32.totalorder %v3776_v3, 0  ;;  %v3358_v45 = vor.u32 8388608, %v3357_v15 }
 0x2ff   : > { %vm3382_vm15 = vcmp.lt.s32.totalorder %v8730_v25, 1  ;;  %vm3384_vm2 = vcmp.lt.s32.totalorder %v8730_v25, 3  ;;  %v3730_v16 = vclz %v5154_v40  ;;  %v3203_v52 = vadd.s32 536870912, %v3202_v60 }
 0x300   : > { %vm8916_vm13 = vcmp.le.f32.partialorder %v10638_v38, 0.7853982  ;;  %v3390_v47 = vsel %vm3382_vm15, %v3369_v46, %v3372_v7  ;;  %v3396_v0 = vsel %vm3384_vm2, %v8789_v36, %v3395_v5  ;;  %v3331_v32 = vsel %vm3248_vm10, %v3330_v62, %v3329_v9 }
 0x301   : > { %v3387_v1 = vsel %vm3385_vm3, %v3375_v20, 2102212464  ;;  %v3392_v15 = vsel %vm3384_vm2, %v3375_v20, %v8826_v50  ;;  %v3394_v40 = vsel %vm3382_vm15, %v3372_v7, %v3375_v20  ;;  %v3778_v42 = vsel %vm3777_vm14, %v3776_v3, 0 }
 0x302   : > { %v8936_v10 = vshrl.u32 %v3203_v52, 30  ;;  %v3366_v38 = vshrl.u32 %v10145_v14, %v8714_v31  ;;  %vm3383_vm4 = vcmp.lt.s32.totalorder %v8730_v25, 2  ;;  %v3531_v36 = vadd.s32 127, %v3530_v4 }
 0x303   : > { %v3393_v5 = vsel %vm3383_vm4, %v3390_v47, %v3392_v15  ;;  %v3397_v9 = vsel %vm3383_vm4, %v3394_v40, %v3396_v0  ;;  %v3398_v62 = vshll.u32 %v3358_v45, 8  ;;  %v5155_v50 = vadd.s32 4294967294, %v3730_v16 }
 0x304   : > { %v3205_v28 = vshll.u32 %v8936_v10, 30  ;;  %v3386_v3 = vsel %vm3382_vm15, %v3366_v38, %v3369_v46  ;;  %v3388_v20 = vsel %vm3384_vm2, %v3372_v7, %v3387_v1  ;;  %6485 = vsinq.f32 %v8821_v18 }
 0x305   : > { %v8950_v31 = vmul.u32.u64.low %v3398_v62, %v3397_v9  ;;  %v8951_v52 = vmul.u32.u64.high %v3398_v62, %v3397_v9, %v8950_v31  ;;  %v8953_v4 = vmul.u32.u64.low %v3398_v62, %v3393_v5  ;;  %v8954_v14 = vmul.u32.u64.high %v3398_v62, %v3393_v5, %v8953_v4 }
 0x306   : > { %v3526_v45 = vsub.s32 32, %v8888_v35  ;;  %v8959_v16 = vor.u32 %v3585_v56, %v3584_v22  ;;  %v8961_v47 = vsub.s32 %v3202_v60, %v3205_v28  ;;  %v3510_v46 = vadd.s32 %v8684_v29, %v8689_v41 }
 0x307   : > { %v3589_v7 = vor.u32 %v3588_v33, %v8883_v49  ;;  %vm3593_vm3 = vcmp.lt.s32.totalorder %v8873_v59, 4  ;;  %v8967_v0 = vand.u32 31, %v3778_v42  ;;  %v3334_v1 = vsel %vm8916_vm13, %v8532_v21, %v3331_v32 }
 0x308   : > { %vm5156_vm5 = vcmp.lt.s32.totalorder %v5155_v50, 0  ;;  %v3208_v18 = vsub.s32 0, %v8961_v47  ;;  %v3389_v28 = vsel %vm3383_vm4, %v3386_v3, %v3388_v20  ;;  %v3532_v22 = vshll.u32 %v3531_v36, 23 }
 0x309   : > { %vm3407_vm6 = vc.u32 %v8951_v52, %v8953_v4  ;;  %v3408_v29 = vadd.s32 1, %v8954_v14  ;;  %v3124_v41 = vsub.s32 4, %v8592_v19  ;;  %v3528_v49 = vshrl.u32 %v3510_v46, %v3526_v45 }
 0x30a   : > { %v8982_v56 = vsel %vm3593_vm3, %v8959_v16, 920167782  ;;  %v8984_v33 = vshrl.u32 %v3778_v42, 5  ;;  %v5134_v60 = vmin.u32 %v3208_v18, %v8961_v47  ;;  %v8987_v25 = vsel %vm5156_vm5, 0, %v5155_v50 }
 0x30b   : > { %v8990_v32 = vsub.s32 32, %v8967_v0  ;;  %vm3144_vm7 = vcmp.lt.s32.totalorder %v8536_v24, 0  ;;  %v3405_v15 = vmul.u32 %v3398_v62, %v3389_v28  ;;  %v3409_v40 = vsel %vm3407_vm6, %v3408_v29, %v8954_v14 }
 0x30c   : > { %6487 = vcosq.f32 %v3334_v1  ;;  %v3527_v38 = vshll.u32 %v8769_v54, %v8888_v35  ;;  %v8998_v42 = vsel %vm3593_vm3, %v3589_v7, 1326507024  ;;  %v3210_v36 = vclz %v5134_v60 }
 0x30d   : > { %6489 = vsinq.f32 %v3334_v1  ;;  %v3533_v5 = vor.u32 4788187, %v3532_v22  ;;  %v3410_v9 = vadd.s32 %v3409_v40, %v3405_v15  ;;  %v3125_v50 = vsel %vm3040_vm12, %v3124_v41, %v8592_v19 }
 0x30e   : > { %v3529_v3 = vor.u32 %v3528_v49, %v3527_v38  ;;  %v3718_v14 = vadd.s32 %v8780_v27, %v8787_v58  ;;  %v3738_v62 = vsub.s32 4294967266, %v8987_v25  ;;  %vm9008_vm8 = vcmp.le.f32.partialorder %v3142_v53, 0.7853982  ;;  %v6486_v58 = vpop.eup %6485 }
 0x30f   : > { %v5135_v35 = vadd.s32 4294967294, %v3210_v36  ;;  %v3792_v20 = vshll.u32 %v10635_v23, %v8967_v0  ;;  %v3793_v31 = vshrl.u32 %v10636_v39, %v8990_v32  ;;  %v3795_v19 = vshll.u32 %v10636_v39, %v8967_v0 }
 0x310   : > { %vm3801_vm12 = vcmp.lt.s32.totalorder %v8984_v33, 4  ;;  %v3411_v27 = vadd.s32 536870912, %v3410_v9  ;;  %v3796_v53 = vshrl.u32 %v10637_v13, %v8990_v32  ;;  %v3228_v45 = vsub.s32 4, %v8936_v10 }
 0x311   : > { %vm5136_vm9 = vcmp.lt.s32.totalorder %v5135_v35, 0  ;;  %v3127_v46 = vsel %vm8774_vm1, 0, %v3125_v50  ;;  %v3534_v7 = vand.u32 2147483647, %v3533_v5  ;;  %v3734_v1 = vsub.s32 32, %v8987_v25 }
 0x312   : > { %v3213_v18 = vsel %vm5136_vm9, 0, %v5135_v35  ;;  %v9025_v28 = vshrl.u32 %v3411_v27, 30  ;;  %v3739_v39 = vadd.s32 127, %v3738_v62  ;;  %v3198_v22 = vadd.s32 %v8867_v55, %v8863_v11 }
 0x313   : > { %v3214_v29 = vsub.s32 32, %v3213_v18  ;;  %v3218_v41 = vsub.s32 4294967266, %v3213_v18  ;;  %v3536_v49 = vcvt.s32.f32 %v3529_v3  ;;  %v9029_v13 = vor.u32 %v3793_v31, %v3792_v20 }
 0x314   : > { %v3413_v60 = vshll.u32 %v9025_v28, 30  ;;  %v3131_v15 = vadd.s32 3, %v3127_v46  ;;  %v3215_v2 = vshll.u32 %v8961_v47, %v3213_v18  ;;  %v3229_v36 = vsel %vm3144_vm7, %v3228_v45, %v8936_v10 }
 0x315   : > { %v3216_v40 = vshrl.u32 %v3198_v22, %v3214_v29  ;;  %v3219_v38 = vadd.s32 127, %v3218_v41  ;;  %v9036_v5 = vmul.f32 %v3536_v49, %v3534_v7  ;;  %v3736_v50 = vshrl.u32 %v3718_v14, %v3734_v1 }
 0x316   : > { %v3797_v11 = vor.u32 %v3796_v53, %v3795_v19  ;;  %v9038_v55 = vsub.s32 %v3410_v9, %v3413_v60  ;;  %v9040_v3 = vpop.eup %6487  ;;  %v3735_v62 = vshll.u32 %v8855_v8, %v8987_v25  ;;  %v3740_v35 = vshll.u32 %v3739_v39, 23 }
 0x317   : > { %v3217_v20 = vor.u32 %v3216_v40, %v3215_v2  ;;  %v3220_v47 = vshll.u32 %v3219_v38, 23  ;;  %v9044_v31 = vpop.eup %6489  ;;  %v3231_v27 = vsel %vm9008_vm8, 0, %v3229_v36  ;;  %v9049_v45 = vand.u32 3, %v3131_v15 }
 0x318   : > { %v3416_v10 = vsub.s32 0, %v9038_v55  ;;  %v3332_v9 = vsub.s32 4, %v8632_v26  ;;  %v9055_v14 = vsel %vm3801_vm12, %v9029_v13, 920167782  ;;  %v3135_v25 = vxor.u32 2147483648, %v6486_v58 }
 0x319   : > { %v3221_v8 = vor.u32 4788187, %v3220_v47  ;;  %v3138_v19 = vxor.u32 2147483648, %v8912_v61  ;;  %v9058_v53 = vor.u32 %v3736_v50, %v3735_v62  ;;  %v9062_v46 = vsel %vm3801_vm12, %v3797_v11, 1326507024 }
 0x31a   : > { %v5142_v7 = vmin.u32 %v3416_v10, %v9038_v55  ;;  %v3558_v1 = vand.u32 2147483647, %v8664_v6  ;;  %v9066_v18 = vor.u32 4788187, %v3740_v35  ;;  %v3224_v22 = vcvt.s32.f32 %v3217_v20 }
 0x31b   : > { %v3222_v39 = vand.u32 2147483647, %v3221_v8  ;;  %v3235_v29 = vadd.s32 3, %v3231_v27  ;;  %vm3134_vm1 = vcmp.eq.s32.totalorder %v9049_v45, 0  ;;  %vm3137_vm11 = vcmp.eq.s32.totalorder %v9049_v45, 2 }
 0x31c   : > { %v3418_v41 = vclz %v5142_v7  ;;  %v3333_v49 = vsel %vm3248_vm10, %v3332_v9, %v8632_v26  ;;  %v3406_v15 = vadd.s32 %v8953_v4, %v8951_v52  ;;  %v3136_v2 = vsel %vm3134_vm1, %v8912_v61, %v3135_v25 }
 0x31d   : > { %v3225_v60 = vmul.f32 %v3224_v22, %v3222_v39  ;;  %v3139_v40 = vsel %vm3137_vm11, %v3138_v19, %v6486_v58  ;;  %v3565_v36 = vand.u32 8388607, %v3558_v1  ;;  %v10643_v50 = vmov 683565275  }
 0x31e   : > { %v5143_v38 = vadd.s32 4294967294, %v3418_v41  ;;  %v3575_v11 = vshll.u32 %v10643_v50, %v8838_v48  ;;  %v3576_v62 = vshrl.u32 %v10633_v44, %v8876_v12  ;;  %v3335_v26 = vsel %vm8916_vm13, 0, %v3333_v49 }
 0x31f   : > { %v3226_v35 = vxor.u32 2147483648, %v3225_v60  ;;  %v3578_v52 = vshll.u32 %v10633_v44, %v8838_v48  ;;  %v3579_v61 = vshrl.u32 %v10634_v43, %v8876_v12  ;;  %v3436_v4 = vsub.s32 4, %v9025_v28 }
 0x320   : > { %vm5144_vm10 = vcmp.lt.s32.totalorder %v5143_v38, 0  ;;  %v3577_v58 = vor.u32 %v3576_v62, %v3575_v11  ;;  %v3581_v20 = vshll.u32 %v10634_v43, %v8838_v48  ;;  %vm3352_vm14 = vcmp.lt.s32.totalorder %v8574_v57, 0 }
 0x321   : > { %v3227_v47 = vsel %vm3144_vm7, %v3226_v35, %v3225_v60  ;;  %v3421_v51 = vsel %vm5144_vm10, 0, %v5143_v38  ;;  %v3580_v27 = vor.u32 %v3579_v61, %v3578_v52  ;;  %v3582_v10 = vshrl.u32 %v10635_v23, %v8876_v12 }
 0x322   : > { %v3422_v9 = vsub.s32 32, %v3421_v51  ;;  %v3426_v8 = vsub.s32 4294967266, %v3421_v51  ;;  %v3339_v25 = vadd.s32 3, %v3335_v26  ;;  %v3566_v19 = vor.u32 8388608, %v3565_v36 }
 0x323   : > { %v3230_v7 = vsel %vm9008_vm8, %v8536_v24, %v3227_v47  ;;  %v3423_v48 = vshll.u32 %v9038_v55, %v3421_v51  ;;  %v3574_v39 = vshrl.u32 %v10643_v50, %v8876_v12  ;;  %v3583_v22 = vor.u32 %v3582_v10, %v3581_v20 }
 0x324   : > { %v10644_v41 = vand.u32 2147483647, %v8574_v57  ;;  %v3424_v60 = vshrl.u32 %v3406_v15, %v3422_v9  ;;  %v3427_v38 = vadd.s32 127, %v3426_v8  ;;  %vm3590_vm15 = vcmp.lt.s32.totalorder %v8873_v59, 1 }
 0x325   : > { %vm3592_vm2 = vcmp.lt.s32.totalorder %v8873_v59, 3  ;;  %vm3591_vm4 = vcmp.lt.s32.totalorder %v8873_v59, 2  ;;  %v3595_v54 = vsel %vm3593_vm3, %v3583_v22, 2102212464  ;;  %v3598_v55 = vsel %vm3590_vm15, %v3577_v58, %v3580_v27 }
 0x326   : > { %vm9104_vm13 = vcmp.le.f32.partialorder %v10644_v41, 0.7853982  ;;  %v3600_v12 = vsel %vm3592_vm2, %v3583_v22, %v8982_v56  ;;  %6491 = vcosq.f32 %v3230_v7  ;;  %v3425_v36 = vor.u32 %v3424_v60, %v3423_v48 }
 0x327   : > { %v3428_v11 = vshll.u32 %v3427_v38, 23  ;;  %v3601_v62 = vsel %vm3591_vm4, %v3598_v55, %v3600_v12  ;;  %6493 = vsinq.f32 %v3230_v7  ;;  %v3602_v15 = vsel %vm3590_vm15, %v3580_v27, %v3583_v22 }
 0x328   : > { %v3604_v35 = vsel %vm3592_vm2, %v8959_v16, %v8998_v42  ;;  %v3606_v26 = vshll.u32 %v3566_v19, 8  ;;  %v3594_v61 = vsel %vm3590_vm15, %v3574_v39, %v3577_v58  ;;  %v3596_v20 = vsel %vm3592_vm2, %v3580_v27, %v3595_v54 }
 0x329   : > { %v3429_v52 = vor.u32 4788187, %v3428_v11  ;;  %v3605_v47 = vsel %vm3591_vm4, %v3602_v15, %v3604_v35  ;;  %v3432_v7 = vcvt.s32.f32 %v3425_v36  ;;  %v3437_v16 = vsel %vm3352_vm14, %v3436_v4, %v9025_v28 }
 0x32a   : > { %v9120_v51 = vmul.u32.u64.low %v3606_v26, %v3605_v47  ;;  %v9121_v56 = vmul.u32.u64.high %v3606_v26, %v3605_v47, %v9120_v51  ;;  %v9123_v10 = vmul.u32.u64.low %v3606_v26, %v3601_v62  ;;  %v9124_v9 = vmul.u32.u64.high %v3606_v26, %v3601_v62, %v9123_v10 }
 0x32b   : > { %v3430_v8 = vand.u32 2147483647, %v3429_v52  ;;  %vm3133_vm3 = vcmp.lt.s32.totalorder %v9049_v45, 2  ;;  %v9131_v42 = vand.u32 3, %v3235_v29  ;;  %v3597_v27 = vsel %vm3591_vm4, %v3594_v61, %v3596_v20 }
 0x32c   : > { %v9133_v58 = vsel %vm3133_vm3, %v3136_v2, %v3139_v40  ;;  %v3766_v19 = vand.u32 2147483647, %v8802_v63  ;;  %v3343_v39 = vxor.u32 2147483648, %v9044_v31  ;;  %v3784_v22 = vshrl.u32 %v10633_v44, %v8990_v32 }
 0x32d   : > { %v3433_v48 = vmul.f32 %v3432_v7, %v3430_v8  ;;  %v3787_v28 = vshrl.u32 %v10634_v43, %v8990_v32  ;;  %v3439_v45 = vsel %vm9104_vm13, 0, %v3437_v16  ;;  %v9145_v29 = vand.u32 3, %v3339_v25 }
 0x32e   : > { %vm3615_vm5 = vc.u32 %v9121_v56, %v9123_v10  ;;  %v3616_v59 = vadd.s32 1, %v9124_v9  ;;  %v3613_v40 = vmul.u32 %v3606_v26, %v3597_v27  ;;  %v3783_v4 = vshll.u32 %v10643_v50, %v8967_v0 }
 0x32f   : > { %v3434_v2 = vxor.u32 2147483648, %v3433_v48  ;;  %v3786_v41 = vshll.u32 %v10633_v44, %v8967_v0  ;;  %vm3241_vm6 = vcmp.eq.s32.totalorder %v9131_v42, 2  ;;  %v3773_v25 = vand.u32 8388607, %v3766_v19 }
 0x330   : > { %v3617_v60 = vsel %vm3615_vm5, %v3616_v59, %v9124_v9  ;;  %v3789_v38 = vshll.u32 %v10634_v43, %v8967_v0  ;;  %v3790_v54 = vshrl.u32 %v10635_v23, %v8990_v32  ;;  %v6492_v55 = vpop.eup %6491  ;;  %vm3238_vm7 = vcmp.eq.s32.totalorder %v9131_v42, 0 }
 0x331   : > { %v3435_v12 = vsel %vm3352_vm14, %v3434_v2, %v3433_v48  ;;  %v3618_v44 = vadd.s32 %v3617_v60, %v3613_v40  ;;  %v3785_v36 = vor.u32 %v3784_v22, %v3783_v4  ;;  %v3788_v11 = vor.u32 %v3787_v28, %v3786_v41  ;;  %v6494_v62 = vpop.eup %6493 }
 0x332   : > { %v3438_v15 = vsel %vm9104_vm13, %v8574_v57, %v3435_v12  ;;  %v3443_v35 = vadd.s32 3, %v3439_v45  ;;  %v3346_v43 = vxor.u32 2147483648, %v9040_v3  ;;  %v3791_v0 = vor.u32 %v3790_v54, %v3789_v38 }
 0x333   : > { %6495 = vcosq.f32 %v3438_v15  ;;  %vm3341_vm8 = vcmp.lt.s32.totalorder %v9145_v29, 2  ;;  %vm3342_vm9 = vcmp.eq.s32.totalorder %v9145_v29, 0  ;;  %v3619_v23 = vadd.s32 536870912, %v3618_v44 }
 0x334   : > { %6497 = vsinq.f32 %v3438_v15  ;;  %v3344_v26 = vsel %vm3342_vm9, %v9040_v3, %v3343_v39  ;;  %v3774_v52 = vor.u32 8388608, %v3773_v25  ;;  %vm3798_vm1 = vcmp.lt.s32.totalorder %v8984_v33, 1 }
 0x335   : > { %v3242_v61 = vxor.u32 2147483648, %v6492_v55  ;;  %v9173_v20 = vshrl.u32 %v3619_v23, 30  ;;  %vm3800_vm11 = vcmp.lt.s32.totalorder %v8984_v33, 3  ;;  %v3806_v49 = vsel %vm3798_vm1, %v3785_v36, %v3788_v11 }
 0x336   : > { %v3239_v47 = vxor.u32 2147483648, %v6494_v62  ;;  %v3808_v51 = vsel %vm3800_vm11, %v3791_v0, %v9055_v14  ;;  %v3810_v9 = vsel %vm3798_vm1, %v3788_v11, %v3791_v0  ;;  %v3812_v3 = vsel %vm3800_vm11, %v9029_v13, %v9062_v46 }
 0x337   : > { %vm3345_vm10 = vcmp.eq.s32.totalorder %v9145_v29, 2  ;;  %v3621_v8 = vshll.u32 %v9173_v20, 30  ;;  %v3782_v7 = vshrl.u32 %v10643_v50, %v8990_v32  ;;  %vm3799_vm14 = vcmp.lt.s32.totalorder %v8984_v33, 2 }
 0x338   : > { %vm3234_vm13 = vweird.f32 %v8536_v24  ;;  %v3803_v14 = vsel %vm3801_vm12, %v3791_v0, 2102212464  ;;  %v3809_v16 = vsel %vm3799_vm14, %v3806_v49, %v3808_v51  ;;  %v3813_v13 = vsel %vm3799_vm14, %v3810_v9, %v3812_v3 }
 0x339   : > { %v3814_v46 = vshll.u32 %v3774_v52, 8  ;;  %v3243_v27 = vsel %vm3241_vm6, %v3242_v61, %v6494_v62  ;;  %v3444_v48 = vand.u32 3, %v3443_v35  ;;  %v3347_v32 = vsel %vm3345_vm10, %v3346_v43, %v9044_v31 }
 0x33a   : > { %v9202_v50 = vsub.s32 %v3618_v44, %v3621_v8  ;;  %v3240_v39 = vsel %vm3238_vm7, %v6492_v55, %v3239_v47  ;;  %v3802_v22 = vsel %vm3798_vm1, %v3782_v7, %v3785_v36  ;;  %v3804_v2 = vsel %vm3800_vm11, %v3788_v11, %v3803_v14 }
 0x33b   : > { %v9208_v28 = vmul.u32.u64.low %v3814_v46, %v3813_v13  ;;  %v9209_v45 = vmul.u32.u64.high %v3814_v46, %v3813_v13, %v9208_v28  ;;  %v9214_v40 = vmul.u32.u64.low %v3814_v46, %v3809_v16  ;;  %v9215_v4 = vmul.u32.u64.high %v3814_v46, %v3809_v16, %v9214_v40 }
 0x33c   : > { %v3624_v59 = vsub.s32 0, %v9202_v50  ;;  %v3742_v31 = vand.u32 2147483647, %v9066_v18  ;;  %v3744_v41 = vcvt.s32.f32 %v9058_v53  ;;  %vm3130_vm12 = vweird.f32 %v8522_v34 }
 0x33d   : > { %v3348_v60 = vsel %vm3341_vm8, %v3344_v26, %v3347_v32  ;;  %v6496_v25 = vpop.eup %6495  ;;  %vm3237_vm15 = vcmp.lt.s32.totalorder %v9131_v42, 2  ;;  %v9225_v38 = vsel %vm3130_vm12, nan, %v9133_v58  ;;  %vm3338_vm2 = vweird.f32 %v8532_v21 }
 0x33e   : > { %v5150_v54 = vmin.u32 %v3624_v59, %v9202_v50  ;;  %v6498_v55 = vpop.eup %6497  ;;  %v3244_v12 = vsel %vm3237_vm15, %v3240_v39, %v3243_v27  ;;  %vm3449_vm4 = vcmp.eq.s32.totalorder %v3444_v48, 2  ;;  %v3450_v18 = vxor.u32 2147483648, %v6496_v25 }
 0x33f   : > { %v3805_v34 = vsel %vm3799_vm14, %v3802_v22, %v3804_v2  ;;  %v3447_v53 = vxor.u32 2147483648, %v6498_v55  ;;  %v9231_v29 = vsel %vm3338_vm2, nan, %v3348_v60  ;;  %vm3823_vm3 = vc.u32 %v9209_v45, %v9214_v40 }
 0x340   : > { %v3626_v44 = vclz %v5150_v54  ;;  %vm3445_vm5 = vcmp.lt.s32.totalorder %v3444_v48, 2  ;;  %vm3446_vm6 = vcmp.eq.s32.totalorder %v3444_v48, 0  ;;  %v3451_v42 = vsel %vm3449_vm4, %v3450_v18, %v6498_v55 }
 0x341   : > { %v3824_v21 = vadd.s32 1, %v9215_v4  ;;  %v9238_v58 = vsel %vm3234_vm13, nan, %v3244_v12  ;;  %v3448_v36 = vsel %vm3446_vm6, %v6496_v25, %v3447_v53  ;;  %v3821_v33 = vmul.u32 %v3814_v46, %v3805_v34  ;;  %v10653_v53 = vld [vmem:[#allocation93_spill] sm:$0xff] }
 0x342   : > { %v5151_v11 = vadd.s32 4294967294, %v3626_v44  ;;  %vm3442_vm7 = vweird.f32 %v8574_v57  ;;  %v3452_v62 = vsel %vm3445_vm5, %v3448_v36, %v3451_v42  ;;  %v3886_v15 = vand.u32 4294901760, %v9231_v29 }
 0x343   : > { %v3825_v35 = vsel %vm3823_vm3, %v3824_v21, %v9215_v4  ;;  %v3745_v43 = vmul.f32 %v3744_v41, %v3742_v31  ;;  %v9243_v0 = vsel %vm3442_vm7, nan, %v3452_v62  ;;  %v3880_v26 = vand.u32 4294901760, %v9238_v58 }
 0x344   : > { %vm5152_vm8 = vcmp.lt.s32.totalorder %v5151_v11, 0  ;;  %v3826_v23 = vadd.s32 %v3825_v35, %v3821_v33  ;;  %v3884_v24 = vand.u32 4294901760, %v9243_v0  ;;  %v3882_v52 = vand.u32 4294901760, %v9225_v38 }
 0x345   : > { %v3629_v61 = vsel %vm5152_vm8, 0, %v5151_v11  ;;  %v3614_v57 = vadd.s32 %v9123_v10, %v9121_v56  ;;  %v3538_v9 = vxor.u32 2147483648, %v9036_v5  ;;  %v3746_v16 = vxor.u32 2147483648, %v3745_v43 }
 0x346   : > { %v3630_v49 = vsub.s32 32, %v3629_v61  ;;  %v3634_v47 = vsub.s32 4294967266, %v3629_v61  ;;  %v3827_v51 = vadd.s32 536870912, %v3826_v23  ;;  %v9255_v3 = vpack.c.bf16 %v3884_v24, %v3880_v26 }
 0x347   : > { %v9261_v8 = vpack.c.bf16 %v3886_v15, %v3882_v52  ;;  %v3631_v7 = vshll.u32 %v9202_v50, %v3629_v61  ;;  %vm3456_vm9 = vcmp.lt.s32.totalorder %v8603_v30, 0  ;;  %vm3664_vm1 = vcmp.lt.s32.totalorder %v8676_v37, 0 }
 0x348   : > { %v3632_v56 = vshrl.u32 %v3614_v57, %v3630_v49  ;;  %v3635_v10 = vadd.s32 127, %v3634_v47  ;;  %v9264_v14 = vshrl.u32 %v3827_v51, 30  ;;  %6080 = vmatprep.subr.bf16.mxu0 %v9255_v3  ;;  %6104 = vmatprep.subr.bf16.mxu1 %v9255_v3  ;;  %v3539_v48 = vsel %vm3456_vm9, %v3538_v9, %v9036_v5 }
 0x349   : > { %6082 = vmatpush1.bf16.msra.mxu0 %v9261_v8  ;;  %6106 = vmatpush1.bf16.msra.mxu1 %v9261_v8  ;;  %v10647_v39 = vand.u32 2147483647, %v8603_v30  ;;  %v3747_v28 = vsel %vm3664_vm1, %v3746_v16, %v3745_v43  ;;  %v10650_v31 = vand.u32 2147483647, %v8676_v37  ;;  %v3644_v12 = vsub.s32 4, %v9173_v20 }
 0x34a   : > { %v3633_v13 = vor.u32 %v3632_v56, %v3631_v7  ;;  %v3636_v46 = vshll.u32 %v3635_v10, 23  ;;  %v3829_v27 = vshll.u32 %v9264_v14, 30  ;;  %v6755_v34 = vmov 0.0  }
 0x34b   : > { %vm9278_vm11 = vcmp.le.f32.partialorder %v10647_v39, 0.7853982  ;;  %vm9289_vm10 = vcmp.le.f32.partialorder %v10650_v31, 0.7853982  ;;  %3952 = vmatprep.mubr.f32.mxu0 %v6755_v34  ;;  %4237 = vmatprep.mubr.f32.mxu1 %v6755_v34  ;;  %vm3560_vm14 = vcmp.lt.s32.totalorder %v8664_v6, 0  ;;  %v3540_v44 = vsub.s32 4, %v10653_v53 }
 0x34c   : > { %v3637_v32 = vor.u32 4788187, %v3636_v46  ;;  %v3830_v50 = vsub.s32 %v3826_v23, %v3829_v27  ;;  %v3542_v59 = vsel %vm9278_vm11, %v8603_v30, %v3539_v48  ;;  %v3640_v4 = vcvt.s32.f32 %v3633_v13 }
 0x34d   : > { %v3750_v60 = vsel %vm9289_vm10, %v8676_v37, %v3747_v28  ;;  %6499 = vcosq.f32 %v3542_v59  ;;  %vm9303_vm13 = vcmp.le.f32.partialorder %v3558_v1, 0.7853982  ;;  %v3748_v11 = vsub.s32 4, %v8840_v17 }
 0x34e   : > { %v3638_v2 = vand.u32 2147483647, %v3637_v32  ;;  %v3832_v5 = vsub.s32 0, %v3830_v50  ;;  %6501 = vsinq.f32 %v3542_v59  ;;  %v3645_v62 = vsel %vm3560_vm14, %v3644_v12, %v9173_v20 }
 0x34f   : > { %6503 = vcosq.f32 %v3750_v60  ;;  %v3541_v1 = vsel %vm3456_vm9, %v3540_v44, %v10653_v53  ;;  %v3822_v43 = vadd.s32 %v9214_v40, %v9209_v45  ;;  %v3749_v57 = vsel %vm3664_vm1, %v3748_v11, %v8840_v17  ;;  %v3870_v11 = vld [vmem:[%s9902_s8] sm:$0x7] }
 0x350   : > { %v3641_v25 = vmul.f32 %v3640_v4, %v3638_v2  ;;  %v5158_v54 = vmin.u32 %v3832_v5, %v3830_v50  ;;  %6505 = vsinq.f32 %v3750_v60  ;;  %v3647_v20 = vsel %vm9303_vm13, 0, %v3645_v62 }
 0x351   : > { %v3543_v9 = vsel %vm9278_vm11, 0, %v3541_v1  ;;  %v3751_v56 = vsel %vm9289_vm10, 0, %v3749_v57  ;;  %v3651_v13 = vadd.s32 3, %v3647_v20  ;;  %v3852_v4 = vsub.s32 4, %v9264_v14 }
 0x352   : > { %v3642_v55 = vxor.u32 2147483648, %v3641_v25  ;;  %v3834_v18 = vclz %v5158_v54  ;;  %v3547_v46 = vadd.s32 3, %v3543_v9  ;;  %v3755_v27 = vadd.s32 3, %v3751_v56 }
 0x353   : > { %v3652_v59 = vand.u32 3, %v3651_v13  ;;  %vm3768_vm15 = vcmp.lt.s32.totalorder %v8802_v63, 0  ;;  %vm9330_vm2 = vcmp.le.f32.partialorder %v3766_v19, 0.7853982  ;;  %vm3754_vm10 = vweird.f32 %v8676_v37 }
 0x354   : > { %v3643_v21 = vsel %vm3560_vm14, %v3642_v55, %v3641_v25  ;;  %v5159_v36 = vadd.s32 4294967294, %v3834_v18  ;;  %v3548_v22 = vand.u32 3, %v3547_v46  ;;  %v3756_v5 = vand.u32 3, %v3755_v27 }
 0x355   : > { %v3646_v33 = vsel %vm9303_vm13, %v8664_v6, %v3643_v21  ;;  %vm3654_vm4 = vcmp.eq.s32.totalorder %v3652_v59, 0  ;;  %vm3657_vm3 = vcmp.eq.s32.totalorder %v3652_v59, 2  ;;  %v3853_v44 = vsel %vm3768_vm15, %v3852_v4, %v9264_v14 }
 0x356   : > { %6507 = vcosq.f32 %v3646_v33  ;;  %vm5160_vm12 = vcmp.lt.s32.totalorder %v5159_v36, 0  ;;  %vm3550_vm5 = vcmp.eq.s32.totalorder %v3548_v22, 0  ;;  %vm3758_vm6 = vcmp.eq.s32.totalorder %v3756_v5, 0 }
 0x357   : > { %6509 = vsinq.f32 %v3646_v33  ;;  %v3837_v35 = vsel %vm5160_vm12, 0, %v5159_v36  ;;  %v6500_v7 = vpop.eup %6499  ;;  %vm3761_vm7 = vcmp.eq.s32.totalorder %v3756_v5, 2  ;;  %vm3553_vm8 = vcmp.eq.s32.totalorder %v3548_v22, 2 }
 0x358   : > { %v3838_v23 = vsub.s32 32, %v3837_v35  ;;  %v3842_v61 = vsub.s32 4294967266, %v3837_v35  ;;  %v3839_v49 = vshll.u32 %v3830_v50, %v3837_v35  ;;  %v6502_v45 = vpop.eup %6501  ;;  %v3554_v18 = vxor.u32 2147483648, %v6500_v7 }
 0x359   : > { %v6504_v16 = vpop.eup %6503  ;;  %v3551_v31 = vxor.u32 2147483648, %v6502_v45  ;;  %v3855_v14 = vsel %vm9330_vm2, 0, %v3853_v44  ;;  %vm3757_vm9 = vcmp.lt.s32.totalorder %v3756_v5, 2  ;;  %vm3653_vm1 = vcmp.lt.s32.totalorder %v3652_v59, 2 }
 0x35a   : > { %v3840_v47 = vshrl.u32 %v3822_v43, %v3838_v23  ;;  %v3843_v51 = vadd.s32 127, %v3842_v61  ;;  %v6506_v48 = vpop.eup %6505  ;;  %v3762_v60 = vxor.u32 2147483648, %v6504_v16  ;;  %v3555_v35 = vsel %vm3553_vm8, %v3554_v18, %v6502_v45 }
 0x35b   : > { %v3759_v41 = vxor.u32 2147483648, %v6506_v48  ;;  %v3552_v21 = vsel %vm3550_vm5, %v6500_v7, %v3551_v31  ;;  %v3878_v43 = vsel %vm621_vm0, %v3870_v11, 0  ;;  %v9347_v23 = vsub.f32 %v9243_v0, %v3884_v24 }
 0x35c   : > { %v3841_v40 = vor.u32 %v3840_v47, %v3839_v49  ;;  %v3844_v10 = vshll.u32 %v3843_v51, 23  ;;  %v3763_v19 = vsel %vm3761_vm7, %v3762_v60, %v6506_v48  ;;  %vm3549_vm11 = vcmp.lt.s32.totalorder %v3548_v22, 2 }
 0x35d   : > { %v3760_v36 = vsel %vm3758_vm6, %v6504_v16, %v3759_v41  ;;  %v3859_v57 = vadd.s32 3, %v3855_v14  ;;  %v3556_v20 = vsel %vm3549_vm11, %v3552_v21, %v3555_v35  ;;  %vm3650_vm14 = vweird.f32 %v8664_v6 }
 0x35e   : > { %v3845_v17 = vor.u32 4788187, %v3844_v10  ;;  %v3848_v39 = vcvt.s32.f32 %v3841_v40  ;;  %v3764_v1 = vsel %vm3757_vm9, %v3760_v36, %v3763_v19  ;;  %v9351_v47 = vand.u32 4294901760, %v3878_v43 }
 0x35f   : > { %v3765_v49 = vsel %vm3754_vm10, nan, %v3764_v1  ;;  %vm3546_vm13 = vweird.f32 %v8603_v30  ;;  %v9357_v9 = vsub.f32 %v9238_v58, %v3880_v26  ;;  %v3978_v24 = vand.u32 4294901760, %v9347_v23 }
 0x360   : > { %v6508_v32 = vpop.eup %6507  ;;  %v3846_v50 = vand.u32 2147483647, %v3845_v17  ;;  %v3557_v0 = vsel %vm3546_vm13, nan, %v3556_v20  ;;  %v9363_v37 = vsub.f32 %v9231_v29, %v3886_v15  ;;  %v3860_v6 = vand.u32 3, %v3859_v57 }
 0x361   : > { %v6510_v28 = vpop.eup %6509  ;;  %v3658_v54 = vxor.u32 2147483648, %v6508_v32  ;;  %v3894_v7 = vand.u32 4294901760, %v3765_v49  ;;  %v9366_v45 = vsub.f32 %v3878_v43, %v9351_v47  ;;  %v9371_v58 = vsub.f32 %v9225_v38, %v3882_v52 }
 0x362   : > { %v3849_v2 = vmul.f32 %v3848_v39, %v3846_v50  ;;  %v3655_v25 = vxor.u32 2147483648, %v6510_v28  ;;  %v3890_v26 = vand.u32 4294901760, %v3557_v0  ;;  %v3966_v16 = vand.u32 4294901760, %v9357_v9 }
 0x363   : > { %v3659_v62 = vsel %vm3657_vm3, %v3658_v54, %v6510_v28  ;;  %v3979_v29 = vsub.f32 %v9347_v23, %v3978_v24  ;;  %vm3865_vm0 = vcmp.eq.s32.totalorder %v3860_v6, 2  ;;  %v9375_v13 = vsub.f32 %v3765_v49, %v3894_v7 }
 0x364   : > { %v3850_v12 = vxor.u32 2147483648, %v3849_v2  ;;  %v3656_v33 = vsel %vm3654_vm4, %v6508_v32, %v3655_v25  ;;  %v3984_v46 = vand.u32 4294901760, %v9363_v37  ;;  %vm3862_vm12 = vcmp.eq.s32.totalorder %v3860_v6, 0 }
 0x365   : > { %v3660_v61 = vsel %vm3653_vm1, %v3656_v33, %v3659_v62  ;;  %v3955_v38 = vand.u32 4294901760, %v9366_v45  ;;  %v9381_v48 = vsub.f32 %v3557_v0, %v3890_v26  ;;  %v3972_v32 = vand.u32 4294901760, %v9371_v58 }
 0x366   : > { %v3851_v53 = vsel %vm3768_vm15, %v3850_v12, %v3849_v2  ;;  %v3661_v51 = vsel %vm3650_vm14, nan, %v3660_v61  ;;  %vm3861_vm15 = vcmp.lt.s32.totalorder %v3860_v6, 2  ;;  %v3967_v39 = vsub.f32 %v9357_v9, %v3966_v16 }
 0x367   : > { %v3854_v42 = vsel %vm9330_vm2, %v8802_v63, %v3851_v53  ;;  %v3888_v56 = vand.u32 4294901760, %v3661_v51  ;;  %vm3858_vm2 = vweird.f32 %v8802_v63  ;;  %v3985_v59 = vsub.f32 %v9363_v37, %v3984_v46 }
 0x368   : > { %6511 = vcosq.f32 %v3854_v42  ;;  %v4008_v22 = vand.u32 4294901760, %v9375_v13  ;;  %v3980_v4 = vand.u32 4294901760, %v3979_v29  ;;  %v3956_v5 = vsub.f32 %v9366_v45, %v3955_v38 }
 0x369   : > { %6513 = vsinq.f32 %v3854_v42  ;;  %v9378_v27 = vsub.f32 %v3661_v51, %v3888_v56  ;;  %v3973_v41 = vsub.f32 %v9371_v58, %v3972_v32  ;;  %v3996_v60 = vand.u32 4294901760, %v9381_v48 }
 0x36a   : > { %v3968_v54 = vand.u32 4294901760, %v3967_v39  ;;  %v6085_v55 = vpack.c.bf16 %v3894_v7, %v3890_v26  ;;  %v6111_v12 = vpack.c.bf16 %v3978_v24, %v3966_v16  ;;  %v3986_v18 = vand.u32 4294901760, %v3985_v59 }
 0x36b   : > { %v3990_v31 = vand.u32 4294901760, %v9378_v27  ;;  %v4009_v53 = vsub.f32 %v9375_v13, %v4008_v22  ;;  %v3957_v42 = vand.u32 4294901760, %v3956_v5  ;;  %v3974_v19 = vand.u32 4294901760, %v3973_v41 }
 0x36c   : > { %v6087_v44 = vpack.c.bf16 %v3980_v4, %v3968_v54  ;;  %v3997_v11 = vsub.f32 %v9381_v48, %v3996_v60  ;;  %v6113_v14 = vpack.c.bf16 %v3984_v46, %v3972_v32  ;;  %v6117_v51 = vpack.c.bf16 %v4008_v22, %v3996_v60 }
 0x36d   : > { %v3991_v36 = vsub.f32 %v9378_v27, %v3990_v31  ;;  %v6089_v62 = vpack.c.bf16 %v3986_v18, %v3974_v19  ;;  %v4010_v35 = vand.u32 4294901760, %v4009_v53  ;;  %v6095_v0 = vpack.c.bf16 %v9347_v23, %v9357_v9 }
 0x36e   : > { %v3998_v57 = vand.u32 4294901760, %v3997_v11  ;;  %v6097_v24 = vpack.c.bf16 %v9363_v37, %v9371_v58  ;;  %v6101_v23 = vpack.c.bf16 %v9375_v13, %v9381_v48 }
 0x36f   : > { %v3992_v43 = vand.u32 4294901760, %v3991_v36 }
 0x370   : > { %v6093_v49 = vpack.c.bf16 %v4010_v35, %v3998_v57 }
 0x372   : > { %v6512_v30 = vpop.eup %6511 }
 0x373   : > { %v6514_v40 = vpop.eup %6513  ;;  %v3866_v10 = vxor.u32 2147483648, %v6512_v30 }
 0x374   : > { %v3863_v15 = vxor.u32 2147483648, %v6514_v40 }
 0x375   : > { %v3867_v17 = vsel %vm3865_vm0, %v3866_v10, %v6514_v40 }
 0x376   : > { %v3864_v52 = vsel %vm3862_vm12, %v6512_v30, %v3863_v15 }
 0x377   : > { %v3868_v50 = vsel %vm3861_vm15, %v3864_v52, %v3867_v17 }
 0x378   : > { %v3869_v28 = vsel %vm3858_vm2, nan, %v3868_v50 }
 0x379   : > { %v3892_v2 = vand.u32 4294901760, %v3869_v28 }
 0x37b   : > { %v6083_v25 = vpack.c.bf16 %v3892_v2, %v3888_v56  ;;  %v4001_v63 = vsub.f32 %v3869_v28, %v3892_v2 }
 0x37d   : > { %6084 = vmatprep.subr.bf16.mxu0 %v6083_v25  ;;  %6108 = vmatprep.subr.bf16.mxu1 %v6083_v25  ;;  %v4002_v21 = vand.u32 4294901760, %v4001_v63  ;;  %v6099_v6 = vpack.c.bf16 %v4001_v63, %v9378_v27 }
 0x37e   : > { %6086 = vmatpush1.bf16.msra.mxu0 %v6085_v55  ;;  %6110 = vmatpush1.bf16.msra.mxu1 %v6085_v55 }
 0x37f   : > { %6088 = vmatprep.subr.bf16.mxu0 %v6087_v44  ;;  %6112 = vmatprep.subr.bf16.mxu1 %v6111_v12  ;;  %v4003_v33 = vsub.f32 %v4001_v63, %v4002_v21  ;;  %v6115_v1 = vpack.c.bf16 %v4002_v21, %v3990_v31 }
 0x381   : > { %3958 = vmatmul.mubr.f32.vlgmr.msra.gmra.mrb[18].mxu0 %v3957_v42  ;;  %4241 = vmatmul.mubr.f32.vlgmr.msra.gmra.mrb[18].mxu1 %v3955_v38  ;;  %v4004_v61 = vand.u32 4294901760, %v4003_v33 }
 0x382   : > { %6090 = vmatpush1.bf16.msra.mxu0 %v6089_v62  ;;  %6114 = vmatpush1.bf16.msra.mxu1 %v6113_v14 }
 0x383   : > { %6116 = vmatprep.subr.bf16.mxu1 %v6115_v1  ;;  %v6091_v20 = vpack.c.bf16 %v4004_v61, %v3992_v43  ;;  %4068 = vmatprep.mubr.f32.mxu0 %v6755_v34 }
 0x384   : > { %4335 = vmatprep.mubr.f32.mxu1 %v6755_v34 }
 0x385   : > { %6092 = vmatprep.subr.bf16.mxu0 %v6091_v20 }
 0x386   : > { %6094 = vmatpush1.bf16.msra.mxu0 %v6093_v49  ;;  %6118 = vmatpush1.bf16.msra.mxu1 %v6117_v51 }
 0x387   : > { %6096 = vmatprep.subr.bf16.mxu0 %v6095_v0  ;;  %6120 = vmatprep.subr.bf16.mxu1 %v9255_v3  ;;  %v3875_v3 = vpop.permute.xlu0 %3874 }
 0x389   : > { %4070 = vmatmul.mubr.f32.vlgmr.msra.gmra.mrb[18].mxu0 %v9351_v47  ;;  %4337 = vmatmul.mubr.f32.vlgmr.msra.gmra.mrb[18].mxu1 %v9351_v47 }
 0x38a   : > { %6098 = vmatpush1.bf16.msra.mxu0 %v6097_v24  ;;  %6122 = vmatpush1.bf16.msra.mxu1 %v9261_v8 }
 0x38b   : > { %6100 = vmatprep.subr.bf16.mxu0 %v6099_v6  ;;  %6124 = vmatprep.subr.bf16.mxu1 %v6083_v25 }
 0x38c   : > { %4156 = vmatprep.mubr.f32.mxu0 %v6755_v34  ;;  %4415 = vmatprep.mubr.f32.mxu1 %v6755_v34 }
 0x38e   : > { %6102 = vmatpush1.bf16.msra.mxu0 %v6101_v23  ;;  %6126 = vmatpush1.bf16.msra.mxu1 %v6085_v55 }
 0x391   : > { %4159 = vmatmul.mubr.f32.vlgmr.msra.gmra.mrb[18].mxu0 %v9366_v45  ;;  %4417 = vmatmul.mubr.f32.vlgmr.msra.gmra.mrb[18].mxu1 %v9351_v47 }
 0x464   : > { %v4160_v9 = vpop.f32.mrb[18].mxu0  ;;  %v4418_v37 = vpop.f32.mrb[18].mxu1 }
 0x465   : > { %v6153_v7 = vadd.f32 %v4160_v9, %v3875_v3  ;;  %v4162_v8 = vpop.f32.mrb[19].mxu0  ;;  %v4420_v56 = vpop.f32.mrb[19].mxu1 }
 0x466   : > { %v6155_v30 = vadd.f32 %v4162_v8, %v3875_v3 }
 0x467   : > { %v6154_v58 = vadd.f32 %v6153_v7, %v4418_v37 }
 0x468   : > { %v6156_v26 = vadd.f32 %v6155_v30, %v4420_v56 }
 0x469   : > { %v5161_v40 = vmul.f32 -1.442695, %v6154_v58 }
 0x46a   : > { %v5162_v10 = vmul.f32 -1.442695, %v6156_v26 }
 0x46b   : > { %6515 = vpow2.f32 %v5161_v40 }
 0x46c   : > { %6517 = vpow2.f32 %v5162_v10 }
 0x475   : > { %v6516_v34 = vpop.eup %6515 }
 0x476   : > { %v6518_v16 = vpop.eup %6517  ;;  %v4429_v45 = vadd.f32 1.0, %v6516_v34 }
 0x477   : > { %v4430_v29 = vadd.f32 1.0, %v6518_v16 }
 0x478   : > { %6519 = vrcp.f32 %v4429_v45 }
 0x479   : > { %6521 = vrcp.f32 %v4430_v29 }
 0x480   : > { %4451 = sbr.rel (!%p6873_p3) target bundleno = 1188 (0x4a4), region = 64 }
 0x482   : > { %v6520_v47 = vpop.eup %6519 }
 0x483   : > { %v6522_v15 = vpop.eup %6521 }
 0x484   : > { %v4437_v13 = vcombine.low %v6520_v47, %v6522_v15 }
 0x486   : > { %4439 = vst [vmem:[%s9413_s16] sm:$0x77] %v4437_v13 }
 0x487   : > { %s10688_s28 = smov (!%p4454_p0, %s4453_s28), 2 }
 0x488   : > { %s9420_s24 = sshll.u32 %s10688_s28, 4 }
 0x489   : > { %s4458_s27 = ssub.s32 32, %s9420_s24 }
 0x48a   : > { %4459 = vsyncadd %s10147_s18, %s4458_s27  ;;  %s6270_s14 = smul.u32 5, %s6669_s23  ;;  %p5167_p1 = scmp.ne.s32.totalorder %s9420_s24, 0 }
 0x48b   : > { %s4466_s15 = sshll.u32 %s8516_s7, 4  ;;  %s6756_s18 = smov [#allocation3]   ;;  %s9428_s15 = int_to_ptr.vmem [resolvable:$true] %s4466_s15 }
 0x48c   : > { %s4462_s0 = sadd.s32 %s6270_s14, %s5165_s29  ;;  %s6523_s27 = scalar_lea.vmem %s9428_s15, %s9420_s24 }
 0x48d   : > { %s5168_s28 = sshll.u32 %s4462_s0, 4  ;;  %p6524_p2 = scmp.ne.s32.totalorder %s9428_s15, %s6523_s27 }
 0x48e   : > { %s4464_s3 = scalar_lea.hbm %s9904_s10, %s5168_s28  ;;  %s6527_s4 = sshll.u32 %s6756_s18, 4  ;;  %s6528_s4 = int_to_ptr.vmem [resolvable:$false] %s6527_s4 }
 0x48f   : > { %p6525_p4 = pnand %p6524_p2, %p5167_p1  ;;  %s6529_s7 = scalar_lea.vmem %s6528_s4, 64 }
 0x490   : > { %p6530_p6 = scmp.lt.s32.totalorder %s9428_s15, %s6528_s4  ;;  %p6531_p7 = scmp.lt.s32.totalorder %s6529_s7, %s6523_s27 }
 0x491   : > { %p6526_p5 = pneg %p6525_p4 }
 0x492   : > { %p6532_p9 = por %p6531_p7, %p6530_p6 }
 0x494   : > { %p6533_p10 = pnand %p6532_p9, %p6526_p5 }
 0x496   : > { %6536 = shalt.err (!%p6533_p10)
}
 0x497   : > { %s6537_s0 = scalar_lea.hbm %s4464_s3, %s9420_s24  ;;  %s6541_s29 = scalar_lea.hbm %s9904_s10, 160 }
 0x498   : > { %p6538_p11 = scmp.ne.s32.totalorder %s4464_s3, %s6537_s0  ;;  %p6542_p0 = scmp.lt.u32.totalorder %s4464_s3, %s9904_s10 }
 0x499   : > { %p6543_p2 = scmp.lt.u32.totalorder %s6541_s29, %s6537_s0  ;;  %p6545_p6 = scmp.lt.u32.totalorder %s6537_s0, %s4464_s3 }
 0x49a   : > { %p6539_p12 = pnand %p6538_p11, %p5167_p1 }
 0x49b   : > { %p6544_p4 = por %p6543_p2, %p6542_p0 }
 0x49c   : > { %p6540_p13 = pneg %p6539_p12 }
 0x49d   : > { %p6546_p5 = por %p6545_p6, %p6544_p4 }
 0x49f   : > { %p6547_p7 = pnand %p6546_p5, %p6540_p13 }
 0x4a1   : > { %6550 = shalt.err (!%p6547_p7)
}
 0x4a2   : > { %s10658_s4 = scalar_lea.sflag [#allocation4], %s8487_s30 }
 0x4a3   : > { %4469 = dma.vmem_to_hbm [thread:$0]  (%p5167_p1), %s9428_s15, %s9420_s24, %s4464_s3, %s10658_s4  }
 0x4a4 PF: > { %4472 = sbr.rel (!%p6873_p3) target bundleno = 1360 (0x550), region = 68  ;;  %s5169_s28 = sshll.u32 (%p6873_p3), %s6665_s22, 1 }
 0x4a5   : > { %s6271_s27 = smul.u32 (%p6873_p3), 5, %s6669_s23  ;;  %s4474_s7 = ssub.s32 (%p6873_p3), 5, %s5169_s28 }
 0x4a6   : > { %p4475_p9 = scmp.lt.s32.totalorder (%p6873_p3), %s4474_s7, 2 }
 0x4a7   : > { %s4480_s0 = sadd.s32 (%p6873_p3), %s6271_s27, %s5169_s28 }
 0x4a8   : > { %s5172_s1 = sshll.u32 (%p6873_p3), %s4480_s0, 2 }
 0x4a9   : > { %s9461_s30 = scalar_lea.vmem (%p6873_p3), %s9905_s11, %s5172_s1  }
 0x4ab   : > { %s10690_s7 = smov (!%p4475_p9, %s4474_s7), 2 }
 0x4ac   : > { %s5170_s14 = sshll.u32 %s10690_s7, 6  ;;  %s9463_s3 = sshll.u32 %s10690_s7, 2 }
 0x4ad   : > { %p5174_p1 = scmp.eq.s32.totalorder %s5170_s14, 0 }
 0x4ae   : > { %p4487_p3 = scmp.lt.u32.totalorder (!%p5174_p1), %s9463_s3, 8 }
 0x4af   : > { %4486 = sbr.rel (%p5174_p1) target bundleno = 1360 (0x550), region = 72 }
 0x4b6   : > { %4490 = sbr.rel (%p4487_p3) target bundleno = 1351 (0x547), region = 76  ;;  %s9467_s22 = sand.u32 (!%p4487_p3), 7, %s9463_s3  }
 0x4b7   : > { %p4506_p10 = scmp.eq.s32.totalorder (!%p4487_p3), %s9467_s22, 0  ;;  %p5175_p11 = scmp.ne.s32.totalorder (!%p4487_p3), %s9467_s22, 0 }
 0x4bd   : > { %4509 = sbr.rel (%p5175_p11) target bundleno = 1280 (0x500), region = 91  ;;  %s4510_s23 = sshrl.u32 (!%p5175_p11), %s9463_s3, 3 }
 0x4be   : > { %s9474_s12 = sshrl.u32 (!%p5175_p11), %s4510_s23, 6 }
 0x4bf   : > { %p5176_p12 = scmp.le.s32.totalorder (!%p5175_p11), %s9474_s12, 0 }
 0x4c4   : > { %5004 = sbr.rel (%p5176_p12) target bundleno = 1260 (0x4ec), region = 194  ;;  %s10659_s24 = smov (!%p5176_p12), %s9461_s30 }
 0x4c5   : > { %s10660_s15 = smov (!%p5176_p12), %s9413_s16  ;;  %s9483_s18 = smov (!%p5176_p12), 0  }
 0x4c6   : > { %s9485_s4 = smov (!%p5176_p12), 0  }
 0x4cb LB: >> { %v4523_v46 = vld [vmem:[%s6689_s15] sm:$0xff]  ;;  %v4525_v17 = vld [vmem:[%s6689_s15 + $0x8] sm:$0xff]  ;;  %v4527_v27 = vld [vmem:[%s6689_s15 + $0x10] sm:$0xff]  ;;  %s4651_s28 = sadd.s32 1, %s6693_s18  ;;  %s4517_s4 = sadd.s32 1, %s6697_s4   ;;  %s6697_s4 = sphi %s9485_s4, %s4517_s4   ;;  %s6693_s18 = sphi %s9483_s18, %s10663_s18   ;;  %s6689_s15 = sphi %s10660_s15, %s10662_s15   ;;  %s6685_s24 = sphi %s10659_s24, %s10661_s24  }
 0x4cc   : >> { %4524 = vst [vmem:[%s6685_s24] sm:$0xff] %v4523_v46  ;;  %4526 = vst [vmem:[%s6685_s24 + $0x8] sm:$0xff] %v4525_v17  ;;  %v4529_v38 = vld [vmem:[%s6689_s15 + $0x18] sm:$0xff]  ;;  %v4531_v52 = vld [vmem:[%s6689_s15 + $0x20] sm:$0xff]  ;;  %p4652_p13 = scmp.ge.s32.totalorder %s4651_s28, %s9474_s12  ;;  %p4516_p0 = scmp.ge.s32.totalorder %s4517_s4, %s9474_s12 }
 0x4cd   : >> { %4528 = vst [vmem:[%s6685_s24 + $0x10] sm:$0xff] %v4527_v27  ;;  %v4533_v48 = vld [vmem:[%s6689_s15 + $0x28] sm:$0xff]  ;;  %4530 = vst [vmem:[%s6685_s24 + $0x18] sm:$0xff] %v4529_v38  ;;  %v4535_v32 = vld [vmem:[%s6689_s15 + $0x30] sm:$0xff] }
 0x4ce   : >> { %4532 = vst [vmem:[%s6685_s24 + $0x20] sm:$0xff] %v4531_v52  ;;  %4534 = vst [vmem:[%s6685_s24 + $0x28] sm:$0xff] %v4533_v48  ;;  %v4537_v50 = vld [vmem:[%s6689_s15 + $0x38] sm:$0xff]  ;;  %v4539_v39 = vld [vmem:[%s6689_s15 + $0x40] sm:$0xff]  ;;  %s10692_s28 = smov (%p4652_p13, %s4651_s28), 0 }
 0x4cf   : >> { %4536 = vst [vmem:[%s6685_s24 + $0x30] sm:$0xff] %v4535_v32  ;;  %4538 = vst [vmem:[%s6685_s24 + $0x38] sm:$0xff] %v4537_v50  ;;  %v4541_v28 = vld [vmem:[%s6689_s15 + $0x48] sm:$0xff]  ;;  %v4543_v59 = vld [vmem:[%s6689_s15 + $0x50] sm:$0xff]  ;;  %s5177_s27 = sshll.u32 %s10692_s28, 9  ;;  %s10663_s18 = smov %s10692_s28 }
 0x4d0   : >> { %4540 = vst [vmem:[%s6685_s24 + $0x40] sm:$0xff] %v4539_v39  ;;  %v4545_v22 = vld [vmem:[%s6689_s15 + $0x58] sm:$0xff]  ;;  %4542 = vst [vmem:[%s6685_s24 + $0x48] sm:$0xff] %v4541_v28  ;;  %v4547_v2 = vld [vmem:[%s6689_s15 + $0x60] sm:$0xff]  ;;  %s9541_s7 = scalar_lea.vmem %s9413_s16, %s5177_s27 [#allocation5]   ;;  %s9544_s0 = scalar_lea.vmem %s9461_s30, %s5177_s27  }
 0x4d1   : >> { %4544 = vst [vmem:[%s6685_s24 + $0x50] sm:$0xff] %v4543_v59  ;;  %4546 = vst [vmem:[%s6685_s24 + $0x58] sm:$0xff] %v4545_v22  ;;  %v4549_v4 = vld [vmem:[%s6689_s15 + $0x68] sm:$0xff]  ;;  %v4551_v5 = vld [vmem:[%s6689_s15 + $0x70] sm:$0xff] }
 0x4d2   : >> { %4548 = vst [vmem:[%s6685_s24 + $0x60] sm:$0xff] %v4547_v2  ;;  %4550 = vst [vmem:[%s6685_s24 + $0x68] sm:$0xff] %v4549_v4  ;;  %v4553_v31 = vld [vmem:[%s6689_s15 + $0x78] sm:$0xff]  ;;  %v4555_v41 = vld [vmem:[%s6689_s15 + $0x80] sm:$0xff] }
 0x4d3   : >> { %4552 = vst [vmem:[%s6685_s24 + $0x70] sm:$0xff] %v4551_v5  ;;  %v4557_v60 = vld [vmem:[%s6689_s15 + $0x88] sm:$0xff]  ;;  %4554 = vst [vmem:[%s6685_s24 + $0x78] sm:$0xff] %v4553_v31  ;;  %v4559_v25 = vld [vmem:[%s6689_s15 + $0x90] sm:$0xff] }
 0x4d4   : >> { %4556 = vst [vmem:[%s6685_s24 + $0x80] sm:$0xff] %v4555_v41  ;;  %4558 = vst [vmem:[%s6685_s24 + $0x88] sm:$0xff] %v4557_v60  ;;  %v4561_v63 = vld [vmem:[%s6689_s15 + $0x98] sm:$0xff]  ;;  %v4563_v54 = vld [vmem:[%s6689_s15 + $0xa0] sm:$0xff] }
 0x4d5   : >> { %4560 = vst [vmem:[%s6685_s24 + $0x90] sm:$0xff] %v4559_v25  ;;  %4562 = vst [vmem:[%s6685_s24 + $0x98] sm:$0xff] %v4561_v63  ;;  %v4565_v55 = vld [vmem:[%s6689_s15 + $0xa8] sm:$0xff]  ;;  %v4567_v12 = vld [vmem:[%s6689_s15 + $0xb0] sm:$0xff] }
 0x4d6   : >> { %4564 = vst [vmem:[%s6685_s24 + $0xa0] sm:$0xff] %v4563_v54  ;;  %v4569_v18 = vld [vmem:[%s6689_s15 + $0xb8] sm:$0xff]  ;;  %4566 = vst [vmem:[%s6685_s24 + $0xa8] sm:$0xff] %v4565_v55  ;;  %v4571_v53 = vld [vmem:[%s6689_s15 + $0xc0] sm:$0xff] }
 0x4d7   : >> { %4568 = vst [vmem:[%s6685_s24 + $0xb0] sm:$0xff] %v4567_v12  ;;  %4570 = vst [vmem:[%s6685_s24 + $0xb8] sm:$0xff] %v4569_v18  ;;  %v4573_v44 = vld [vmem:[%s6689_s15 + $0xc8] sm:$0xff]  ;;  %v4575_v42 = vld [vmem:[%s6689_s15 + $0xd0] sm:$0xff] }
 0x4d8   : >> { %4572 = vst [vmem:[%s6685_s24 + $0xc0] sm:$0xff] %v4571_v53  ;;  %4574 = vst [vmem:[%s6685_s24 + $0xc8] sm:$0xff] %v4573_v44  ;;  %v4577_v21 = vld [vmem:[%s6689_s15 + $0xd8] sm:$0xff]  ;;  %v4579_v36 = vld [vmem:[%s6689_s15 + $0xe0] sm:$0xff] }
 0x4d9   : >> { %4576 = vst [vmem:[%s6685_s24 + $0xd0] sm:$0xff] %v4575_v42  ;;  %v4581_v19 = vld [vmem:[%s6689_s15 + $0xe8] sm:$0xff]  ;;  %4578 = vst [vmem:[%s6685_s24 + $0xd8] sm:$0xff] %v4577_v21  ;;  %v4583_v11 = vld [vmem:[%s6689_s15 + $0xf0] sm:$0xff] }
 0x4da   : >> { %4580 = vst [vmem:[%s6685_s24 + $0xe0] sm:$0xff] %v4579_v36  ;;  %4582 = vst [vmem:[%s6685_s24 + $0xe8] sm:$0xff] %v4581_v19  ;;  %v4585_v33 = vld [vmem:[%s6689_s15 + $0xf8] sm:$0xff]  ;;  %v4587_v62 = vld [vmem:[%s6689_s15 + $0x100] sm:$0xff] }
 0x4db   : >> { %4584 = vst [vmem:[%s6685_s24 + $0xf0] sm:$0xff] %v4583_v11  ;;  %4586 = vst [vmem:[%s6685_s24 + $0xf8] sm:$0xff] %v4585_v33  ;;  %v4589_v14 = vld [vmem:[%s6689_s15 + $0x108] sm:$0xff]  ;;  %v4591_v35 = vld [vmem:[%s6689_s15 + $0x110] sm:$0xff] }
 0x4dc   : >> { %4588 = vst [vmem:[%s6685_s24 + $0x100] sm:$0xff] %v4587_v62  ;;  %v4593_v1 = vld [vmem:[%s6689_s15 + $0x118] sm:$0xff]  ;;  %4590 = vst [vmem:[%s6685_s24 + $0x108] sm:$0xff] %v4589_v14  ;;  %v4595_v43 = vld [vmem:[%s6689_s15 + $0x120] sm:$0xff] }
 0x4dd   : >> { %4592 = vst [vmem:[%s6685_s24 + $0x110] sm:$0xff] %v4591_v35  ;;  %4594 = vst [vmem:[%s6685_s24 + $0x118] sm:$0xff] %v4593_v1  ;;  %v4597_v61 = vld [vmem:[%s6689_s15 + $0x128] sm:$0xff]  ;;  %v4599_v57 = vld [vmem:[%s6689_s15 + $0x130] sm:$0xff] }
 0x4de   : >> { %4596 = vst [vmem:[%s6685_s24 + $0x120] sm:$0xff] %v4595_v43  ;;  %4598 = vst [vmem:[%s6685_s24 + $0x128] sm:$0xff] %v4597_v61  ;;  %v4601_v20 = vld [vmem:[%s6689_s15 + $0x138] sm:$0xff]  ;;  %v4603_v49 = vld [vmem:[%s6689_s15 + $0x140] sm:$0xff] }
 0x4df   : >> { %4600 = vst [vmem:[%s6685_s24 + $0x130] sm:$0xff] %v4599_v57  ;;  %v4605_v51 = vld [vmem:[%s6689_s15 + $0x148] sm:$0xff]  ;;  %4602 = vst [vmem:[%s6685_s24 + $0x138] sm:$0xff] %v4601_v20  ;;  %v4607_v0 = vld [vmem:[%s6689_s15 + $0x150] sm:$0xff] }
 0x4e0   : >> { %4604 = vst [vmem:[%s6685_s24 + $0x140] sm:$0xff] %v4603_v49  ;;  %4606 = vst [vmem:[%s6685_s24 + $0x148] sm:$0xff] %v4605_v51  ;;  %v4609_v24 = vld [vmem:[%s6689_s15 + $0x158] sm:$0xff]  ;;  %v4611_v6 = vld [vmem:[%s6689_s15 + $0x160] sm:$0xff] }
 0x4e1   : >> { %4608 = vst [vmem:[%s6685_s24 + $0x150] sm:$0xff] %v4607_v0  ;;  %4610 = vst [vmem:[%s6685_s24 + $0x158] sm:$0xff] %v4609_v24  ;;  %v4613_v23 = vld [vmem:[%s6689_s15 + $0x168] sm:$0xff]  ;;  %v4615_v3 = vld [vmem:[%s6689_s15 + $0x170] sm:$0xff] }
 0x4e2   : >> { %4612 = vst [vmem:[%s6685_s24 + $0x160] sm:$0xff] %v4611_v6  ;;  %v4617_v9 = vld [vmem:[%s6689_s15 + $0x178] sm:$0xff]  ;;  %4614 = vst [vmem:[%s6685_s24 + $0x168] sm:$0xff] %v4613_v23  ;;  %v4619_v37 = vld [vmem:[%s6689_s15 + $0x180] sm:$0xff] }
 0x4e3   : >> { %4616 = vst [vmem:[%s6685_s24 + $0x170] sm:$0xff] %v4615_v3  ;;  %4618 = vst [vmem:[%s6685_s24 + $0x178] sm:$0xff] %v4617_v9  ;;  %v4621_v7 = vld [vmem:[%s6689_s15 + $0x188] sm:$0xff]  ;;  %v4623_v8 = vld [vmem:[%s6689_s15 + $0x190] sm:$0xff] }
 0x4e4   : >> { %4620 = vst [vmem:[%s6685_s24 + $0x180] sm:$0xff] %v4619_v37  ;;  %4622 = vst [vmem:[%s6685_s24 + $0x188] sm:$0xff] %v4621_v7  ;;  %v4625_v56 = vld [vmem:[%s6689_s15 + $0x198] sm:$0xff]  ;;  %v4627_v30 = vld [vmem:[%s6689_s15 + $0x1a0] sm:$0xff] }
 0x4e5   : >> { %4624 = vst [vmem:[%s6685_s24 + $0x190] sm:$0xff] %v4623_v8  ;;  %v4629_v58 = vld [vmem:[%s6689_s15 + $0x1a8] sm:$0xff]  ;;  %4626 = vst [vmem:[%s6685_s24 + $0x198] sm:$0xff] %v4625_v56  ;;  %v4631_v26 = vld [vmem:[%s6689_s15 + $0x1b0] sm:$0xff]  ;;  %4519 = sbr.rel (!%p4516_p0) target bundleno = 1227 (0x4cb), region = 200 }
 0x4e6   : >> { %4628 = vst [vmem:[%s6685_s24 + $0x1a0] sm:$0xff] %v4627_v30  ;;  %4630 = vst [vmem:[%s6685_s24 + $0x1a8] sm:$0xff] %v4629_v58  ;;  %v4633_v40 = vld [vmem:[%s6689_s15 + $0x1b8] sm:$0xff]  ;;  %v4635_v10 = vld [vmem:[%s6689_s15 + $0x1c0] sm:$0xff] }
 0x4e7   : >> { %4632 = vst [vmem:[%s6685_s24 + $0x1b0] sm:$0xff] %v4631_v26  ;;  %4634 = vst [vmem:[%s6685_s24 + $0x1b8] sm:$0xff] %v4633_v40  ;;  %v4637_v34 = vld [vmem:[%s6689_s15 + $0x1c8] sm:$0xff]  ;;  %v4639_v16 = vld [vmem:[%s6689_s15 + $0x1d0] sm:$0xff] }
 0x4e8   : >> { %4636 = vst [vmem:[%s6685_s24 + $0x1c0] sm:$0xff] %v4635_v10  ;;  %v4641_v45 = vld [vmem:[%s6689_s15 + $0x1d8] sm:$0xff]  ;;  %4638 = vst [vmem:[%s6685_s24 + $0x1c8] sm:$0xff] %v4637_v34  ;;  %v4643_v29 = vld [vmem:[%s6689_s15 + $0x1e0] sm:$0xff] }
 0x4e9   : >> { %4640 = vst [vmem:[%s6685_s24 + $0x1d0] sm:$0xff] %v4639_v16  ;;  %4642 = vst [vmem:[%s6685_s24 + $0x1d8] sm:$0xff] %v4641_v45  ;;  %v4645_v47 = vld [vmem:[%s6689_s15 + $0x1e8] sm:$0xff]  ;;  %v4647_v15 = vld [vmem:[%s6689_s15 + $0x1f0] sm:$0xff] }
 0x4ea   : >> { %4644 = vst [vmem:[%s6685_s24 + $0x1e0] sm:$0xff] %v4643_v29  ;;  %4646 = vst [vmem:[%s6685_s24 + $0x1e8] sm:$0xff] %v4645_v47  ;;  %v4649_v13 = vld [vmem:[%s6689_s15 + $0x1f8] sm:$0xff]  ;;  %s10662_s15 = smov %s9541_s7 }
 0x4eb   : >> { %4648 = vst [vmem:[%s6685_s24 + $0x1f0] sm:$0xff] %v4647_v15  ;;  %4650 = vst [vmem:[%s6685_s24 + $0x1f8] sm:$0xff] %v4649_v13  ;;  %s10661_s24 = smov %s9544_s0 }
 0x4ec PF: > { %s9650_s1 = sand.u32 63, %s4510_s23   ;;  %s5199_s2 = sshll.u32 %s9474_s12, 13 }
 0x4ed   : > { %s4662_s29 = sshra.s32 %s5199_s2, 4  ;;  %p5182_p2 = scmp.le.s32.totalorder %s9650_s1, 0 }
 0x4ee   : > { %s4663_s14 = scalar_lea.vmem %s9413_s16, %s4662_s29 [#allocation5]   ;;  %s4666_s27 = scalar_lea.vmem %s9461_s30, %s4662_s29  }
 0x4ef   : > { %5018 = sbr.rel (%p5182_p2) target bundleno = 1280 (0x500), region = 205  ;;  %s6699_s7 = smov (!%p5182_p2), %s4666_s27  }
 0x4f0   : > { %s6703_s28 = smov (!%p5182_p2), %s4663_s14   ;;  %s6707_s0 = smov (!%p5182_p2), 0  }
 0x4f1   : > { %s6711_s4 = smov (!%p5182_p2), 0  }
 0x4f6 LB: >> { %v4678_v46 = vld [vmem:[%s6705_s28] sm:$0xff]  ;;  %s4680_s23 = sadd.s32 1, %s6709_s0  ;;  %s4672_s4 = sadd.s32 1, %s6713_s4   ;;  %s6713_s4 = sphi %s6711_s4, %s4672_s4   ;;  %s6709_s0 = sphi %s6707_s0, %s6708_s0   ;;  %s6705_s28 = sphi %s6703_s28, %s4685_s28   ;;  %s6701_s7 = sphi %s6699_s7, %s4686_s7  }
 0x4f7   : >> { %4679 = vst [vmem:[%s6701_s7] sm:$0xff] %v4678_v46  ;;  %p4681_p4 = scmp.ge.s32.totalorder %s4680_s23, %s9650_s1  ;;  %p4671_p6 = scmp.ge.s32.totalorder %s4672_s4, %s9650_s1 }
 0x4f9   : >> { %s10694_s23 = smov (%p4681_p4, %s4680_s23), 0  ;;  %4674 = sbr.rel (!%p4671_p6) target bundleno = 1270 (0x4f6), region = 211 }
 0x4fa   : >> { %s5183_s12 = sshll.u32 %s10694_s23, 3  ;;  %s6708_s0 = smov %s10694_s23  }
 0x4fb   : >> { %s4685_s28 = scalar_lea.vmem %s4663_s14, %s5183_s12 [#allocation5]   ;;  %s4686_s7 = scalar_lea.vmem %s4666_s27, %s5183_s12  }
 0x500 PF: > { %4689 = sbr.rel (%p4506_p10) target bundleno = 1351 (0x547), region = 109  ;;  %s9662_s24 = ssub.s32 (!%p4506_p10), %s9463_s3, %s9467_s22 }
 0x501   : > { %s4695_s15 = sshrl.u32 (!%p4506_p10), %s9463_s3, 3 }
 0x502   : > { %s9671_s29 = sshrl.u32 (!%p4506_p10), %s4695_s15, 6 }
 0x503   : > { %p5185_p5 = scmp.le.s32.totalorder (!%p4506_p10), %s9671_s29, 0 }
 0x507   : > { %5032 = sbr.rel (%p5185_p5) target bundleno = 1327 (0x52f), region = 216  ;;  %s10664_s1 = smov (!%p5185_p5), %s9461_s30 }
 0x508   : > { %s10665_s14 = smov (!%p5185_p5), %s9413_s16  ;;  %s9680_s27 = smov (!%p5185_p5), 0  }
 0x509   : > { %s9682_s7 = smov (!%p5185_p5), 0  }
 0x50e LB: >> { %v4708_v17 = vld [vmem:[%s6721_s14] sm:$0xff]  ;;  %v4710_v27 = vld [vmem:[%s6721_s14 + $0x8] sm:$0xff]  ;;  %v4712_v38 = vld [vmem:[%s6721_s14 + $0x10] sm:$0xff]  ;;  %s4836_s28 = sadd.s32 1, %s6725_s27  ;;  %s4702_s7 = sadd.s32 1, %s6729_s7   ;;  %s6729_s7 = sphi %s9682_s7, %s4702_s7   ;;  %s6725_s27 = sphi %s9680_s27, %s10668_s27   ;;  %s6721_s14 = sphi %s10665_s14, %s10667_s14   ;;  %s6717_s1 = sphi %s10664_s1, %s10666_s1  }
 0x50f   : >> { %4709 = vst [vmem:[%s6717_s1] sm:$0xff] %v4708_v17  ;;  %4711 = vst [vmem:[%s6717_s1 + $0x8] sm:$0xff] %v4710_v27  ;;  %v4714_v52 = vld [vmem:[%s6721_s14 + $0x18] sm:$0xff]  ;;  %v4716_v48 = vld [vmem:[%s6721_s14 + $0x20] sm:$0xff]  ;;  %p4837_p7 = scmp.ge.s32.totalorder %s4836_s28, %s9671_s29  ;;  %p4701_p9 = scmp.ge.s32.totalorder %s4702_s7, %s9671_s29 }
 0x510   : >> { %4713 = vst [vmem:[%s6717_s1 + $0x10] sm:$0xff] %v4712_v38  ;;  %v4718_v32 = vld [vmem:[%s6721_s14 + $0x28] sm:$0xff]  ;;  %4715 = vst [vmem:[%s6717_s1 + $0x18] sm:$0xff] %v4714_v52  ;;  %v4720_v50 = vld [vmem:[%s6721_s14 + $0x30] sm:$0xff] }
 0x511   : >> { %4717 = vst [vmem:[%s6717_s1 + $0x20] sm:$0xff] %v4716_v48  ;;  %4719 = vst [vmem:[%s6717_s1 + $0x28] sm:$0xff] %v4718_v32  ;;  %v4722_v39 = vld [vmem:[%s6721_s14 + $0x38] sm:$0xff]  ;;  %v4724_v28 = vld [vmem:[%s6721_s14 + $0x40] sm:$0xff]  ;;  %s10696_s28 = smov (%p4837_p7, %s4836_s28), 0 }
 0x512   : >> { %4721 = vst [vmem:[%s6717_s1 + $0x30] sm:$0xff] %v4720_v50  ;;  %4723 = vst [vmem:[%s6717_s1 + $0x38] sm:$0xff] %v4722_v39  ;;  %v4726_v59 = vld [vmem:[%s6721_s14 + $0x48] sm:$0xff]  ;;  %v4728_v22 = vld [vmem:[%s6721_s14 + $0x50] sm:$0xff]  ;;  %s5186_s0 = sshll.u32 %s10696_s28, 9  ;;  %s10668_s27 = smov %s10696_s28 }
 0x513   : >> { %4725 = vst [vmem:[%s6717_s1 + $0x40] sm:$0xff] %v4724_v28  ;;  %v4730_v2 = vld [vmem:[%s6721_s14 + $0x58] sm:$0xff]  ;;  %4727 = vst [vmem:[%s6717_s1 + $0x48] sm:$0xff] %v4726_v59  ;;  %v4732_v4 = vld [vmem:[%s6721_s14 + $0x60] sm:$0xff]  ;;  %s9738_s4 = scalar_lea.vmem %s9413_s16, %s5186_s0 [#allocation5]   ;;  %s9741_s23 = scalar_lea.vmem %s9461_s30, %s5186_s0  }
 0x514   : >> { %4729 = vst [vmem:[%s6717_s1 + $0x50] sm:$0xff] %v4728_v22  ;;  %4731 = vst [vmem:[%s6717_s1 + $0x58] sm:$0xff] %v4730_v2  ;;  %v4734_v5 = vld [vmem:[%s6721_s14 + $0x68] sm:$0xff]  ;;  %v4736_v31 = vld [vmem:[%s6721_s14 + $0x70] sm:$0xff] }
 0x515   : >> { %4733 = vst [vmem:[%s6717_s1 + $0x60] sm:$0xff] %v4732_v4  ;;  %4735 = vst [vmem:[%s6717_s1 + $0x68] sm:$0xff] %v4734_v5  ;;  %v4738_v41 = vld [vmem:[%s6721_s14 + $0x78] sm:$0xff]  ;;  %v4740_v60 = vld [vmem:[%s6721_s14 + $0x80] sm:$0xff] }
 0x516   : >> { %4737 = vst [vmem:[%s6717_s1 + $0x70] sm:$0xff] %v4736_v31  ;;  %v4742_v25 = vld [vmem:[%s6721_s14 + $0x88] sm:$0xff]  ;;  %4739 = vst [vmem:[%s6717_s1 + $0x78] sm:$0xff] %v4738_v41  ;;  %v4744_v63 = vld [vmem:[%s6721_s14 + $0x90] sm:$0xff] }
 0x517   : >> { %4741 = vst [vmem:[%s6717_s1 + $0x80] sm:$0xff] %v4740_v60  ;;  %4743 = vst [vmem:[%s6717_s1 + $0x88] sm:$0xff] %v4742_v25  ;;  %v4746_v54 = vld [vmem:[%s6721_s14 + $0x98] sm:$0xff]  ;;  %v4748_v55 = vld [vmem:[%s6721_s14 + $0xa0] sm:$0xff] }
 0x518   : >> { %4745 = vst [vmem:[%s6717_s1 + $0x90] sm:$0xff] %v4744_v63  ;;  %4747 = vst [vmem:[%s6717_s1 + $0x98] sm:$0xff] %v4746_v54  ;;  %v4750_v12 = vld [vmem:[%s6721_s14 + $0xa8] sm:$0xff]  ;;  %v4752_v18 = vld [vmem:[%s6721_s14 + $0xb0] sm:$0xff] }
 0x519   : >> { %4749 = vst [vmem:[%s6717_s1 + $0xa0] sm:$0xff] %v4748_v55  ;;  %v4754_v53 = vld [vmem:[%s6721_s14 + $0xb8] sm:$0xff]  ;;  %4751 = vst [vmem:[%s6717_s1 + $0xa8] sm:$0xff] %v4750_v12  ;;  %v4756_v44 = vld [vmem:[%s6721_s14 + $0xc0] sm:$0xff] }
 0x51a   : >> { %4753 = vst [vmem:[%s6717_s1 + $0xb0] sm:$0xff] %v4752_v18  ;;  %4755 = vst [vmem:[%s6717_s1 + $0xb8] sm:$0xff] %v4754_v53  ;;  %v4758_v42 = vld [vmem:[%s6721_s14 + $0xc8] sm:$0xff]  ;;  %v4760_v21 = vld [vmem:[%s6721_s14 + $0xd0] sm:$0xff] }
 0x51b   : >> { %4757 = vst [vmem:[%s6717_s1 + $0xc0] sm:$0xff] %v4756_v44  ;;  %4759 = vst [vmem:[%s6717_s1 + $0xc8] sm:$0xff] %v4758_v42  ;;  %v4762_v36 = vld [vmem:[%s6721_s14 + $0xd8] sm:$0xff]  ;;  %v4764_v19 = vld [vmem:[%s6721_s14 + $0xe0] sm:$0xff] }
 0x51c   : >> { %4761 = vst [vmem:[%s6717_s1 + $0xd0] sm:$0xff] %v4760_v21  ;;  %v4766_v11 = vld [vmem:[%s6721_s14 + $0xe8] sm:$0xff]  ;;  %4763 = vst [vmem:[%s6717_s1 + $0xd8] sm:$0xff] %v4762_v36  ;;  %v4768_v33 = vld [vmem:[%s6721_s14 + $0xf0] sm:$0xff] }
 0x51d   : >> { %4765 = vst [vmem:[%s6717_s1 + $0xe0] sm:$0xff] %v4764_v19  ;;  %4767 = vst [vmem:[%s6717_s1 + $0xe8] sm:$0xff] %v4766_v11  ;;  %v4770_v62 = vld [vmem:[%s6721_s14 + $0xf8] sm:$0xff]  ;;  %v4772_v14 = vld [vmem:[%s6721_s14 + $0x100] sm:$0xff] }
 0x51e   : >> { %4769 = vst [vmem:[%s6717_s1 + $0xf0] sm:$0xff] %v4768_v33  ;;  %4771 = vst [vmem:[%s6717_s1 + $0xf8] sm:$0xff] %v4770_v62  ;;  %v4774_v35 = vld [vmem:[%s6721_s14 + $0x108] sm:$0xff]  ;;  %v4776_v1 = vld [vmem:[%s6721_s14 + $0x110] sm:$0xff] }
 0x51f   : >> { %4773 = vst [vmem:[%s6717_s1 + $0x100] sm:$0xff] %v4772_v14  ;;  %v4778_v43 = vld [vmem:[%s6721_s14 + $0x118] sm:$0xff]  ;;  %4775 = vst [vmem:[%s6717_s1 + $0x108] sm:$0xff] %v4774_v35  ;;  %v4780_v61 = vld [vmem:[%s6721_s14 + $0x120] sm:$0xff] }
 0x520   : >> { %4777 = vst [vmem:[%s6717_s1 + $0x110] sm:$0xff] %v4776_v1  ;;  %4779 = vst [vmem:[%s6717_s1 + $0x118] sm:$0xff] %v4778_v43  ;;  %v4782_v57 = vld [vmem:[%s6721_s14 + $0x128] sm:$0xff]  ;;  %v4784_v20 = vld [vmem:[%s6721_s14 + $0x130] sm:$0xff] }
 0x521   : >> { %4781 = vst [vmem:[%s6717_s1 + $0x120] sm:$0xff] %v4780_v61  ;;  %4783 = vst [vmem:[%s6717_s1 + $0x128] sm:$0xff] %v4782_v57  ;;  %v4786_v49 = vld [vmem:[%s6721_s14 + $0x138] sm:$0xff]  ;;  %v4788_v51 = vld [vmem:[%s6721_s14 + $0x140] sm:$0xff] }
 0x522   : >> { %4785 = vst [vmem:[%s6717_s1 + $0x130] sm:$0xff] %v4784_v20  ;;  %v4790_v0 = vld [vmem:[%s6721_s14 + $0x148] sm:$0xff]  ;;  %4787 = vst [vmem:[%s6717_s1 + $0x138] sm:$0xff] %v4786_v49  ;;  %v4792_v24 = vld [vmem:[%s6721_s14 + $0x150] sm:$0xff] }
 0x523   : >> { %4789 = vst [vmem:[%s6717_s1 + $0x140] sm:$0xff] %v4788_v51  ;;  %4791 = vst [vmem:[%s6717_s1 + $0x148] sm:$0xff] %v4790_v0  ;;  %v4794_v6 = vld [vmem:[%s6721_s14 + $0x158] sm:$0xff]  ;;  %v4796_v23 = vld [vmem:[%s6721_s14 + $0x160] sm:$0xff] }
 0x524   : >> { %4793 = vst [vmem:[%s6717_s1 + $0x150] sm:$0xff] %v4792_v24  ;;  %4795 = vst [vmem:[%s6717_s1 + $0x158] sm:$0xff] %v4794_v6  ;;  %v4798_v3 = vld [vmem:[%s6721_s14 + $0x168] sm:$0xff]  ;;  %v4800_v9 = vld [vmem:[%s6721_s14 + $0x170] sm:$0xff] }
 0x525   : >> { %4797 = vst [vmem:[%s6717_s1 + $0x160] sm:$0xff] %v4796_v23  ;;  %v4802_v37 = vld [vmem:[%s6721_s14 + $0x178] sm:$0xff]  ;;  %4799 = vst [vmem:[%s6717_s1 + $0x168] sm:$0xff] %v4798_v3  ;;  %v4804_v7 = vld [vmem:[%s6721_s14 + $0x180] sm:$0xff] }
 0x526   : >> { %4801 = vst [vmem:[%s6717_s1 + $0x170] sm:$0xff] %v4800_v9  ;;  %4803 = vst [vmem:[%s6717_s1 + $0x178] sm:$0xff] %v4802_v37  ;;  %v4806_v8 = vld [vmem:[%s6721_s14 + $0x188] sm:$0xff]  ;;  %v4808_v56 = vld [vmem:[%s6721_s14 + $0x190] sm:$0xff] }
 0x527   : >> { %4805 = vst [vmem:[%s6717_s1 + $0x180] sm:$0xff] %v4804_v7  ;;  %4807 = vst [vmem:[%s6717_s1 + $0x188] sm:$0xff] %v4806_v8  ;;  %v4810_v30 = vld [vmem:[%s6721_s14 + $0x198] sm:$0xff]  ;;  %v4812_v58 = vld [vmem:[%s6721_s14 + $0x1a0] sm:$0xff] }
 0x528   : >> { %4809 = vst [vmem:[%s6717_s1 + $0x190] sm:$0xff] %v4808_v56  ;;  %v4814_v26 = vld [vmem:[%s6721_s14 + $0x1a8] sm:$0xff]  ;;  %4811 = vst [vmem:[%s6717_s1 + $0x198] sm:$0xff] %v4810_v30  ;;  %v4816_v40 = vld [vmem:[%s6721_s14 + $0x1b0] sm:$0xff]  ;;  %4704 = sbr.rel (!%p4701_p9) target bundleno = 1294 (0x50e), region = 222 }
 0x529   : >> { %4813 = vst [vmem:[%s6717_s1 + $0x1a0] sm:$0xff] %v4812_v58  ;;  %4815 = vst [vmem:[%s6717_s1 + $0x1a8] sm:$0xff] %v4814_v26  ;;  %v4818_v10 = vld [vmem:[%s6721_s14 + $0x1b8] sm:$0xff]  ;;  %v4820_v34 = vld [vmem:[%s6721_s14 + $0x1c0] sm:$0xff] }
 0x52a   : >> { %4817 = vst [vmem:[%s6717_s1 + $0x1b0] sm:$0xff] %v4816_v40  ;;  %4819 = vst [vmem:[%s6717_s1 + $0x1b8] sm:$0xff] %v4818_v10  ;;  %v4822_v16 = vld [vmem:[%s6721_s14 + $0x1c8] sm:$0xff]  ;;  %v4824_v45 = vld [vmem:[%s6721_s14 + $0x1d0] sm:$0xff] }
 0x52b   : >> { %4821 = vst [vmem:[%s6717_s1 + $0x1c0] sm:$0xff] %v4820_v34  ;;  %v4826_v29 = vld [vmem:[%s6721_s14 + $0x1d8] sm:$0xff]  ;;  %4823 = vst [vmem:[%s6717_s1 + $0x1c8] sm:$0xff] %v4822_v16  ;;  %v4828_v47 = vld [vmem:[%s6721_s14 + $0x1e0] sm:$0xff] }
 0x52c   : >> { %4825 = vst [vmem:[%s6717_s1 + $0x1d0] sm:$0xff] %v4824_v45  ;;  %4827 = vst [vmem:[%s6717_s1 + $0x1d8] sm:$0xff] %v4826_v29  ;;  %v4830_v15 = vld [vmem:[%s6721_s14 + $0x1e8] sm:$0xff]  ;;  %v4832_v13 = vld [vmem:[%s6721_s14 + $0x1f0] sm:$0xff] }
 0x52d   : >> { %4829 = vst [vmem:[%s6717_s1 + $0x1e0] sm:$0xff] %v4828_v47  ;;  %4831 = vst [vmem:[%s6717_s1 + $0x1e8] sm:$0xff] %v4830_v15  ;;  %v4834_v46 = vld [vmem:[%s6721_s14 + $0x1f8] sm:$0xff]  ;;  %s10667_s14 = smov %s9738_s4 }
 0x52e   : >> { %4833 = vst [vmem:[%s6717_s1 + $0x1f0] sm:$0xff] %v4832_v13  ;;  %4835 = vst [vmem:[%s6717_s1 + $0x1f8] sm:$0xff] %v4834_v46  ;;  %s10666_s1 = smov %s9741_s23 }
 0x52f PF: > { %s9847_s12 = sand.u32 63, %s4695_s15   ;;  %s5201_s0 = sshll.u32 %s9671_s29, 13 }
 0x530   : > { %s4847_s2 = sshra.s32 %s5201_s0, 4  ;;  %p5191_p1 = scmp.le.s32.totalorder %s9847_s12, 0 }
 0x531   : > { %s4848_s18 = scalar_lea.vmem %s9413_s16, %s4847_s2 [#allocation5]   ;;  %s4851_s5 = scalar_lea.vmem %s9461_s30, %s4847_s2  }
 0x532   : > { %5046 = sbr.rel (%p5191_p1) target bundleno = 1347 (0x543), region = 227  ;;  %s6731_s4 = smov (!%p5191_p1), %s4851_s5  }
 0x533   : > { %s6735_s28 = smov (!%p5191_p1), %s4848_s18   ;;  %s6739_s23 = smov (!%p5191_p1), 0  }
 0x534   : > { %s6743_s7 = smov (!%p5191_p1), 0  }
 0x539 LB: >> { %v4863_v17 = vld [vmem:[%s6737_s28] sm:$0xff]  ;;  %s4865_s15 = sadd.s32 1, %s6741_s23  ;;  %s4857_s7 = sadd.s32 1, %s6745_s7   ;;  %s6745_s7 = sphi %s6743_s7, %s4857_s7   ;;  %s6741_s23 = sphi %s6739_s23, %s6740_s23   ;;  %s6737_s28 = sphi %s6735_s28, %s4870_s28   ;;  %s6733_s4 = sphi %s6731_s4, %s4871_s4  }
 0x53a   : >> { %4864 = vst [vmem:[%s6733_s4] sm:$0xff] %v4863_v17  ;;  %p4866_p3 = scmp.ge.s32.totalorder %s4865_s15, %s9847_s12  ;;  %p4856_p10 = scmp.ge.s32.totalorder %s4857_s7, %s9847_s12 }
 0x53c   : >> { %s10698_s15 = smov (%p4866_p3, %s4865_s15), 0  ;;  %4859 = sbr.rel (!%p4856_p10) target bundleno = 1337 (0x539), region = 233 }
 0x53d   : >> { %s5192_s2 = sshll.u32 %s10698_s15, 3  ;;  %s6740_s23 = smov %s10698_s15  }
 0x53e   : >> { %s4870_s28 = scalar_lea.vmem %s4848_s18, %s5192_s2 [#allocation5]   ;;  %s4871_s4 = scalar_lea.vmem %s4851_s5, %s5192_s2  }
 0x543 PF: > { %s6757_s29 = smov 0   ;;  %s10669_s14 = scalar_lea.vmem %s9413_s16, %s9662_s24 [#allocation5] }
 0x544   : > { %s4872_s1 = sshllo.u32 %s6757_s29, %s9467_s22  ;;  %s10670_s27 = scalar_lea.vmem %s9461_s30, %s9662_s24 }
 0x545   : > { %v4881_v27 = vld [vmem:[%s10669_s14] sm:%s4872_s1] }
 0x546   : > { %4882 = vst [vmem:[%s10670_s27] sm:%s4872_s1] %v4881_v27 }
 0x547 PF: > { %p5194_p11 = scmp.ge.u32.totalorder %s9463_s3, 8 }
 0x548   : > { %s6758_s0 = smov (!%p5194_p11), 0  }
 0x549   : > { %4493 = sbr.rel (%p5194_p11) target bundleno = 1360 (0x550), region = 80  ;;  %s4494_s5 = sshllo.u32 (!%p5194_p11), %s6758_s0, %s9463_s3 }
 0x54a   : > { %v4503_v38 = vld [vmem:[%s9413_s16] sm:%s4494_s5] (!%p5194_p11) }
 0x54b   : > { %4504 = vst [vmem:[%s9461_s30] sm:%s4494_s5] (!%p5194_p11), %v4503_v38 }
 0x550 PF: > { %p6277_p12 = scmp.ge.s32.totalorder %s6681_s26, 2  ;;  %s4892_s22 = sand.u32 1, %s6653_s19  }
 0x551   : > { %s4893_s24 = scalar_lea.sflag [#allocation4], %s4892_s22 }
 0x552   : > { %p6274_p13 = pnand %p6277_p12, %p6882_p8 }
 0x554   : > { %6648 = dma.done.wait (!%p6274_p13), %s4893_s24, 32  }
 0x555   : > { %6650 = vsyncadd (!%p6274_p13), %s4893_s24, 4294967264  ;;  %s27_s26 = sadd.s32 1, %s6681_s26   ;;  %s10671_s22 = sld [smem:[#allocation7_spill]] }
 0x556   : > { %p24_p0 = scmp.ge.s32.totalorder %s27_s26, 8   ;;  %s10672_s24 = sld [smem:[#allocation8_spill]] }
 0x557   : > { %s10673_s16 = sld [smem:[#allocation9_spill]]  ;;  %s10674_s19 = smov %s6657_s20 }
 0x558   : > { %s10675_s20 = smov %s6661_s21  ;;  %s10676_s21 = smov %s6891_s17 }
 0x559   : > { %s10677_s23 = smov %s6677_s25  ;;  %26 = sbr.rel (!%p24_p0) target bundleno = 12 (0xc), region = 244 }
 0x55d   : > { %s10678_s25 = smov %s10673_s16 }
 0x560   :  { %4905 = vsyncpa [#allocation4], 1 }
 0x561   :  { %4907 = vsyncpa [#allocation4 + $0x1], 1 }

</bundles_post_ra>
